<compile_context>
chip_gen: v5e
topology: v5e:2x2
jax: 0.10.0
libtpu: 0.0.40
codegen_flags: <defaults>
</compile_context>

<pallas_src>
import functools
import math

import jax
import jax.numpy as jnp
import numpy as np
from jax.experimental import pallas as pl
from jax.experimental.pallas import tpu as pltpu

MIN_NORM = 1e-15
BALL_EPS = 4e-3            # PoincareBall projection eps for float32 (matches HGCN repo)
ARTANH_CLAMP = 1.0 - 1e-7  # f32-meaningful clamp (1 - 1e-15 is a no-op in f32)


def _exact_rcp(v):
    return 1.0 / v


# ------------- PoincareBall manifold math (shared by kernels & reference) -------------
def _artanh(x):
    x = jnp.clip(x, -ARTANH_CLAMP, ARTANH_CLAMP)
    return 0.5 * jnp.log((1.0 + x) / (1.0 - x))


def _norm(x):
    return jnp.sqrt(jnp.sum(x * x, axis=-1, keepdims=True))


def _proj(x, c, rcp):
    norm = jnp.maximum(_norm(x), MIN_NORM)
    maxnorm = (1.0 - BALL_EPS) / (c ** 0.5)
    projected = x * (maxnorm * rcp(norm))
    return jnp.where(norm > maxnorm, projected, x)


def _expmap0(u, c, rcp):
    sqrt_c = c ** 0.5
    u_norm = jnp.maximum(_norm(u), MIN_NORM)
    return jnp.tanh(sqrt_c * u_norm) * u * rcp(sqrt_c * u_norm)


def _logmap0(p, c, rcp):
    sqrt_c = c ** 0.5
    p_norm = jnp.maximum(_norm(p), MIN_NORM)
    return _artanh(sqrt_c * p_norm) * rcp(sqrt_c * p_norm) * p


def _proj_expmap0(u, c, rcp):
    # Fused proj(expmap0(u, c), c): ||expmap0(u)|| = tanh(sqrt_c*||u||)/sqrt_c analytically,
    # saving one cross-lane norm reduction (XLU) per call.
    sqrt_c = c ** 0.5
    u_norm = jnp.maximum(_norm(u), MIN_NORM)
    t = jnp.tanh(sqrt_c * u_norm)
    gamma = t * u * rcp(sqrt_c * u_norm)
    g_norm = jnp.maximum(t * (1.0 / sqrt_c), MIN_NORM)
    maxnorm = (1.0 - BALL_EPS) / sqrt_c
    projected = gamma * (maxnorm * rcp(g_norm))
    return jnp.where(g_norm > maxnorm, projected, gamma)


def _proj_expmap0_logmap0(u, c, rcp):
    # Fused logmap0(proj(expmap0(u, c), c), c): reuses analytical norms of both expmap0
    # and the clipped point, saving two cross-lane reductions vs. the unfused chain.
    sqrt_c = c ** 0.5
    u_norm = jnp.maximum(_norm(u), MIN_NORM)
    t = jnp.tanh(sqrt_c * u_norm)
    gamma = t * u * rcp(sqrt_c * u_norm)                      # expmap0(u)
    g_norm = jnp.maximum(t * (1.0 / sqrt_c), MIN_NORM)        # ||expmap0(u)||
    maxnorm = (1.0 - BALL_EPS) / sqrt_c
    clipped = g_norm > maxnorm
    h = jnp.where(clipped, gamma * (maxnorm * rcp(g_norm)), gamma)
    h_norm = jnp.where(clipped, maxnorm, g_norm)              # ||proj(expmap0(u))||
    return _artanh(sqrt_c * h_norm) * rcp(sqrt_c * h_norm) * h


def _proj_logmap0(p, c, rcp):
    # Fused logmap0(proj(p, c), c): ||proj(p)|| = min(||p||, maxnorm) -> one norm reduction.
    sqrt_c = c ** 0.5
    maxnorm = (1.0 - BALL_EPS) / sqrt_c
    p_norm = jnp.maximum(_norm(p), MIN_NORM)
    clipped = p_norm > maxnorm
    q = jnp.where(clipped, p * (maxnorm * rcp(p_norm)), p)
    q_norm = jnp.where(clipped, maxnorm, p_norm)
    return _artanh(sqrt_c * q_norm) * rcp(sqrt_c * q_norm) * q


def _mobius_add(x, y, c, rcp):
    x2 = jnp.sum(x * x, axis=-1, keepdims=True)
    y2 = jnp.sum(y * y, axis=-1, keepdims=True)
    xy = jnp.sum(x * y, axis=-1, keepdims=True)
    num = (1.0 + 2.0 * c * xy + c * y2) * x + (1.0 - c * x2) * y
    denom = 1.0 + 2.0 * c * xy + c * c * x2 * y2
    return num * rcp(jnp.maximum(denom, MIN_NORM))


def _mobius_matvec_t(w_t, x, c, rcp):
    # w_t is W^T: [Din, Dout]; equivalent to torch mobius_matvec(W, x, c).
    sqrt_c = c ** 0.5
    x_norm = jnp.maximum(_norm(x), MIN_NORM)
    mx = jnp.dot(x, w_t, preferred_element_type=jnp.float32)
    mx_norm = jnp.maximum(_norm(mx), MIN_NORM)
    res_c = (jnp.tanh(mx_norm * rcp(x_norm) * _artanh(sqrt_c * x_norm))
             * mx * rcp(mx_norm * sqrt_c))
    cond = jnp.max(jnp.abs(mx), axis=-1, keepdims=True) == 0.0   # all(mx == 0)
    return jnp.where(cond, jnp.zeros_like(res_c), res_c)


def _hyplinear_tangent(x, w_t, hyp_bias, c_in, rcp):
    # HypLinear (dropout is a no-op at inference) followed by logmap0 (start of HypAgg).
    mv = _mobius_matvec_t(w_t, x, c_in, rcp)
    res = _proj(mv, c_in, rcp)
    res = _mobius_add(res, hyp_bias, c_in, rcp)
    return _proj_logmap0(res, c_in, rcp)


def _agg_act_epilogue(support_t, c_in, c_out, rcp):
    # HypAgg tail: proj(expmap0(.)); HypAct: proj(expmap0(relu(logmap0(.)))).
    # proj_tan0 is the identity on the Poincare ball.
    xt = jnp.maximum(_proj_expmap0_logmap0(support_t, c_in, rcp), 0.0)   # ReLU
    return _proj_expmap0(xt, c_out, rcp)


def _hyp_bias(b, c_in):
    # Hoisted per-layer constant [1, Dout] (proj_tan0 is identity on PoincareBall).
    return _proj(_expmap0(b, c_in, _exact_rcp), c_in, _exact_rcp)


# ------------------------------ pure-JAX references ------------------------------------
def hgcn_reference(x, w_t, b, adj, c_in, c_out):
    """Exact f32, unfused module semantics."""
    rcp = _exact_rcp
    hyp_bias = _hyp_bias(b, c_in)
    mv = _mobius_matvec_t(w_t, x, c_in, rcp)
    res = _proj(mv, c_in, rcp)
    res = _proj(_mobius_add(res, hyp_bias, c_in, rcp), c_in, rcp)
    x_tan = _logmap0(res, c_in, rcp)
    support_t = jnp.dot(adj, x_tan, preferred_element_type=jnp.float32)
    h = _proj(_expmap0(support_t, c_in, rcp), c_in, rcp)
    xt = jnp.maximum(_logmap0(h, c_in, rcp), 0.0)
    return _proj(_expmap0(xt, c_out, rcp), c_out, rcp)


def hgcn_reference_matched(x, w_t, b, adj, c_in, c_out):
    """Same math, but mirrors the kernel's bf16 adjacency / x_tangent streaming."""
    rcp = _exact_rcp
    hyp_bias = _hyp_bias(b, c_in)
    mv = _mobius_matvec_t(w_t, x, c_in, rcp)
    res = _proj(mv, c_in, rcp)
    res = _proj(_mobius_add(res, hyp_bias, c_in, rcp), c_in, rcp)
    x_tan = _logmap0(res, c_in, rcp).astype(jnp.bfloat16)
    support_t = jnp.dot(adj.astype(jnp.bfloat16), x_tan,
                        preferred_element_type=jnp.float32)
    h = _proj(_expmap0(support_t, c_in, rcp), c_in, rcp)
    xt = jnp.maximum(_logmap0(h, c_in, rcp), 0.0)
    return _proj(_expmap0(xt, c_out, rcp), c_out, rcp)


# -------------------------------- Pallas kernels ---------------------------------------
def _linear_tangent_kernel(x_ref, w_ref, b_ref, xt_ref, *, c_in):
    rcp = functools.partial(pl.reciprocal, approx=True)
    xt_ref[...] = _hyplinear_tangent(
        x_ref[...], w_ref[...], b_ref[...], c_in, rcp
    ).astype(xt_ref.dtype)


def _agg_act_kernel(adj_ref, xt_ref, out_ref, acc_ref, *, c_in, c_out):
    k = pl.program_id(1)

    @pl.when(k == 0)
    def _():
        acc_ref[...] = jnp.zeros_like(acc_ref)

    # Native bf16 x bf16 MXU matmul with f32 accumulation (no VPU cast of the adj tile).
    acc_ref[...] += jnp.dot(adj_ref[...], xt_ref[...],
                            preferred_element_type=jnp.float32)

    @pl.when(k == pl.num_programs(1) - 1)
    def _():
        rcp = functools.partial(pl.reciprocal, approx=True)
        out_ref[...] = _agg_act_epilogue(acc_ref[...], c_in, c_out, rcp).astype(out_ref.dtype)


# ------------------------------------ wrapper -------------------------------------------
def _round_up(v, m):
    return (v + m - 1) // m * m


def _pad2(a, rows, cols):
    pr, pc = rows - a.shape[0], cols - a.shape[1]
    if pr == 0 and pc == 0:
        return a
    return jnp.pad(a, ((0, pr), (0, pc)))


def hgcn_forward(x, w, b, adj, c_in, c_out, *, tm=512, tk=512):
    """HyperbolicGraphConvolution forward (use_att=False, local_agg=False, eval mode).

    x   : [N, Din]    f32 points on the curvature-c_in Poincare ball
    w   : [Dout, Din] HypLinear weight (torch layout)
    b   : [1, Dout]   HypLinear bias
    adj : [N, N]      dense row-normalized adjacency
    tm/tk : node-row / reduction tile sizes (multiples of 128). 512 fits v7x's 64 MiB
            VMEM comfortably with double buffering; raise to 1024-2048 on v5e/v6e
            (128 MiB) to amortize the ~0.35us per-grid-step overhead.
    """
    N, Din = x.shape
    Dout = w.shape[0]
    c_in = float(c_in)
    c_out = float(c_out)

    assert tm % 128 == 0 and tk % 128 == 0
    np_min = _round_up(N, 128)
    tm = min(tm, np_min)
    tk = min(tk, np_min)
    n_pad = _round_up(N, math.lcm(tm, tk))

    din_p = _round_up(Din, 128)     # lane-dense feature dims (multiples of 128)
    dout_p = _round_up(Dout, 128)

    x_p = _pad2(x.astype(jnp.float32), n_pad, din_p)
    w_t_p = _pad2(jnp.transpose(w).astype(jnp.float32), din_p, dout_p)   # W^T, [Din_p, Dout_p]
    b_p = _pad2(b.astype(jnp.float32), 1, dout_p)
    adj_p = _pad2(adj, n_pad, n_pad).astype(jnp.bfloat16)                # bf16 HBM stream

    hyp_bias = _hyp_bias(b_p, c_in)   # hoisted [1, Dout_p] constant

    # ---- Stage A: HypLinear + logmap0, tiled over node rows; bf16 tangent output ----
    lin_kernel = functools.partial(_linear_tangent_kernel, c_in=c_in)
    x_tan = pl.pallas_call(
        lin_kernel,
        out_shape=jax.ShapeDtypeStruct((n_pad, dout_p), jnp.bfloat16),
        grid_spec=pltpu.PrefetchScalarGridSpec(
            num_scalar_prefetch=0,
            grid=(n_pad // tm,),
            in_specs=[
                pl.BlockSpec((tm, din_p), lambda i: (i, 0)),
                pl.BlockSpec((din_p, dout_p), lambda i: (0, 0)),   # resident weight
                pl.BlockSpec((1, dout_p), lambda i: (0, 0)),       # resident hyp_bias
            ],
            out_specs=pl.BlockSpec((tm, dout_p), lambda i: (i, 0)),
        ),
        compiler_params=pltpu.CompilerParams(
            dimension_semantics=("parallel",),
            vmem_limit_bytes=32 * 1024 * 1024,
        ),
    )(x_p, w_t_p, hyp_bias)

    # ---- Stage B: aggregation (adj @ x_tangent) + fused hyperbolic activation ----
    agg_kernel = functools.partial(_agg_act_kernel, c_in=c_in, c_out=c_out)
    out_p = pl.pallas_call(
        agg_kernel,
        out_shape=jax.ShapeDtypeStruct((n_pad, dout_p), jnp.float32),
        grid_spec=pltpu.PrefetchScalarGridSpec(
            num_scalar_prefetch=0,
            grid=(n_pad // tm, n_pad // tk),     # reduction axis last
            in_specs=[
                pl.BlockSpec((tm, tk), lambda i, k: (i, k)),         # adj tile (bf16)
                pl.BlockSpec((tk, dout_p), lambda i, k: (k, 0)),     # x_tangent K-slab (bf16)
            ],
            out_specs=pl.BlockSpec((tm, dout_p), lambda i, k: (i, 0)),
            scratch_shapes=[pltpu.VMEM((tm, dout_p), jnp.float32)],  # f32 accumulator
        ),
        compiler_params=pltpu.CompilerParams(
            dimension_semantics=("parallel", "arbitrary"),
            vmem_limit_bytes=32 * 1024 * 1024,
        ),
    )(adj_p, x_tan)

    # The PyTorch module returns (h, adj); adj passes through unchanged.
    return out_p[:N, :Dout]


# -------------------------------------- driver ------------------------------------------
if __name__ == "__main__":
    N, Din, Dout = 200, 48, 64        # small, deliberately non-multiples of the tiles/lanes
    c_in, c_out = 1.0, 0.5

    key = jax.random.PRNGKey(0)
    k1, k2, k3, k4 = jax.random.split(key, 4)

    # Input points: small vectors well inside the Poincare ball of curvature c_in.
    x = 0.1 * jax.random.normal(k1, (N, Din), jnp.float32)

    # HypLinear weight [Dout, Din]: xavier_uniform with gain sqrt(2) (deterministic).
    bound = float(np.sqrt(2.0) * np.sqrt(6.0 / (Din + Dout)))
    w = jax.random.uniform(k2, (Dout, Din), jnp.float32, -bound, bound)

    # PyTorch init sets bias=0; use a small nonzero bias so the mobius_add path is exercised.
    b = 0.05 * jax.random.normal(k3, (1, Dout), jnp.float32)

    # Dense, row-normalized adjacency (torch.spmm with a dense adj == matmul).
    a = jax.random.uniform(k4, (N, N), jnp.float32)
    adj = a / jnp.sum(a, axis=1, keepdims=True)

    out = hgcn_forward(x, w, b, adj, c_in, c_out, tm=128, tk=128)
    out = jax.block_until_ready(out)

    # Reference mirroring the kernel's bf16 streaming dtypes (exact f32 divides otherwise).
    ref = jax.block_until_ready(
        hgcn_reference_matched(x, jnp.transpose(w), b, adj, c_in, c_out))

    assert out.shape == (N, Dout) and out.dtype == jnp.float32
    out_np, ref_np = np.asarray(out), np.asarray(ref)
    assert np.all(np.isfinite(out_np))
    # Tolerance accounts for approx (EUP) reciprocals + fused analytical norms in-kernel.
    assert np.allclose(out_np, ref_np, rtol=5e-2, atol=5e-3), float(
        np.max(np.abs(out_np - ref_np)))

    print("KERNEL_OK")
</pallas_src>

<mosaic_0001>
module attributes {stable_mosaic.version = 11 : i64} {
  func.func @_linear_tangent_kernel(%arg0: i32, %arg1: memref<128x128xf32, #tpu.memory_space<vmem>>, %arg2: memref<128x128xf32, #tpu.memory_space<vmem>>, %arg3: memref<1x128xf32, #tpu.memory_space<vmem>>, %arg4: memref<128x128xbf16, #tpu.memory_space<vmem>>) attributes {dimension_semantics = [#tpu.dimension_semantics<parallel>], iteration_bounds = array<i64: 2>, scalar_prefetch = 0 : i64, scratch_operands = 0 : i64, tpu.core_type = #tpu.core_type<tc>, window_params = [{transform_indices = @transform_0, window_bounds = array<i64: 128, 128>}, {pipeline_mode = #tpu.pipeline_mode<synchronous>, transform_indices = @transform_1, window_bounds = array<i64: 128, 128>}, {pipeline_mode = #tpu.pipeline_mode<synchronous>, transform_indices = @transform_2, window_bounds = array<i64: 1, 128>}, {transform_indices = @transform_3, window_bounds = array<i64: 128, 128>}]} {
    %c0 = arith.constant 0 : index
    %c0_0 = arith.constant 0 : index
    %0 = vector.load %arg1[%c0, %c0_0] : memref<128x128xf32, #tpu.memory_space<vmem>>, vector<128x128xf32>
    %c0_1 = arith.constant 0 : index
    %c0_2 = arith.constant 0 : index
    %1 = vector.load %arg2[%c0_1, %c0_2] : memref<128x128xf32, #tpu.memory_space<vmem>>, vector<128x128xf32>
    %c0_3 = arith.constant 0 : index
    %c0_4 = arith.constant 0 : index
    %2 = vector.load %arg3[%c0_3, %c0_4] : memref<1x128xf32, #tpu.memory_space<vmem>>, vector<1x128xf32>
    %3 = arith.mulf %0, %0 : vector<128x128xf32>
    %cst = arith.constant dense<0.000000e+00> : vector<128xf32>
    %4 = vector.multi_reduction <add>, %3, %cst [1] : vector<128x128xf32> to vector<128xf32>
    %5 = vector.shape_cast %4 : vector<128xf32> to vector<128x1xf32>
    %6 = math.sqrt %5 : vector<128x1xf32>
    %cst_5 = arith.constant 1.000000e-15 : f32
    %7 = vector.broadcast %cst_5 : f32 to vector<128x1xf32>
    %8 = arith.maximumf %6, %7 : vector<128x1xf32>
    %cst_6 = arith.constant dense<0.000000e+00> : vector<128x128xf32>
    %9 = tpu.matmul %0, %1, %cst_6 {dimension_numbers = #tpu.dot_dimension_numbers<[1], [0], [0], [1], [0, 0, 1, 1], [], []>} : vector<128x128xf32>, vector<128x128xf32>, vector<128x128xf32> -> vector<128x128xf32>
    %10 = arith.mulf %9, %9 : vector<128x128xf32>
    %cst_7 = arith.constant dense<0.000000e+00> : vector<128xf32>
    %11 = vector.multi_reduction <add>, %10, %cst_7 [1] : vector<128x128xf32> to vector<128xf32>
    %12 = vector.shape_cast %11 : vector<128xf32> to vector<128x1xf32>
    %13 = math.sqrt %12 : vector<128x1xf32>
    %cst_8 = arith.constant 1.000000e-15 : f32
    %14 = vector.broadcast %cst_8 : f32 to vector<128x1xf32>
    %15 = arith.maximumf %13, %14 : vector<128x1xf32>
    %16 = tpu.reciprocal %8 {approx = true} : vector<128x1xf32> -> vector<128x1xf32>
    %17 = arith.mulf %15, %16 : vector<128x1xf32>
    %cst_9 = arith.constant 1.000000e+00 : f32
    %18 = vector.broadcast %cst_9 : f32 to vector<128x1xf32>
    %19 = arith.mulf %18, %8 : vector<128x1xf32>
    %cst_10 = arith.constant -0.99999988 : f32
    %cst_11 = arith.constant 0.99999988 : f32
    %20 = vector.broadcast %cst_10 : f32 to vector<128x1xf32>
    %21 = arith.maximumf %20, %19 : vector<128x1xf32>
    %22 = vector.broadcast %cst_11 : f32 to vector<128x1xf32>
    %23 = arith.minimumf %22, %21 : vector<128x1xf32>
    %cst_12 = arith.constant 1.000000e+00 : f32
    %24 = vector.broadcast %cst_12 : f32 to vector<128x1xf32>
    %25 = arith.addf %24, %23 : vector<128x1xf32>
    %cst_13 = arith.constant 1.000000e+00 : f32
    %26 = vector.broadcast %cst_13 : f32 to vector<128x1xf32>
    %27 = arith.subf %26, %23 : vector<128x1xf32>
    %28 = arith.divf %25, %27 : vector<128x1xf32>
    %29 = math.log %28 : vector<128x1xf32>
    %cst_14 = arith.constant 5.000000e-01 : f32
    %30 = vector.broadcast %cst_14 : f32 to vector<128x1xf32>
    %31 = arith.mulf %30, %29 : vector<128x1xf32>
    %32 = arith.mulf %17, %31 : vector<128x1xf32>
    %33 = math.tanh %32 : vector<128x1xf32>
    %34 = vector.broadcast %33 : vector<128x1xf32> to vector<128x128xf32>
    %35 = arith.mulf %34, %9 : vector<128x128xf32>
    %cst_15 = arith.constant 1.000000e+00 : f32
    %36 = vector.broadcast %cst_15 : f32 to vector<128x1xf32>
    %37 = arith.mulf %15, %36 : vector<128x1xf32>
    %38 = tpu.reciprocal %37 {approx = true} : vector<128x1xf32> -> vector<128x1xf32>
    %39 = vector.broadcast %38 : vector<128x1xf32> to vector<128x128xf32>
    %40 = arith.mulf %35, %39 : vector<128x128xf32>
    %41 = math.absf %9 : vector<128x128xf32>
    %cst_16 = arith.constant dense<0xFF800000> : vector<128xf32>
    %42 = vector.multi_reduction <maximumf>, %41, %cst_16 [1] : vector<128x128xf32> to vector<128xf32>
    %43 = vector.shape_cast %42 : vector<128xf32> to vector<128x1xf32>
    %cst_17 = arith.constant 0.000000e+00 : f32
    %44 = vector.broadcast %cst_17 : f32 to vector<128x1xf32>
    %45 = arith.cmpf oeq, %43, %44 : vector<128x1xf32>
    %cst_18 = arith.constant 0.000000e+00 : f32
    %46 = vector.broadcast %cst_18 : f32 to vector<128x128xf32>
    %47 = vector.shape_cast %45 : vector<128x1xi1> to vector<128x1xi1>
    %48 = vector.broadcast %47 : vector<128x1xi1> to vector<128x128xi1>
    %49 = arith.select %48, %46, %40 : vector<128x128xi1>, vector<128x128xf32>
    %50 = arith.mulf %49, %49 : vector<128x128xf32>
    %cst_19 = arith.constant dense<0.000000e+00> : vector<128xf32>
    %51 = vector.multi_reduction <add>, %50, %cst_19 [1] : vector<128x128xf32> to vector<128xf32>
    %52 = vector.shape_cast %51 : vector<128xf32> to vector<128x1xf32>
    %53 = math.sqrt %52 : vector<128x1xf32>
    %cst_20 = arith.constant 1.000000e-15 : f32
    %54 = vector.broadcast %cst_20 : f32 to vector<128x1xf32>
    %55 = arith.maximumf %53, %54 : vector<128x1xf32>
    %56 = tpu.reciprocal %55 {approx = true} : vector<128x1xf32> -> vector<128x1xf32>
    %cst_21 = arith.constant 0.995999991 : f32
    %57 = vector.broadcast %cst_21 : f32 to vector<128x1xf32>
    %58 = arith.mulf %57, %56 : vector<128x1xf32>
    %59 = vector.broadcast %58 : vector<128x1xf32> to vector<128x128xf32>
    %60 = arith.mulf %49, %59 : vector<128x128xf32>
    %cst_22 = arith.constant 0.995999991 : f32
    %61 = vector.broadcast %cst_22 : f32 to vector<128x1xf32>
    %62 = arith.cmpf ogt, %55, %61 : vector<128x1xf32>
    %63 = vector.shape_cast %62 : vector<128x1xi1> to vector<128x1xi1>
    %64 = vector.broadcast %63 : vector<128x1xi1> to vector<128x128xi1>
    %65 = arith.select %64, %60, %49 : vector<128x128xi1>, vector<128x128xf32>
    %66 = arith.mulf %65, %65 : vector<128x128xf32>
    %cst_23 = arith.constant dense<0.000000e+00> : vector<128xf32>
    %67 = vector.multi_reduction <add>, %66, %cst_23 [1] : vector<128x128xf32> to vector<128xf32>
    %68 = vector.shape_cast %67 : vector<128xf32> to vector<128x1xf32>
    %69 = arith.mulf %2, %2 : vector<1x128xf32>
    %cst_24 = arith.constant dense<0.000000e+00> : vector<1xf32>
    %70 = vector.multi_reduction <add>, %69, %cst_24 [1] : vector<1x128xf32> to vector<1xf32>
    %71 = vector.shape_cast %70 : vector<1xf32> to vector<1x1xf32>
    %72 = vector.broadcast %2 : vector<1x128xf32> to vector<128x128xf32>
    %73 = arith.mulf %65, %72 : vector<128x128xf32>
    %cst_25 = arith.constant dense<0.000000e+00> : vector<128xf32>
    %74 = vector.multi_reduction <add>, %73, %cst_25 [1] : vector<128x128xf32> to vector<128xf32>
    %75 = vector.shape_cast %74 : vector<128xf32> to vector<128x1xf32>
    %cst_26 = arith.constant 2.000000e+00 : f32
    %76 = vector.broadcast %cst_26 : f32 to vector<128x1xf32>
    %77 = arith.mulf %76, %75 : vector<128x1xf32>
    %cst_27 = arith.constant 1.000000e+00 : f32
    %78 = vector.broadcast %cst_27 : f32 to vector<128x1xf32>
    %79 = arith.addf %78, %77 : vector<128x1xf32>
    %cst_28 = arith.constant 1.000000e+00 : f32
    %80 = vector.broadcast %cst_28 : f32 to vector<1x1xf32>
    %81 = arith.mulf %80, %71 : vector<1x1xf32>
    %82 = vector.broadcast %81 : vector<1x1xf32> to vector<128x1xf32>
    %83 = arith.addf %79, %82 : vector<128x1xf32>
    %84 = vector.broadcast %83 : vector<128x1xf32> to vector<128x128xf32>
    %85 = arith.mulf %84, %65 : vector<128x128xf32>
    %cst_29 = arith.constant 1.000000e+00 : f32
    %86 = vector.broadcast %cst_29 : f32 to vector<128x1xf32>
    %87 = arith.mulf %86, %68 : vector<128x1xf32>
    %cst_30 = arith.constant 1.000000e+00 : f32
    %88 = vector.broadcast %cst_30 : f32 to vector<128x1xf32>
    %89 = arith.subf %88, %87 : vector<128x1xf32>
    %90 = vector.broadcast %89 : vector<128x1xf32> to vector<128x128xf32>
    %91 = vector.broadcast %2 : vector<1x128xf32> to vector<128x128xf32>
    %92 = arith.mulf %90, %91 : vector<128x128xf32>
    %93 = arith.addf %85, %92 : vector<128x128xf32>
    %cst_31 = arith.constant 2.000000e+00 : f32
    %94 = vector.broadcast %cst_31 : f32 to vector<128x1xf32>
    %95 = arith.mulf %94, %75 : vector<128x1xf32>
    %cst_32 = arith.constant 1.000000e+00 : f32
    %96 = vector.broadcast %cst_32 : f32 to vector<128x1xf32>
    %97 = arith.addf %96, %95 : vector<128x1xf32>
    %cst_33 = arith.constant 1.000000e+00 : f32
    %98 = vector.broadcast %cst_33 : f32 to vector<128x1xf32>
    %99 = arith.mulf %98, %68 : vector<128x1xf32>
    %100 = vector.broadcast %71 : vector<1x1xf32> to vector<128x1xf32>
    %101 = arith.mulf %99, %100 : vector<128x1xf32>
    %102 = arith.addf %97, %101 : vector<128x1xf32>
    %cst_34 = arith.constant 1.000000e-15 : f32
    %103 = vector.broadcast %cst_34 : f32 to vector<128x1xf32>
    %104 = arith.maximumf %102, %103 : vector<128x1xf32>
    %105 = tpu.reciprocal %104 {approx = true} : vector<128x1xf32> -> vector<128x1xf32>
    %106 = vector.broadcast %105 : vector<128x1xf32> to vector<128x128xf32>
    %107 = arith.mulf %93, %106 : vector<128x128xf32>
    %108 = arith.mulf %107, %107 : vector<128x128xf32>
    %cst_35 = arith.constant dense<0.000000e+00> : vector<128xf32>
    %109 = vector.multi_reduction <add>, %108, %cst_35 [1] : vector<128x128xf32> to vector<128xf32>
    %110 = vector.shape_cast %109 : vector<128xf32> to vector<128x1xf32>
    %111 = math.sqrt %110 : vector<128x1xf32>
    %cst_36 = arith.constant 1.000000e-15 : f32
    %112 = vector.broadcast %cst_36 : f32 to vector<128x1xf32>
    %113 = arith.maximumf %111, %112 : vector<128x1xf32>
    %cst_37 = arith.constant 0.995999991 : f32
    %114 = vector.broadcast %cst_37 : f32 to vector<128x1xf32>
    %115 = arith.cmpf ogt, %113, %114 : vector<128x1xf32>
    %116 = tpu.reciprocal %113 {approx = true} : vector<128x1xf32> -> vector<128x1xf32>
    %cst_38 = arith.constant 0.995999991 : f32
    %117 = vector.broadcast %cst_38 : f32 to vector<128x1xf32>
    %118 = arith.mulf %117, %116 : vector<128x1xf32>
    %119 = vector.broadcast %118 : vector<128x1xf32> to vector<128x128xf32>
    %120 = arith.mulf %107, %119 : vector<128x128xf32>
    %121 = vector.shape_cast %115 : vector<128x1xi1> to vector<128x1xi1>
    %122 = vector.broadcast %121 : vector<128x1xi1> to vector<128x128xi1>
    %123 = arith.select %122, %120, %107 : vector<128x128xi1>, vector<128x128xf32>
    %cst_39 = arith.constant 0.995999991 : f32
    %124 = vector.broadcast %cst_39 : f32 to vector<128x1xf32>
    %125 = arith.select %115, %124, %113 : vector<128x1xi1>, vector<128x1xf32>
    %cst_40 = arith.constant 1.000000e+00 : f32
    %126 = vector.broadcast %cst_40 : f32 to vector<128x1xf32>
    %127 = arith.mulf %126, %125 : vector<128x1xf32>
    %cst_41 = arith.constant -0.99999988 : f32
    %cst_42 = arith.constant 0.99999988 : f32
    %128 = vector.broadcast %cst_41 : f32 to vector<128x1xf32>
    %129 = arith.maximumf %128, %127 : vector<128x1xf32>
    %130 = vector.broadcast %cst_42 : f32 to vector<128x1xf32>
    %131 = arith.minimumf %130, %129 : vector<128x1xf32>
    %cst_43 = arith.constant 1.000000e+00 : f32
    %132 = vector.broadcast %cst_43 : f32 to vector<128x1xf32>
    %133 = arith.addf %132, %131 : vector<128x1xf32>
    %cst_44 = arith.constant 1.000000e+00 : f32
    %134 = vector.broadcast %cst_44 : f32 to vector<128x1xf32>
    %135 = arith.subf %134, %131 : vector<128x1xf32>
    %136 = arith.divf %133, %135 : vector<128x1xf32>
    %137 = math.log %136 : vector<128x1xf32>
    %cst_45 = arith.constant 5.000000e-01 : f32
    %138 = vector.broadcast %cst_45 : f32 to vector<128x1xf32>
    %139 = arith.mulf %138, %137 : vector<128x1xf32>
    %cst_46 = arith.constant 1.000000e+00 : f32
    %140 = vector.broadcast %cst_46 : f32 to vector<128x1xf32>
    %141 = arith.mulf %140, %125 : vector<128x1xf32>
    %142 = tpu.reciprocal %141 {approx = true} : vector<128x1xf32> -> vector<128x1xf32>
    %143 = arith.mulf %139, %142 : vector<128x1xf32>
    %144 = vector.broadcast %143 : vector<128x1xf32> to vector<128x128xf32>
    %145 = arith.mulf %144, %123 : vector<128x128xf32>
    %146 = arith.truncf %145 : vector<128x128xf32> to vector<128x128xbf16>
    %c0_47 = arith.constant 0 : index
    %c0_48 = arith.constant 0 : index
    %147 = vector.load %arg4[%c0_47, %c0_48] : memref<128x128xbf16, #tpu.memory_space<vmem>>, vector<128x128xbf16>
    tpu.vector_store %arg4[%c0_47, %c0_48], %146 {strides = array<i32>} : memref<128x128xbf16, #tpu.memory_space<vmem>>, vector<128x128xbf16>,
    return
  }
  func.func @transform_0(%arg0: i32) -> (i32, i32) {
    %c0_i32 = arith.constant 0 : i32
    %c0_i32_0 = arith.constant 0 : i32
    return %arg0, %c0_i32 : i32, i32
  }
  func.func @transform_1(%arg0: i32) -> (i32, i32) {
    %c0_i32 = arith.constant 0 : i32
    %c0_i32_0 = arith.constant 0 : i32
    %c0_i32_1 = arith.constant 0 : i32
    return %c0_i32, %c0_i32_0 : i32, i32
  }
  func.func @transform_2(%arg0: i32) -> (i32, i32) {
    %c0_i32 = arith.constant 0 : i32
    %c0_i32_0 = arith.constant 0 : i32
    %c0_i32_1 = arith.constant 0 : i32
    return %c0_i32, %c0_i32_0 : i32, i32
  }
  func.func @transform_3(%arg0: i32) -> (i32, i32) {
    %c0_i32 = arith.constant 0 : i32
    %c0_i32_0 = arith.constant 0 : i32
    return %arg0, %c0_i32 : i32, i32
  }
}

</mosaic_0001>

<bundles_post_ra>
// kernel: tpu_custom_call.1
= control target key start
LH: loop header
LB: loop body
LE: loop exit
PB: predicated region body
PF: predicated region fallthrough
CT: control target
= control target key end

     0   :  { %8 = vsyncpa [#allocation3], 0  ;;  %s6629_s0 = inlined_call_operand.hbm [shape: f32[256,128], index: 0, kind: input, shape index: {}]   ;;  %s6630_s1 = inlined_call_operand.hbm [shape: f32[128,128], index: 1, kind: input, shape index: {}]   ;;  %s6631_s2 = inlined_call_operand.vmem [shape: f32[1,128], index: 2, kind: input, shape index: {}]   ;;  %s6632_s3 = inlined_call_operand.hbm [shape: bf16[256,128], index: 3, kind: output, shape index: {}]  }
   0x1   :  { %10 = vsyncpa [#allocation3 + $0x1], 0 }
   0x2   :  { %11 = vsyncpa [#allocation6], 0 }
   0x3   :  { %12 = vsyncpa [#allocation4], 0 }
   0x4   :  { %14 = vsyncpa [#allocation4 + $0x1], 0  ;;  %s3821_s12 = smov 0   ;;  %s3823_s13 = smov 0  }
   0x5   :  { %s3825_s14 = smov 0   ;;  %s3827_s15 = smov 0  }
   0x6 LB: > { %s3842_s16 = sadd.s32 4294967295, %s3794_s15   ;;  %s2976_s17 = sadd.s32 4294967294, %s3794_s15   ;;  %s3794_s15 = sphi %s3827_s15, %s6840_s15   ;;  %s3790_s14 = sphi %s3825_s14, %s6839_s14   ;;  %s3786_s13 = sphi %s3823_s13, %s6838_s13   ;;  %s3782_s12 = sphi %s3821_s12, %s6837_s12  }
   0x7   : > { %p40_p0 = scmp.ne.s32.totalorder %s3786_s13, %s3782_s12  ;;  %p41_p1 = scmp.eq.s32.totalorder %s3842_s16, 0 }
   0x8   : > { %p106_p2 = scmp.eq.s32.totalorder %s3842_s16, 1  ;;  %p112_p3 = scmp.eq.s32.totalorder %s2976_s17, 1 }
   0x9   : > { %p3851_p4 = por %p41_p1, %p40_p0  ;;  %p2977_p5 = scmp.ge.s32.totalorder %s3794_s15, 1 }
   0xa   : > { %p3856_p6 = por %p112_p3, %p40_p0  ;;  %p119_p7 = scmp.lt.s32.totalorder %s3794_s15, 3 }
   0xb   : > { %s130_s22 = sshll.u32 %s6630_s1, 4  ;;  %s3796_s24 = smov [#allocation5]   ;;  %s131_s22 = int_to_ptr.hbm [resolvable:$true] %s130_s22 }
   0xc   : > { %p3864_p8 = pnand %p2977_p5, %p119_p7  ;;  %s132_s25 = sshll.u32 %s3796_s24, 4  ;;  %s133_s25 = int_to_ptr.vmem [resolvable:$true] %s132_s25 }
   0xd   : > { %s3874_s26 = sadd.s32 1, %s3794_s15   ;;  %s3797_s27 = smov 128  }
   0xe   : > { %p3129_p9 = pneg %p3864_p8  ;;  %s3798_s28 = smov 8  }
   0xf   : > { %s24_s29 = ssub.s32 %s3794_s15, %s3874_s26  ;;  %s27_s30 = sadd.s32 1, %s3790_s14 }
  0x10   : > { %p3130_p10 = pnand %p3129_p9, %p41_p1  ;;  %p25_p12 = scmp.eq.s32.totalorder %s24_s29, 0 }
  0x11   : > { %p34_p13 = scmp.ne.s32.totalorder %s3790_s14, %s3786_s13  ;;  %p35_p0 = scmp.eq.s32.totalorder %s3794_s15, 0 }
  0x12   : > { %3132 = dma.hbm_to_vmem [thread:$0]  (!%p3130_p10), %s131_s22, 2048, %s133_s25, [#allocation6], %s3797_s27, %s3797_s27, %s3798_s28  }
  0x13   : > { %s3886_s4 = scalar_select %p25_p12, %s3790_s14, %s27_s30  }
  0x14   : > { %p3890_p3 = por %p106_p2, %p34_p13  ;;  %p3142_p5 = scmp.lt.s32.totalorder %s3794_s15, 2 }
  0x15   : > { %s149_s6 = sand.u32 1, %s3790_s14   ;;  %s3024_s7 = sshll.u32 %s3794_s15, 7 }
  0x16   : > { %p36_p7 = por %p35_p0, %p34_p13  ;;  %s2980_s8 = sshll.u32 %s149_s6, 7 }
  0x17   : > { %s158_s11 = scalar_lea.hbm %s6629_s0, %s3024_s7  ;;  %s153_s20 = scalar_lea.vmem [#allocation2], %s2980_s8 }
  0x18   : > { %s159_s17 = sshll.u32 %s158_s11, 4  ;;  %s161_s21 = sshll.u32 %s153_s20, 4  ;;  %s160_s17 = int_to_ptr.hbm [resolvable:$true] %s159_s17  ;;  %s162_s21 = int_to_ptr.vmem [resolvable:$true] %s161_s21 }
  0x19   : > { %p3900_p9 = pnand %p3142_p5, %p36_p7  ;;  %s150_s24 = scalar_lea.sflag [#allocation3], %s149_s6 }
  0x1a   : > { %s3694_s25 = sshra.s32 %s160_s17, 4  ;;  %s3701_s8 = scalar_lea.hbm %s6629_s0, 256  ;;  %s3695_s25 = int_to_ptr.hbm [resolvable:$true] %s3694_s25 }
  0x1b   : > { %s3696_s29 = scalar_lea.hbm %s3695_s25, 128  ;;  %p3698_p10 = pneg %p3900_p9 }
  0x1c   : > { %p3697_p2 = scmp.ne.s32.totalorder %s3695_s25, %s3696_s29  ;;  %p3702_p0 = scmp.lt.s32.totalorder %s3695_s25, %s6629_s0 }
  0x1d   : > { %p3703_p5 = scmp.lt.s32.totalorder %s3701_s8, %s3696_s29 }
  0x1e   : > { %p3699_p12 = pnand %p3698_p10, %p3697_p2 }
  0x1f   : > { %p3704_p7 = por %p3703_p5, %p3702_p0 }
  0x20   : > { %p3700_p13 = pneg %p3699_p12 }
  0x22   : > { %p3705_p11 = pnand %p3704_p7, %p3700_p13 }
  0x24   : > { %3708 = shalt.err (!%p3705_p11)
}
  0x25   : > { %3136 = dma.hbm_to_vmem [thread:$0]  (!%p3900_p9), %s160_s17, 2048, %s162_s21, %s150_s24, %s3797_s27, %s3797_s27, %s3798_s28  }
  0x26   : > { %173 = sbr.rel (%p3864_p8) target bundleno = 1052 (0x41c), region = 32 }
  0x2b   : > { %s3920_s6 = sand.u32 1, %s3786_s13  }
  0x2c   : > { %s2984_s11 = sshll.u32 %s3920_s6, 7  ;;  %s176_s20 = scalar_lea.sflag [#allocation3], %s3920_s6 }
  0x2d   : > { %s3924_s25 = scalar_lea.vmem [#allocation2], %s2984_s11 }
  0x2e   : > { %3769 = dma.done.wait (%p3851_p4), %s176_s20, 2048  }
  0x2f   : > { %3771 = vsyncadd (%p3851_p4), %s176_s20, 4294965248 }
  0x30   : > { %3773 = dma.done.wait (%p41_p1), [#allocation6], 2048  }
  0x31   : > { %3775 = vsyncadd (%p41_p1), [#allocation6], 4294965248  ;;  %v241_v0 = vld [vmem:[#allocation5 + $0x78] sm:$0xff]  ;;  %v240_v1 = vld [vmem:[#allocation5 + $0x70] sm:$0xff]  ;;  %s2986_s22 = sshll.u32 %s3920_s6, 6  ;;  %s3025_s29 = sshll.u32 %s3842_s16, 6 }
  0x32   : > { %499 = vmatpush.msra.mxu0 %v241_v0  ;;  %3073 = vmatpush.msra.mxu1 %v241_v0  ;;  %v239_v2 = vld [vmem:[#allocation5 + $0x68] sm:$0xff]  ;;  %v238_v3 = vld [vmem:[#allocation5 + $0x60] sm:$0xff]  ;;  %v237_v4 = vld [vmem:[#allocation5 + $0x58] sm:$0xff]  ;;  %s6177_s24 = scalar_lea.vmem [#allocation7], %s2986_s22  ;;  %s2889_s7 = scalar_lea.hbm %s6632_s3, %s3025_s29 }
  0x33   : > { %3074 = vmatpush.msra.mxu2 %v241_v0  ;;  %3075 = vmatpush.msra.mxu3 %v241_v0  ;;  %v236_v5 = vld [vmem:[#allocation5 + $0x50] sm:$0xff]  ;;  %v235_v6 = vld [vmem:[#allocation5 + $0x48] sm:$0xff]  ;;  %v234_v7 = vld [vmem:[#allocation5 + $0x40] sm:$0xff]  ;;  %s2890_s8 = sshll.u32 %s6177_s24, 4  ;;  %s2892_s9 = sshll.u32 %s2889_s7, 4  ;;  %s2891_s8 = int_to_ptr.vmem [resolvable:$true] %s2890_s8  ;;  %s2893_s9 = int_to_ptr.hbm [resolvable:$true] %s2892_s9 }
  0x34   : > { %500 = vmatpush.msra.mxu0 %v240_v1  ;;  %3076 = vmatpush.msra.mxu1 %v240_v1  ;;  %v233_v8 = vld [vmem:[#allocation5 + $0x38] sm:$0xff]  ;;  %v232_v9 = vld [vmem:[#allocation5 + $0x30] sm:$0xff]  ;;  %v231_v10 = vld [vmem:[#allocation5 + $0x28] sm:$0xff]  ;;  %s2878_s10 = scalar_lea.sflag [#allocation4], %s3920_s6  ;;  %s3738_s11 = sshra.s32 %s2893_s9, 4  ;;  %s3739_s11 = int_to_ptr.hbm [resolvable:$true] %s3738_s11 }
  0x35   : > { %3077 = vmatpush.msra.mxu2 %v240_v1  ;;  %3078 = vmatpush.msra.mxu3 %v240_v1  ;;  %v230_v11 = vld [vmem:[#allocation5 + $0x20] sm:$0xff]  ;;  %v229_v12 = vld [vmem:[#allocation5 + $0x18] sm:$0xff]  ;;  %v228_v13 = vld [vmem:[#allocation5 + $0x10] sm:$0xff]  ;;  %s3740_s20 = scalar_lea.hbm %s3739_s11, 64  ;;  %s3744_s23 = scalar_lea.hbm %s6632_s3, 128 }
  0x36   : > { %501 = vmatpush.msra.mxu0 %v239_v2  ;;  %3079 = vmatpush.msra.mxu1 %v239_v2  ;;  %v227_v14 = vld [vmem:[#allocation5 + $0x8] sm:$0xff]  ;;  %v226_v15 = vld [vmem:[#allocation5] sm:$0xff]  ;;  %v212_v20 = vld [vmem:[%s3924_s25 + $0x10] sm:$0xff]  ;;  %p3741_p1 = scmp.ne.s32.totalorder %s3739_s11, %s3740_s20  ;;  %p3745_p11 = scmp.lt.s32.totalorder %s3739_s11, %s6632_s3 }
  0x37   : > { %3080 = vmatpush.msra.mxu2 %v239_v2  ;;  %3081 = vmatpush.msra.mxu3 %v239_v2  ;;  %v210_v16 = vld [vmem:[%s3924_s25] sm:$0xff]  ;;  %v245_v23 = vmul.f32 %v212_v20, %v212_v20  ;;  %v211_v24 = vld [vmem:[%s3924_s25 + $0x8] sm:$0xff]  ;;  %v213_v28 = vld [vmem:[%s3924_s25 + $0x18] sm:$0xff]  ;;  %p3746_p9 = scmp.lt.s32.totalorder %s3744_s23, %s3740_s20 }
  0x38   : > { %502 = vmatpush.msra.mxu0 %v238_v3  ;;  %3082 = vmatpush.msra.mxu1 %v238_v3  ;;  %v214_v17 = vld [vmem:[%s3924_s25 + $0x20] sm:$0xff]  ;;  %v243_v22 = vmul.f32 %v210_v16, %v210_v16  ;;  %v215_v25 = vld [vmem:[%s3924_s25 + $0x28] sm:$0xff]  ;;  %v244_v30 = vmul.f32 %v211_v24, %v211_v24  ;;  %v246_v31 = vmul.f32 %v213_v28, %v213_v28  ;;  %v216_v32 = vld [vmem:[%s3924_s25 + $0x30] sm:$0xff]  ;;  %p3742_p4 = pnand %p3741_p1, %p3890_p3 }
  0x39   : > { %3083 = vmatpush.msra.mxu2 %v238_v3  ;;  %3084 = vmatpush.msra.mxu3 %v238_v3  ;;  %v218_v18 = vld [vmem:[%s3924_s25 + $0x40] sm:$0xff]  ;;  %v247_v21 = vmul.f32 %v214_v17, %v214_v17  ;;  %v219_v26 = vld [vmem:[%s3924_s25 + $0x48] sm:$0xff]  ;;  %v248_v29 = vmul.f32 %v215_v25, %v215_v25  ;;  %v220_v33 = vld [vmem:[%s3924_s25 + $0x50] sm:$0xff]  ;;  %v249_v37 = vmul.f32 %v216_v32, %v216_v32  ;;  %p3747_p2 = por %p3746_p9, %p3745_p11 }
  0x3a   : > { %503 = vmatpush.msra.mxu0 %v237_v4  ;;  %3085 = vmatpush.msra.mxu1 %v237_v4  ;;  %v222_v19 = vld [vmem:[%s3924_s25 + $0x60] sm:$0xff]  ;;  %v223_v27 = vld [vmem:[%s3924_s25 + $0x68] sm:$0xff]  ;;  %v224_v34 = vld [vmem:[%s3924_s25 + $0x70] sm:$0xff]  ;;  %v251_v36 = vmul.f32 %v218_v18, %v218_v18  ;;  %v252_v42 = vmul.f32 %v219_v26, %v219_v26  ;;  %v253_v43 = vmul.f32 %v220_v33, %v220_v33  ;;  %p3743_p8 = pneg %p3742_p4 }
  0x3b   : > { %3086 = vmatpush.msra.mxu2 %v237_v4  ;;  %3087 = vmatpush.msra.mxu3 %v237_v4  ;;  %v217_v35 = vld [vmem:[%s3924_s25 + $0x38] sm:$0xff]  ;;  %v257_v44 = vmul.f32 %v224_v34, %v224_v34  ;;  %v255_v45 = vmul.f32 %v222_v19, %v222_v19  ;;  %v256_v46 = vmul.f32 %v223_v27, %v223_v27 }
  0x3c   : > { %504 = vmatpush.msra.mxu0 %v236_v5  ;;  %3088 = vmatpush.msra.mxu1 %v236_v5  ;;  %v250_v38 = vmul.f32 %v217_v35, %v217_v35  ;;  %v221_v39 = vld [vmem:[%s3924_s25 + $0x58] sm:$0xff]  ;;  %p3748_p10 = pnand %p3747_p2, %p3743_p8 }
  0x3d   : > { %3089 = vmatpush.msra.mxu2 %v236_v5  ;;  %3090 = vmatpush.msra.mxu3 %v236_v5  ;;  %v225_v40 = vld [vmem:[%s3924_s25 + $0x78] sm:$0xff]  ;;  %v254_v41 = vmul.f32 %v221_v39, %v221_v39 }
  0x3e   : > { %505 = vmatpush.msra.mxu0 %v235_v6  ;;  %3091 = vmatpush.msra.mxu1 %v235_v6  ;;  %v258_v47 = vmul.f32 %v225_v40, %v225_v40 }
  0x3f   : > { %3092 = vmatpush.msra.mxu2 %v235_v6  ;;  %3093 = vmatpush.msra.mxu3 %v235_v6 }
  0x40   : > { %506 = vmatpush.msra.mxu0 %v234_v7  ;;  %3094 = vmatpush.msra.mxu1 %v234_v7 }
  0x41   : > { %3095 = vmatpush.msra.mxu2 %v234_v7  ;;  %3096 = vmatpush.msra.mxu3 %v234_v7 }
  0x42   : > { %507 = vmatpush.msra.mxu0 %v233_v8  ;;  %3097 = vmatpush.msra.mxu1 %v233_v8 }
  0x43   : > { %3098 = vmatpush.msra.mxu2 %v233_v8  ;;  %3099 = vmatpush.msra.mxu3 %v233_v8 }
  0x44   : > { %508 = vmatpush.msra.mxu0 %v232_v9  ;;  %3100 = vmatpush.msra.mxu1 %v232_v9 }
  0x45   : > { %3101 = vmatpush.msra.mxu2 %v232_v9  ;;  %3102 = vmatpush.msra.mxu3 %v232_v9 }
  0x46   : > { %509 = vmatpush.msra.mxu0 %v231_v10  ;;  %3103 = vmatpush.msra.mxu1 %v231_v10 }
  0x47   : > { %3104 = vmatpush.msra.mxu2 %v231_v10  ;;  %3105 = vmatpush.msra.mxu3 %v231_v10 }
  0x48   : > { %510 = vmatpush.msra.mxu0 %v230_v11  ;;  %3106 = vmatpush.msra.mxu1 %v230_v11 }
  0x49   : > { %3107 = vmatpush.msra.mxu2 %v230_v11  ;;  %3108 = vmatpush.msra.mxu3 %v230_v11 }
  0x4a   : > { %511 = vmatpush.msra.mxu0 %v229_v12  ;;  %3109 = vmatpush.msra.mxu1 %v229_v12 }
  0x4b   : > { %3110 = vmatpush.msra.mxu2 %v229_v12  ;;  %3111 = vmatpush.msra.mxu3 %v229_v12 }
  0x4c   : > { %512 = vmatpush.msra.mxu0 %v228_v13  ;;  %3112 = vmatpush.msra.mxu1 %v228_v13 }
  0x4d   : > { %3113 = vmatpush.msra.mxu2 %v228_v13  ;;  %3114 = vmatpush.msra.mxu3 %v228_v13 }
  0x4e   : > { %513 = vmatpush.msra.mxu0 %v227_v14  ;;  %3115 = vmatpush.msra.mxu1 %v227_v14 }
  0x4f   : > { %3116 = vmatpush.msra.mxu2 %v227_v14  ;;  %3117 = vmatpush.msra.mxu3 %v227_v14 }
  0x50   : > { %514 = vmatpush.msra.mxu0 %v226_v15  ;;  %3118 = vmatpush.msra.mxu1 %v226_v15 }
  0x51   : > { %515 = vmatmul.f32.vlgmr.msra.gmra.mxu0 %v210_v16  ;;  %527 = vmatmul.f32.vlgmr.msra.gmra.mxu1 %v214_v17 }
  0x52   : > { %3119 = vmatpush.msra.mxu2 %v226_v15  ;;  %3120 = vmatpush.msra.mxu3 %v226_v15 }
  0x53   : > { %539 = vmatmul.f32.vlgmr.msra.gmra.mxu2 %v218_v18  ;;  %551 = vmatmul.f32.vlgmr.msra.gmra.mxu3 %v222_v19 }
  0x54   : > { %267 = vadd.xlane.f32.xlu2 %v247_v21  ;;  %259 = vadd.xlane.f32.xlu0 %v243_v22 }
  0x55   : > { %263 = vadd.xlane.f32.xlu1 %v245_v23 }
  0x59   : > { %518 = vmatmul.f32.gmra.mxu0 %v211_v24  ;;  %530 = vmatmul.f32.gmra.mxu1 %v215_v25 }
  0x5b   : > { %542 = vmatmul.f32.gmra.mxu2 %v219_v26  ;;  %554 = vmatmul.f32.gmra.mxu3 %v223_v27 }
  0x5c   : > { %269 = vadd.xlane.f32.xlu2 %v248_v29  ;;  %261 = vadd.xlane.f32.xlu0 %v244_v30 }
  0x5d   : > { %265 = vadd.xlane.f32.xlu1 %v246_v31 }
  0x61   : > { %533 = vmatmul.f32.gmra.mxu1 %v216_v32  ;;  %521 = vmatmul.f32.gmra.mxu0 %v212_v20 }
  0x63   : > { %545 = vmatmul.f32.gmra.mxu2 %v220_v33  ;;  %557 = vmatmul.f32.gmra.mxu3 %v224_v34 }
  0x64   : > { %275 = vadd.xlane.f32.xlu2 %v251_v36  ;;  %271 = vadd.xlane.f32.xlu0 %v249_v37 }
  0x65   : > { %273 = vadd.xlane.f32.xlu1 %v250_v38 }
  0x69   : > { %524 = vmatmul.f32.gmra.mxu0 %v213_v28  ;;  %536 = vmatmul.f32.gmra.mxu1 %v217_v35 }
  0x6b   : > { %548 = vmatmul.f32.gmra.mxu2 %v221_v39  ;;  %560 = vmatmul.f32.gmra.mxu3 %v225_v40 }
  0x6c   : > { %281 = vadd.xlane.f32.xlu2 %v254_v41  ;;  %277 = vadd.xlane.f32.xlu0 %v252_v42 }
  0x6d   : > { %279 = vadd.xlane.f32.xlu1 %v253_v43 }
  0x74   : > { %287 = vadd.xlane.f32.xlu2 %v257_v44  ;;  %283 = vadd.xlane.f32.xlu0 %v255_v45 }
  0x75   : > { %285 = vadd.xlane.f32.xlu1 %v256_v46 }
  0x7c   : > { %289 = vadd.xlane.f32.xlu0 %v258_v47 }
  0xc7   : > { %v3959_v53 = vpop.xlane.xlu2 %267  ;;  %v3991_v6 = vpop.xlane.xlu0 %259 }
  0xc8   : > { %3183 = vrsqrt.f32 %v3959_v53  ;;  %v3993_v7 = vpop.xlane.xlu1 %263  ;;  %vm346_vm0 = vcmp.eq.f32.partialorder %v3959_v53, inf  ;;  %vm348_vm1 = vcmp.eq.f32.partialorder %v3959_v53, 0.0  ;;  %vm298_vm4 = vcmp.eq.f32.partialorder %v3991_v6, inf }
  0xc9   : > { %vm300_vm5 = vcmp.eq.f32.partialorder %v3991_v6, 0.0  ;;  %vm322_vm6 = vcmp.eq.f32.partialorder %v3993_v7, inf  ;;  %vm324_vm7 = vcmp.eq.f32.partialorder %v3993_v7, 0.0 }
  0xce   : > { %v3950_v48 = vpop.f32.mrf.mxu0  ;;  %v3952_v49 = vpop.f32.mrf.mxu1 }
  0xcf   : > { %v568_v50 = vmul.f32 %v3952_v49, %v3952_v49  ;;  %v564_v51 = vmul.f32 %v3950_v48, %v3950_v48  ;;  %v1288_v52 = vand.u32 2147483647, %v3952_v49  ;;  %v1284_v54 = vand.u32 2147483647, %v3950_v48  ;;  %v3975_v61 = vpop.xlane.xlu2 %269  ;;  %v3184_v63 = vpop.eup %3183 }
  0xd0   : > { %3185 = vrsqrt.f32 %v3975_v61  ;;  %v340_v4 = vmul.f32 %v3184_v63, %v3959_v53  ;;  %v4014_v21 = vpop.xlane.xlu0 %261  ;;  %v4027_v29 = vpop.xlane.xlu1 %265  ;;  %vm358_vm2 = vcmp.eq.f32.partialorder %v3975_v61, inf  ;;  %vm360_vm3 = vcmp.eq.f32.partialorder %v3975_v61, 0.0 }
  0xd1   : > { %588 = vadd.xlane.f32.xlu2 %v568_v50  ;;  %580 = vadd.xlane.f32.xlu1 %v564_v51  ;;  %3187 = vrsqrt.f32 %v3991_v6  ;;  %v349_v50 = vand.u32 2147483648, %v3959_v53  ;;  %vm310_vm10 = vcmp.eq.f32.partialorder %v4014_v21, inf  ;;  %vm334_vm11 = vcmp.eq.f32.partialorder %v4027_v29, inf }
  0xd2   : > { %1308 = vmax.xlane.f32.xlu0 %v1288_v52  ;;  %v341_v11 = vmul.f32 %v3184_v63, %v340_v4  ;;  %3189 = vrsqrt.f32 %v3993_v7  ;;  %vm312_vm12 = vcmp.eq.f32.partialorder %v4014_v21, 0.0  ;;  %vm336_vm13 = vcmp.eq.f32.partialorder %v4027_v29, 0.0 }
  0xd4   : > { %v342_v16 = vmul.f32 0.5, %v341_v11 }
  0xd6   : > { %v3962_v55 = vpop.f32.mrf.mxu2  ;;  %v3964_v56 = vpop.f32.mrf.mxu3  ;;  %v343_v24 = vsub.f32 1.5, %v342_v16 }
  0xd7   : > { %6673 = vst [vmem:[#allocation11_spill] sm:$0xff] %v3962_v55  ;;  %v576_v57 = vmul.f32 %v3964_v56, %v3964_v56  ;;  %v572_v58 = vmul.f32 %v3962_v55, %v3962_v55  ;;  %v3970_v59 = vpop.f32.mrf.mxu1  ;;  %v3973_v60 = vpop.f32.mrf.mxu0 }
  0xd8   : > { %6674 = vst [vmem:[#allocation12_spill] sm:$0xff] %v3964_v56  ;;  %v565_v62 = vmul.f32 %v3973_v60, %v3973_v60  ;;  %v569_v1 = vmul.f32 %v3970_v59, %v3970_v59  ;;  %v3186_v8 = vpop.eup %3185  ;;  %v4000_v12 = vpop.xlane.xlu2 %275  ;;  %v1285_v13 = vand.u32 2147483647, %v3973_v60  ;;  %v344_v32 = vmul.f32 %v3184_v63, %v343_v24 }
  0xd9   : > { %6675 = vst [vmem:[#allocation13_spill] sm:$0xff] %v3970_v59  ;;  %1300 = vmax.xlane.f32.xlu2 %v1284_v54  ;;  %604 = vadd.xlane.f32.xlu1 %v576_v57  ;;  %v352_v15 = vmul.f32 %v3186_v8, %v3975_v61  ;;  %3191 = vrsqrt.f32 %v4000_v12  ;;  %v4010_v18 = vpop.eup %3187  ;;  %v4052_v46 = vpop.xlane.xlu0 %271  ;;  %v361_v24 = vand.u32 2147483648, %v3975_v61  ;;  %vm394_vm8 = vcmp.eq.f32.partialorder %v4000_v12, inf }
  0xda   : > { %596 = vadd.xlane.f32.xlu0 %v572_v58  ;;  %v4012_v19 = vpop.eup %3189  ;;  %v292_v27 = vmul.f32 %v4010_v18, %v3991_v6  ;;  %3193 = vrsqrt.f32 %v4014_v21  ;;  %v345_v39 = vmul.f32 %v344_v32, %v3959_v53  ;;  %v4060_v58 = vpop.xlane.xlu1 %273  ;;  %vm396_vm9 = vcmp.eq.f32.partialorder %v4000_v12, 0.0 }
  0xdb   : > { %v353_v20 = vmul.f32 %v3186_v8, %v352_v15  ;;  %v316_v28 = vmul.f32 %v4012_v19, %v3993_v7  ;;  %3195 = vrsqrt.f32 %v4027_v29 }
  0xdc   : > { %v293_v36 = vmul.f32 %v4010_v18, %v292_v27  ;;  %v347_v54 = vsel %vm346_vm0, %v3959_v53, %v345_v39  ;;  %vm370_vm0 = vcmp.eq.f32.partialorder %v4052_v46, inf }
  0xdd   : > { %v354_v31 = vmul.f32 0.5, %v353_v20  ;;  %v317_v37 = vmul.f32 %v4012_v19, %v316_v28  ;;  %v350_v11 = vsel %vm348_vm1, %v349_v50, %v347_v54  ;;  %vm372_vm1 = vcmp.eq.f32.partialorder %v4052_v46, 0.0 }
  0xde   : > { %v3979_v0 = vpop.f32.mrf.mxu2  ;;  %v3986_v3 = vpop.f32.mrf.mxu3  ;;  %v294_v44 = vmul.f32 0.5, %v293_v36 }
  0xdf   : > { %6676 = vst [vmem:[#allocation14_spill] sm:$0xff] %v3979_v0  ;;  %v573_v2 = vmul.f32 %v3979_v0, %v3979_v0  ;;  %v3989_v5 = vpop.f32.mrf.mxu1  ;;  %v577_v10 = vmul.f32 %v3986_v3, %v3986_v3  ;;  %v4004_v14 = vpop.f32.mrf.mxu0  ;;  %v355_v38 = vsub.f32 1.5, %v354_v31  ;;  %v318_v47 = vmul.f32 0.5, %v317_v37 }
  0xe0   : > { %6677 = vst [vmem:[#allocation15_spill] sm:$0xff] %v3986_v3  ;;  %v570_v9 = vmul.f32 %v3989_v5, %v3989_v5  ;;  %v1286_v23 = vand.u32 2147483647, %v4004_v14  ;;  %v4019_v25 = vpop.eup %3191  ;;  %v566_v26 = vmul.f32 %v4004_v14, %v4004_v14  ;;  %v4050_v45 = vpop.xlane.xlu2 %281  ;;  %v1293_v27 = vand.u32 2147483647, %v3979_v0 }
  0xe1   : > { %598 = vadd.xlane.f32.xlu1 %v573_v2  ;;  %582 = vadd.xlane.f32.xlu2 %v565_v62  ;;  %6678 = vst [vmem:[#allocation16_spill] sm:$0xff] %v4004_v14  ;;  %v388_v33 = vmul.f32 %v4019_v25, %v4000_v12  ;;  %v356_v51 = vmul.f32 %v3186_v8, %v355_v38  ;;  %v4055_v52 = vpop.eup %3193  ;;  %3197 = vrsqrt.f32 %v4050_v45  ;;  %v1292_v2 = vand.u32 2147483647, %v3962_v55  ;;  %v4099_v38 = vpop.xlane.xlu0 %277 }
  0xe2   : > { %590 = vadd.xlane.f32.xlu0 %v569_v1  ;;  %v4062_v62 = vpop.eup %3195  ;;  %v295_v1 = vsub.f32 1.5, %v294_v44  ;;  %v319_v8 = vsub.f32 1.5, %v318_v47  ;;  %v304_v15 = vmul.f32 %v4055_v52, %v4014_v21  ;;  %v487_v31 = vmax.f32 %v350_v11, 1e-15  ;;  %v4120_v50 = vpop.xlane.xlu1 %279 }
  0xe3   : > { %v389_v42 = vmul.f32 %v4019_v25, %v388_v33  ;;  %3199 = vrsqrt.f32 %v4052_v46  ;;  %v1290_v37 = vand.u32 2147483647, %v3989_v5  ;;  %vm430_vm14 = vcmp.eq.f32.partialorder %v4050_v45, inf }
  0xe4   : > { %v320_v32 = vmul.f32 %v4012_v19, %v319_v8  ;;  %v301_v19 = vand.u32 2147483648, %v3991_v6  ;;  %3201 = vrsqrt.f32 %v4060_v58  ;;  %v4112_v44 = vclamps-f32 %v487_v31, 0.9999999 }
  0xe5   : > { %v390_v57 = vmul.f32 0.5, %v389_v42  ;;  %vm432_vm15 = vcmp.eq.f32.partialorder %v4050_v45, 0.0 }
  0xe6   : > { %v4008_v17 = vpop.f32.mrf.mxu2  ;;  %v4029_v30 = vpop.f32.mrf.mxu3  ;;  %v888_v0 = vadd.f32 1.0, %v4112_v44 }
  0xe7   : > { %6679 = vst [vmem:[#allocation17_spill] sm:$0xff] %v4008_v17  ;;  %v574_v22 = vmul.f32 %v4008_v17, %v4008_v17  ;;  %v4033_v34 = vpop.f32.mrf.mxu0  ;;  %v4035_v35 = vpop.f32.mrf.mxu1  ;;  %v578_v43 = vmul.f32 %v4029_v30, %v4029_v30 }
  0xe8   : > { %6680 = vst [vmem:[#allocation18_spill] sm:$0xff] %v4029_v30  ;;  %v571_v40 = vmul.f32 %v4035_v35, %v4035_v35  ;;  %v567_v41 = vmul.f32 %v4033_v34, %v4033_v34  ;;  %v1287_v16 = vand.u32 2147483647, %v4033_v34  ;;  %v4088_v28 = vpop.eup %3197 }
  0xe9   : > { %592 = vadd.xlane.f32.xlu1 %v570_v9  ;;  %606 = vadd.xlane.f32.xlu2 %v577_v10  ;;  %6681 = vst [vmem:[#allocation19_spill] sm:$0xff] %v4033_v34  ;;  %v1289_v9 = vand.u32 2147483647, %v3970_v59  ;;  %v424_v42 = vmul.f32 %v4088_v28, %v4050_v45 }
  0xea   : > { %1302 = vmax.xlane.f32.xlu0 %v1285_v13  ;;  %6682 = vst [vmem:[#allocation20_spill] sm:$0xff] %v4035_v35  ;;  %v357_v13 = vmul.f32 %v356_v51, %v3975_v61  ;;  %v325_v51 = vand.u32 2147483648, %v3993_v7 }
  0xec   : > { %v359_v36 = vsel %vm358_vm2, %v3975_v61, %v357_v13  ;;  %v397_v61 = vand.u32 2147483648, %v4000_v12  ;;  %vm382_vm2 = vcmp.eq.f32.partialorder %v4060_v58, inf }
  0xed   : > { %v4116_v47 = vsel %vm360_vm3, %v361_v24, %v359_v36  ;;  %vm384_vm3 = vcmp.eq.f32.partialorder %v4060_v58, 0.0 }
  0xee   : > { %v4064_v63 = vpop.f32.mrf.mxu3  ;;  %v4067_v4 = vpop.f32.mrf.mxu2  ;;  %v488_v11 = vmax.f32 %v4116_v47, 1e-15 }
  0xef   : > { %6683 = vst [vmem:[#allocation21_spill] sm:$0xff] %v4064_v63  ;;  %v579_v20 = vmul.f32 %v4064_v63, %v4064_v63  ;;  %v575_v53 = vmul.f32 %v4067_v4, %v4067_v4 }
  0xf0   : > { %6684 = vst [vmem:[#allocation22_spill] sm:$0xff] %v4067_v4 }
  0xf1   : > { %600 = vadd.xlane.f32.xlu2 %v574_v22  ;;  %1304 = vmax.xlane.f32.xlu1 %v1286_v23  ;;  %v391_v22 = vsub.f32 1.5, %v390_v57  ;;  %v328_v23 = vmul.f32 %v4062_v62, %v4027_v29  ;;  %v4125_v57 = vpop.eup %3199 }
  0xf2   : > { %584 = vadd.xlane.f32.xlu0 %v566_v26  ;;  %v296_v26 = vmul.f32 %v4010_v18, %v295_v1  ;;  %v305_v18 = vmul.f32 %v4055_v52, %v304_v15  ;;  %v425_v15 = vmul.f32 %v4088_v28, %v424_v42  ;;  %v4144_v24 = vpop.eup %3201 }
  0xf3   : > { %v392_v39 = vmul.f32 %v4019_v25, %v391_v22  ;;  %v321_v25 = vmul.f32 %v320_v32, %v3993_v7  ;;  %v1291_v22 = vand.u32 2147483647, %v4035_v35 }
  0xf4   : > { %v306_v54 = vmul.f32 0.5, %v305_v18 }
  0xf5   : > { %v393_v1 = vmul.f32 %v392_v39, %v4000_v12  ;;  %v4157_v39 = vclamps-f32 %v488_v11, 0.9999999 }
  0xf7   : > { %v395_v18 = vsel %vm394_vm8, %v4000_v12, %v393_v1  ;;  %v4187_v12 = vsub.f32 1.0, %v4157_v39  ;;  %vm418_vm8 = vcmp.eq.f32.partialorder %v4120_v50, inf }
  0xf8   : > { %v398_v47 = vsel %vm396_vm9, %v397_v61, %v395_v18  ;;  %vm420_vm9 = vcmp.eq.f32.partialorder %v4120_v50, 0.0 }
  0xf9   : > { %594 = vadd.xlane.f32.xlu2 %v571_v40  ;;  %586 = vadd.xlane.f32.xlu1 %v567_v41  ;;  %v329_v40 = vmul.f32 %v4062_v62, %v328_v23  ;;  %v297_v41 = vmul.f32 %v296_v26, %v3991_v6  ;;  %v1294_v23 = vand.u32 2147483647, %v4008_v17  ;;  %v364_v26 = vmul.f32 %v4125_v57, %v4052_v46 }
  0xfa   : > { %608 = vadd.xlane.f32.xlu0 %v578_v43  ;;  %v4110_v43 = vpop.xlane.xlu2 %287 }
  0xfb   : > { %v330_v8 = vmul.f32 0.5, %v329_v40  ;;  %3203 = vrsqrt.f32 %v4110_v43  ;;  %v299_v13 = vsel %vm298_vm4, %v3991_v6, %v297_v41  ;;  %v426_v41 = vmul.f32 0.5, %v425_v15  ;;  %v4162_v6 = vpop.xlane.xlu0 %283 }
  0xfc   : > { %3205 = vrsqrt.f32 %v4099_v38  ;;  %v302_v36 = vsel %vm300_vm5, %v301_v19, %v299_v13  ;;  %v4182_v13 = vpop.xlane.xlu1 %285  ;;  %vm466_vm4 = vcmp.eq.f32.partialorder %v4110_v43, inf  ;;  %vm406_vm5 = vcmp.eq.f32.partialorder %v4099_v38, inf }
  0xfd   : > { %3207 = vrcp.f32 %v487_v31  ;;  %v331_v31 = vsub.f32 1.5, %v330_v8 }
  0xfe   : > { %3209 = vrsqrt.f32 %v4120_v50 }
  0xff   : > { %v332_v1 = vmul.f32 %v4062_v62, %v331_v31  ;;  %v337_v62 = vand.u32 2147483648, %v4027_v29 }
 0x101   : > { %1306 = vmax.xlane.f32.xlu2 %v1287_v16  ;;  %610 = vadd.xlane.f32.xlu1 %v579_v20  ;;  %v4137_v16 = vsub.f32 1.0, %v4112_v44  ;;  %v323_v20 = vsel %vm322_vm6, %v3993_v7, %v321_v25  ;;  %v4164_v19 = vpop.eup %3203  ;;  %v483_v7 = vmax.f32 %v302_v36, 1e-15  ;;  %vm468_vm6 = vcmp.eq.f32.partialorder %v4110_v43, 0.0 }
 0x102   : > { %602 = vadd.xlane.f32.xlu0 %v575_v53  ;;  %v307_v53 = vsub.f32 1.5, %v306_v54  ;;  %v326_v40 = vsel %vm324_vm7, %v325_v51, %v323_v20  ;;  %v4171_v42 = vpop.eup %3205  ;;  %v365_v51 = vmul.f32 %v4125_v57, %v364_v26  ;;  %v460_v8 = vmul.f32 %v4164_v19, %v4110_v43 }
 0x103   : > { %3211 = vrcp.f32 %v4137_v16  ;;  %v485_v54 = vmax.f32 %v326_v40, 1e-15  ;;  %v4184_v15 = vpop.eup %3207  ;;  %v400_v61 = vmul.f32 %v4171_v42, %v4099_v38  ;;  %v491_v20 = vmax.f32 %v398_v47, 1e-15 }
 0x104   : > { %v308_v25 = vmul.f32 %v4055_v52, %v307_v53  ;;  %3213 = vrsqrt.f32 %v4162_v6  ;;  %v427_v52 = vsub.f32 1.5, %v426_v41  ;;  %v4195_v53 = vpop.eup %3209  ;;  %v4197_v26 = vclamps-f32 %v483_v7, 0.9999999 }
 0x105   : > { %v366_v18 = vmul.f32 0.5, %v365_v51  ;;  %3215 = vrsqrt.f32 %v4182_v13  ;;  %v4203_v40 = vclamps-f32 %v485_v54, 0.9999999  ;;  %v333_v41 = vmul.f32 %v332_v1, %v4027_v29 }
 0x106   : > { %v309_v36 = vmul.f32 %v308_v25, %v4014_v21  ;;  %3217 = vrcp.f32 %v488_v11  ;;  %v428_v47 = vmul.f32 %v4088_v28, %v427_v52  ;;  %v433_v11 = vand.u32 2147483648, %v4050_v45 }
 0x107   : > { %6685 = vst [vmem:[#allocation23_spill] sm:$0xff] %v4203_v40  ;;  %3219 = vrcp.f32 %v4187_v12  ;;  %v401_v25 = vmul.f32 %v4171_v42, %v400_v61  ;;  %v4225_v28 = vsub.f32 1.0, %v4197_v26  ;;  %v367_v52 = vsub.f32 1.5, %v366_v18 }
 0x108   : > { %3221 = vrcp.f32 %v483_v7  ;;  %v4231_v61 = vsub.f32 1.0, %v4203_v40  ;;  %v335_v7 = vsel %vm334_vm11, %v4027_v29, %v333_v41  ;;  %v429_v32 = vmul.f32 %v428_v47, %v4050_v45 }
 0x109   : > { %1312 = vmax.xlane.f32.xlu2 %v1290_v37  ;;  %1310 = vmax.xlane.f32.xlu1 %v1289_v9  ;;  %v313_v9 = vand.u32 2147483648, %v4014_v21  ;;  %v376_v37 = vmul.f32 %v4144_v24, %v4060_v58  ;;  %v4201_v31 = vpop.eup %3211  ;;  %3223 = vrcp.f32 %v485_v54  ;;  %v402_v10 = vmul.f32 0.5, %v401_v25 }
 0x10a   : > { %1314 = vmax.xlane.f32.xlu0 %v1291_v22  ;;  %v4216_v51 = vpop.eup %3213  ;;  %6686 = vst [vmem:[#allocation24_spill] sm:$0xff] %v4231_v61  ;;  %3225 = vrcp.f32 %v491_v20  ;;  %v368_v25 = vmul.f32 %v4125_v57, %v367_v52  ;;  %v431_v35 = vsel %vm430_vm14, %v4050_v45, %v429_v32  ;;  %v6690_v29 = vand.u32 2147483647, %v3986_v3 }
 0x10b   : > { %v377_v22 = vmul.f32 %v4144_v24, %v376_v37  ;;  %v461_v37 = vmul.f32 %v4164_v19, %v460_v8  ;;  %v4222_v8 = vpop.xlane.xlu0 %289  ;;  %v4236_v33 = vpop.eup %3215  ;;  %v436_v54 = vmul.f32 %v4216_v51, %v4162_v6  ;;  %vm408_vm7 = vcmp.eq.f32.partialorder %v4099_v38, 0.0 }
 0x10c   : > { %3227 = vrsqrt.f32 %v4222_v8  ;;  %v448_v57 = vmul.f32 %v4236_v33, %v4182_v13  ;;  %v369_v32 = vmul.f32 %v368_v25, %v4052_v46  ;;  %vm444_vm11 = vcmp.eq.f32.partialorder %v4162_v6, 0.0 }
 0x10d   : > { %v378_v1 = vmul.f32 0.5, %v377_v22  ;;  %v462_v22 = vmul.f32 0.5, %v461_v37  ;;  %3229 = vrcp.f32 %v4225_v28  ;;  %vm478_vm14 = vcmp.eq.f32.partialorder %v4222_v8, inf }
 0x10e   : > { %3231 = vrcp.f32 %v4231_v61 }
 0x10f   : > { %v379_v41 = vsub.f32 1.5, %v378_v1  ;;  %v6687_v1 = vand.u32 2147483647, %v3964_v56 }
 0x111   : > { %1318 = vmax.xlane.f32.xlu2 %v1293_v27  ;;  %1316 = vmax.xlane.f32.xlu1 %v1292_v2  ;;  %v4218_v27 = vclamps-f32 %v491_v20, 0.9999999  ;;  %v412_v2 = vmul.f32 %v4195_v53, %v4120_v50 }
 0x112   : > { %1320 = vmax.xlane.f32.xlu0 %v1294_v23  ;;  %v311_v23 = vsel %vm310_vm10, %v4014_v21, %v309_v36  ;;  %v4242_v36 = vpop.eup %3217  ;;  %v338_v21 = vsel %vm336_vm13, %v337_v62, %v335_v7  ;;  %v403_v62 = vsub.f32 1.5, %v402_v10  ;;  %v437_v7 = vmul.f32 %v4216_v51, %v436_v54 }
 0x113   : > { %v4245_v18 = vsub.f32 1.0, %v4218_v27  ;;  %v314_v20 = vsel %vm312_vm12, %v313_v9, %v311_v23  ;;  %v413_v37 = vmul.f32 %v4195_v53, %v412_v2  ;;  %v4252_v47 = vpop.eup %3219  ;;  %v463_v9 = vsub.f32 1.5, %v462_v22 }
 0x114   : > { %v4258_v14 = vpop.eup %3221  ;;  %v6688_v2 = vand.u32 2147483647, %v4029_v30  ;;  %v484_v52 = vmax.f32 %v314_v20, 1e-15  ;;  %v4289_v10 = vsel %vm432_vm15, %v433_v11, %v431_v35  ;;  %v385_v54 = vand.u32 2147483648, %v4060_v58 }
 0x115   : > { %v4269_v23 = vpop.eup %3223  ;;  %3233 = vrcp.f32 %v4245_v18  ;;  %v414_v30 = vmul.f32 0.5, %v413_v37  ;;  %6691 = vst [vmem:[#allocation26_spill] sm:$0xff] %v4289_v10  ;;  %v404_v25 = vmul.f32 %v4171_v42, %v403_v62  ;;  %v438_v34 = vmul.f32 0.5, %v437_v7 }
 0x116   : > { %6689 = vst [vmem:[#allocation25_spill] sm:$0xff] %v4269_v23  ;;  %v4277_v22 = vpop.eup %3225  ;;  %v486_v23 = vmax.f32 %v338_v21, 1e-15  ;;  %v4296_v37 = vclamps-f32 %v484_v52, 0.9999999  ;;  %3235 = vrcp.f32 %v484_v52  ;;  %v371_v42 = vsel %vm370_vm0, %v4052_v46, %v369_v32 }
 0x117   : > { %v4282_v20 = vpop.eup %3227  ;;  %v1299_v21 = vand.u32 2147483647, %v4064_v63  ;;  %v415_v45 = vsub.f32 1.5, %v414_v30  ;;  %v1295_v11 = vand.u32 2147483647, %v4067_v4  ;;  %vm442_vm10 = vcmp.eq.f32.partialorder %v4162_v6, inf }
 0x118   : > { %3237 = vrcp.f32 %v486_v23  ;;  %v4317_v52 = vsub.f32 1.0, %v4296_v37  ;;  %vm454_vm12 = vcmp.eq.f32.partialorder %v4182_v13, inf  ;;  %vm456_vm13 = vcmp.eq.f32.partialorder %v4182_v13, 0.0 }
 0x119   : > { %1324 = vmax.xlane.f32.xlu2 %v6687_v1  ;;  %1328 = vmax.xlane.f32.xlu1 %v6688_v2  ;;  %v373_v1 = vand.u32 2147483648, %v4052_v46  ;;  %v380_v2 = vmul.f32 %v4144_v24, %v379_v41  ;;  %v449_v24 = vmul.f32 %v4236_v33, %v448_v57  ;;  %v4294_v41 = vpop.eup %3229  ;;  %v439_v57 = vsub.f32 1.5, %v438_v34 }
 0x11a   : > { %1326 = vmax.xlane.f32.xlu0 %v6690_v29  ;;  %v464_v29 = vmul.f32 %v4164_v19, %v463_v9  ;;  %v4300_v17 = vpop.eup %3231  ;;  %v472_v19 = vmul.f32 %v4282_v20, %v4222_v8  ;;  %v4306_v9 = vclamps-f32 %v486_v23, 0.9999999  ;;  %v469_v34 = vand.u32 2147483648, %v4110_v43 }
 0x11b   : > { %6692 = vst [vmem:[#allocation27_spill] sm:$0xff] %v4300_v17  ;;  %v381_v35 = vmul.f32 %v380_v2, %v4060_v58  ;;  %v4312_v62 = vpop.eup %3233  ;;  %v450_v30 = vmul.f32 0.5, %v449_v24  ;;  %v405_v2 = vmul.f32 %v404_v25, %v4099_v38  ;;  %v374_v32 = vsel %vm372_vm1, %v373_v1, %v371_v42 }
 0x11c   : > { %v465_v7 = vmul.f32 %v464_v29, %v4110_v43  ;;  %v416_v29 = vmul.f32 %v4195_v53, %v415_v45  ;;  %v4329_v24 = vsub.f32 1.0, %v4306_v9  ;;  %v409_v53 = vand.u32 2147483648, %v4099_v38 }
 0x11d   : > { %v383_v23 = vsel %vm382_vm2, %v4060_v58, %v381_v35  ;;  %v451_v1 = vsub.f32 1.5, %v450_v30  ;;  %v4342_v35 = vpop.eup %3235  ;;  %v489_v45 = vmax.f32 %v374_v32, 1e-15  ;;  %v407_v42 = vsel %vm406_vm5, %v4099_v38, %v405_v2 }
 0x11e   : > { %v467_v46 = vsel %vm466_vm4, %v4110_v43, %v465_v7  ;;  %v4350_v4 = vpop.eup %3237  ;;  %3239 = vrcp.f32 %v4317_v52  ;;  %v417_v7 = vmul.f32 %v416_v29, %v4120_v50  ;;  %v421_v43 = vand.u32 2147483648, %v4120_v50 }
 0x11f   : > { %6695 = vst [vmem:[#allocation29_spill] sm:$0xff] %v4350_v4  ;;  %v470_v58 = vsel %vm468_vm6, %v469_v34, %v467_v46  ;;  %3241 = vrcp.f32 %v4329_v24  ;;  %v452_v2 = vmul.f32 %v4236_v33, %v451_v1  ;;  %v4366_v32 = vclamps-f32 %v489_v45, 0.9999999 }
 0x120   : > { %v497_v29 = vmax.f32 %v470_v58, 1e-15  ;;  %v445_v1 = vand.u32 2147483648, %v4162_v6  ;;  %vm981_vm15 = vweird.f32 %v4137_v16  ;;  %vm982_vm0 = vweird.f32 %v4201_v31 }
 0x121   : > { %1330 = vmax.xlane.f32.xlu2 %v1299_v21  ;;  %1322 = vmax.xlane.f32.xlu1 %v1295_v11  ;;  %v473_v21 = vmul.f32 %v4282_v20, %v472_v19  ;;  %v6693_v11 = vmax.f32 %v4289_v10, 1e-15  ;;  %v386_v19 = vsel %vm384_vm3, %v385_v54, %v383_v23  ;;  %v977_v54 = vmul.f32 %v4201_v31, %v4137_v16  ;;  %vm4431_vm1 = vmor %vm981_vm15, %vm982_vm0 }
 0x122   : > { %v4390_v58 = vclamps-f32 %v497_v29, 0.9999999  ;;  %vm480_vm2 = vcmp.eq.f32.partialorder %v4222_v8, 0.0  ;;  %vm921_vm4 = vweird.f32 %v4225_v28  ;;  %vm922_vm5 = vweird.f32 %v4294_v41 }
 0x123   : > { %v4333_v25 = vclamps-f32 %v6693_v11, 0.9999999  ;;  %v440_v11 = vmul.f32 %v4216_v51, %v439_v57  ;;  %v474_v63 = vmul.f32 0.5, %v473_v21  ;;  %v490_v51 = vmax.f32 %v386_v19, 1e-15  ;;  %vm4491_vm6 = vmor %vm921_vm4, %vm922_vm5 }
 0x124   : > { %v410_v57 = vsel %vm408_vm7, %v409_v53, %v407_v42  ;;  %v419_v21 = vsel %vm418_vm8, %v4120_v50, %v417_v7  ;;  %v978_v46 = vsub.f32 1.0, %v977_v54  ;;  %v4374_v53 = vpop.eup %3239  ;;  %v453_v19 = vmul.f32 %v452_v2, %v4182_v13  ;;  %6697 = vst [vmem:[#allocation31_spill] sm:$0xff] %v4390_v58 }
 0x125   : > { %6694 = vst [vmem:[#allocation28_spill] sm:$0xff] %v4333_v25  ;;  %v4355_v30 = vsub.f32 1.0, %v4333_v25  ;;  %v441_v23 = vmul.f32 %v440_v11, %v4162_v6  ;;  %v475_v34 = vsub.f32 1.5, %v474_v63  ;;  %v492_v38 = vmax.f32 %v410_v57, 1e-15  ;;  %v4388_v7 = vpop.eup %3241 }
 0x126   : > { %v4376_v33 = vclamps-f32 %v490_v51, 0.9999999  ;;  %v4382_v42 = vsub.f32 1.0, %v4366_v32  ;;  %v422_v63 = vsel %vm420_vm9, %v421_v43, %v419_v21  ;;  %v457_v2 = vand.u32 2147483648, %v4182_v13 }
 0x127   : > { %6696 = vst [vmem:[#allocation30_spill] sm:$0xff] %v4355_v30  ;;  %3243 = vrcp.f32 %v4355_v30  ;;  %v443_v11 = vsel %vm442_vm10, %v4162_v6, %v441_v23  ;;  %v476_v54 = vmul.f32 %v4282_v20, %v475_v34  ;;  %v4393_v57 = vclamps-f32 %v492_v38, 0.9999999 }
 0x128   : > { %3245 = vrcp.f32 %v489_v45  ;;  %v979_v50 = vmul.f32 %v4201_v31, %v978_v46  ;;  %v4399_v43 = vsub.f32 1.0, %v4376_v33  ;;  %v493_v23 = vmax.f32 %v422_v63, 1e-15 }
 0x129   : > { %v446_v21 = vsel %vm444_vm11, %v445_v1, %v443_v11  ;;  %v455_v45 = vsel %vm454_vm12, %v4182_v13, %v453_v19  ;;  %3247 = vrcp.f32 %v4382_v42  ;;  %v917_v20 = vmul.f32 %v4294_v41, %v4225_v28 }
 0x12a   : > { %3249 = vrcp.f32 %v490_v51  ;;  %v4412_v34 = vsub.f32 1.0, %v4390_v58  ;;  %v477_v6 = vmul.f32 %v476_v54, %v4222_v8  ;;  %v4417_v46 = vsub.f32 1.0, %v4393_v57 }
 0x12b   : > { %3251 = vrcp.f32 %v497_v29  ;;  %v495_v1 = vmax.f32 %v446_v21, 1e-15  ;;  %v458_v19 = vsel %vm456_vm13, %v457_v2, %v455_v45  ;;  %v4424_v51 = vclamps-f32 %v493_v23, 0.9999999 }
 0x12c   : > { %6699 = vst [vmem:[#allocation33_spill] sm:$0xff] %v4412_v34  ;;  %3253 = vrcp.f32 %v4399_v43  ;;  %v980_v11 = vadd.f32 %v4201_v31, %v979_v50  ;;  %v987_v54 = vand.u32 2147483648, %v4137_v16  ;;  %v481_v29 = vand.u32 2147483648, %v4222_v8 }
 0x12d   : > { %v4404_v10 = vpop.eup %3243  ;;  %6700 = vst [vmem:[#allocation34_spill] sm:$0xff] %v4424_v51  ;;  %3255 = vrcp.f32 %v492_v38  ;;  %v985_v13 = vand.u32 2147483647, %v4137_v16  ;;  %v918_v2 = vsub.f32 1.0, %v917_v20  ;;  %v496_v45 = vmax.f32 %v458_v19, 1e-15 }
 0x12e   : > { %6698 = vst [vmem:[#allocation32_spill] sm:$0xff] %v4404_v10  ;;  %v4421_v63 = vpop.eup %3245  ;;  %3257 = vrcp.f32 %v4412_v34  ;;  %v479_v50 = vsel %vm478_vm14, %v4222_v8, %v477_v6  ;;  %v4444_v3 = vclamps-f32 %v495_v1, 0.9999999  ;;  %v932_v40 = vmul.f32 %v4374_v53, %v4317_v52 }
 0x12f   : > { %v4441_v38 = vpop.eup %3247  ;;  %3259 = vrcp.f32 %v4417_v46  ;;  %v4451_v20 = vsub.f32 1.0, %v4424_v51  ;;  %v984_v6 = vsel %vm4431_vm1, %v4201_v31, %v980_v11  ;;  %v988_v8 = vor.u32 1.1754944e-38, %v987_v54 }
 0x130   : > { %6703 = vst [vmem:[#allocation35_spill] sm:$0xff] %v4444_v3  ;;  %v4448_v16 = vpop.eup %3249  ;;  %3261 = vrcp.f32 %v493_v23  ;;  %v4458_v25 = vsel %vm480_vm2, %v481_v29, %v479_v50  ;;  %vm986_vm3 = vcmp.eq.f32.partialorder %v985_v13, 8.507059e+37  ;;  %v919_v17 = vmul.f32 %v4294_v41, %v918_v2 }
 0x131   : > { %6704 = vst [vmem:[#allocation36_spill] sm:$0xff] %v4448_v16  ;;  %v4456_v19 = vpop.eup %3251  ;;  %v962_v61 = vmul.f32 %v4388_v7, %v4329_v24  ;;  %3263 = vrcp.f32 %v495_v1  ;;  %v4465_v23 = vclamps-f32 %v496_v45, 0.9999999  ;;  %v4471_v31 = vsub.f32 1.0, %v4444_v3 }
 0x132   : > { %6705 = vst [vmem:[#allocation37_spill] sm:$0xff] %v4456_v19  ;;  %v4463_v56 = vpop.eup %3253  ;;  %v933_v11 = vsub.f32 1.0, %v932_v40  ;;  %v989_v13 = vsel %vm986_vm3, %v988_v8, %v984_v6  ;;  %v925_v1 = vand.u32 2147483647, %v4225_v28  ;;  %v927_v2 = vand.u32 2147483648, %v4225_v28 }
 0x133   : > { %6706 = vst [vmem:[#allocation38_spill] sm:$0xff] %v4465_v23  ;;  %v4468_v21 = vpop.eup %3255  ;;  %3265 = vrcp.f32 %v4451_v20  ;;  %v920_v50 = vadd.f32 %v4294_v41, %v919_v17  ;;  %v963_v19 = vsub.f32 1.0, %v962_v61  ;;  %v4487_v40 = vsub.f32 1.0, %v4465_v23 }
 0x134   : > { %6707 = vst [vmem:[#allocation39_spill] sm:$0xff] %v4468_v21  ;;  %v4475_v54 = vpop.eup %3257  ;;  %3267 = vrcp.f32 %v496_v45  ;;  %v1007_v8 = vmul.f32 %v4441_v38, %v4382_v42  ;;  %v990_v29 = vmul.f32 %v989_v13, %v888_v0  ;;  %v884_v17 = vadd.f32 1.0, %v4197_v26 }
 0x135   : > { %6708 = vst [vmem:[#allocation40_spill] sm:$0xff] %v4475_v54  ;;  %v4480_v44 = vpop.eup %3259  ;;  %3269 = vrcp.f32 %v4471_v31  ;;  %v934_v61 = vmul.f32 %v4374_v53, %v933_v11  ;;  %vm4506_vm7 = vcmp.eq.f32.partialorder %v925_v1, 8.507059e+37  ;;  %v928_v58 = vor.u32 1.1754944e-38, %v927_v2 }
 0x136   : > { %v4484_v10 = vpop.eup %3261  ;;  %6710 = vst [vmem:[#allocation42_spill] sm:$0xff] %v4487_v40  ;;  %v992_v4 = vmul.f32 %v4252_v47, %v4187_v12  ;;  %v924_v0 = vsel %vm4491_vm6, %v4294_v41, %v920_v50  ;;  %vm936_vm8 = vweird.f32 %v4317_v52  ;;  %vm937_vm9 = vweird.f32 %v4374_v53 }
 0x137   : > { %6709 = vst [vmem:[#allocation41_spill] sm:$0xff] %v4484_v10  ;;  %v4500_v45 = vpop.eup %3263  ;;  %v6714_v10 = vmax.f32 %v4458_v25, 1e-15  ;;  %v964_v26 = vmul.f32 %v4388_v7, %v963_v19  ;;  %3271 = vrcp.f32 %v4487_v40  ;;  %v942_v11 = vand.u32 2147483648, %v4317_v52  ;;  %vm4542_vm12 = vmor %vm936_vm8, %vm937_vm9 }
 0x138   : > { %6713 = vst [vmem:[#allocation43_spill] sm:$0xff] %v4500_v45  ;;  %v1008_v13 = vsub.f32 1.0, %v1007_v8  ;;  %v935_v41 = vadd.f32 %v4374_v53, %v934_v61  ;;  %vm966_vm10 = vweird.f32 %v4329_v24  ;;  %vm967_vm11 = vweird.f32 %v4388_v7 }
 0x139   : > { %v4504_v30 = vclamps-f32 %v6714_v10, 0.9999999  ;;  %v940_v10 = vand.u32 2147483647, %v4317_v52  ;;  %v4521_v1 = vpop.eup %3265  ;;  %v970_v19 = vand.u32 2147483647, %v4329_v24  ;;  %v929_v8 = vsel %vm4506_vm7, %v928_v58, %v924_v0  ;;  %vm4563_vm14 = vmor %vm966_vm10, %vm967_vm11 }
 0x13a   : > { %v4531_v50 = vpop.eup %3267  ;;  %v972_v45 = vand.u32 2147483648, %v4329_v24  ;;  %v993_v16 = vsub.f32 1.0, %v992_v4  ;;  %v885_v58 = vadd.f32 1.0, %v4296_v37  ;;  %v965_v28 = vadd.f32 %v4388_v7, %v964_v26 }
 0x13b   : > { %6715 = vst [vmem:[#allocation44_spill] sm:$0xff] %v4504_v30  ;;  %v4547_v40 = vpop.eup %3269  ;;  %vm4555_vm13 = vcmp.eq.f32.partialorder %v940_v10, 8.507059e+37  ;;  %v943_v0 = vor.u32 1.1754944e-38, %v942_v11  ;;  %v930_v59 = vmul.f32 %v929_v8, %v884_v17  ;;  %v939_v37 = vsel %vm4542_vm12, %v4374_v53, %v935_v41 }
 0x13c   : > { %6718 = vst [vmem:[#allocation45_spill] sm:$0xff] %v4531_v50  ;;  %v4550_v50 = vsub.f32 1.0, %v4504_v30  ;;  %v1009_v30 = vmul.f32 %v4441_v38, %v1008_v13  ;;  %vm4574_vm15 = vcmp.eq.f32.partialorder %v970_v19, 8.507059e+37  ;;  %vm1011_vm0 = vweird.f32 %v4382_v42 }
 0x13d   : > { %6721 = vst [vmem:[#allocation46_spill] sm:$0xff] %v4547_v40  ;;  %v4579_v24 = vpop.eup %3271  ;;  %v973_v11 = vor.u32 1.1754944e-38, %v972_v45  ;;  %vm1012_vm1 = vweird.f32 %v4441_v38  ;;  %v994_v17 = vmul.f32 %v4252_v47, %v993_v16  ;;  %vm1813_vm2 = vcmask 1040384  }
 0x13e   : > { %6728 = vst [vmem:[#allocation47_spill] sm:$0xff] %v4579_v24  ;;  %v969_v53 = vsel %vm4563_vm14, %v4388_v7, %v965_v28  ;;  %v1015_v13 = vand.u32 2147483647, %v4382_v42  ;;  %v1017_v41 = vand.u32 2147483648, %v4382_v42  ;;  %v1010_v61 = vadd.f32 %v4441_v38, %v1009_v30  ;;  %vm4601_vm5 = vmor %vm1011_vm0, %vm1012_vm1 }
 0x13f   : > { %vm996_vm3 = vweird.f32 %v4187_v12  ;;  %vm997_vm4 = vweird.f32 %v4252_v47  ;;  %v887_v7 = vadd.f32 1.0, %v4306_v9  ;;  %v1002_v28 = vand.u32 2147483648, %v4187_v12 }
 0x140   : > { %v995_v9 = vadd.f32 %v4252_v47, %v994_v17  ;;  %v974_v42 = vsel %vm4574_vm15, %v973_v11, %v969_v53  ;;  %v1018_v3 = vor.u32 1.1754944e-38, %v1017_v41  ;;  %vm4619_vm6 = vmor %vm996_vm3, %vm997_vm4  ;;  %v1022_v52 = vmul.f32 %v4463_v56, %v4399_v43 }
 0x141   : > { %v1014_v26 = vsel %vm4601_vm5, %v4441_v38, %v1010_v61  ;;  %vm1016_vm7 = vcmp.eq.f32.partialorder %v1015_v13, 8.507059e+37  ;;  %v1003_v41 = vor.u32 1.1754944e-38, %v1002_v28  ;;  %v889_v38 = vadd.f32 1.0, %v4157_v39 }
 0x142   : > { %v999_v55 = vsel %vm4619_vm6, %v4252_v47, %v995_v9  ;;  %v1019_v40 = vsel %vm1016_vm7, %v1018_v3, %v1014_v26  ;;  %v1023_v30 = vsub.f32 1.0, %v1022_v52  ;;  %vm1027_vm14 = vweird.f32 %v4463_v56 }
 0x143   : > { %vm1056_vm1 = vweird.f32 %v4417_v46  ;;  %vm1041_vm6 = vweird.f32 %v4245_v18 }
 0x144   : > { %v4523_v2 = vpop.xlane.xlu2 %588  ;;  %v4525_v23 = vpop.xlane.xlu1 %580  ;;  %v1024_v39 = vmul.f32 %v4463_v56, %v1023_v30 }
 0x145   : > { %3273 = vrsqrt.f32 %v4523_v2  ;;  %v4534_v6 = vpop.xlane.xlu0 %1308  ;;  %vm667_vm9 = vcmp.eq.f32.partialorder %v4523_v2, inf  ;;  %vm619_vm10 = vcmp.eq.f32.partialorder %v4525_v23, inf  ;;  %vm669_vm11 = vcmp.eq.f32.partialorder %v4523_v2, 0.0 }
 0x146   : > { %3275 = vrsqrt.f32 %v4525_v23  ;;  %vm621_vm12 = vcmp.eq.f32.partialorder %v4525_v23, 0.0  ;;  %vm1336_vm5 = vcmp.eq.f32.partialorder %v4534_v6, 0.0 }
 0x147   : > { %3277 = vlog2.f32 %v990_v29  ;;  %v242_v29 = vld [vmem:[%s6631_s2] sm:$0x1] }
 0x148   : > { %v1812_v10 = vmul.f32 %v242_v29, %v242_v29  ;;  %3279 = vlog2.f32 %v930_v59  ;;  %v944_v59 = vsel %vm4555_vm13, %v943_v0, %v939_v37  ;;  %v890_v37 = vadd.f32 1.0, %v4366_v32 }
 0x149   : > { %v945_v53 = vmul.f32 %v944_v59, %v885_v58  ;;  %v670_v59 = vand.u32 2147483648, %v4523_v2  ;;  %vm1026_vm13 = vweird.f32 %v4399_v43 }
 0x14a   : > { %v1814_v8 = vsel %vm1813_vm2, %v1812_v10, 0.0  ;;  %vm4677_vm15 = vmor %vm1026_vm13, %vm1027_vm14  ;;  %vm1057_vm2 = vweird.f32 %v4480_v44 }
 0x14b   : > { %v3274_v19 = vpop.eup %3273  ;;  %1815 = vadd.xlane.f32.xlu1 %v1814_v8  ;;  %v1000_v8 = vand.u32 2147483647, %v4187_v12  ;;  %vm4726_vm3 = vmor %vm1056_vm1, %vm1057_vm2 }
 0x14c   : > { %v3276_v45 = vpop.eup %3275  ;;  %v661_v16 = vmul.f32 %v3274_v19, %v4523_v2  ;;  %v4592_v29 = vpop.xlane.xlu2 %1300 }
 0x14d   : > { %v4594_v4 = vpop.xlane.xlu1 %604  ;;  %v3278_v10 = vpop.eup %3277  ;;  %v613_v24 = vmul.f32 %v3276_v45, %v4525_v23  ;;  %vm1001_vm8 = vcmp.eq.f32.partialorder %v1000_v8, 8.507059e+37 }
 0x14e   : > { %v4607_v54 = vpop.xlane.xlu0 %596  ;;  %v662_v34 = vmul.f32 %v3274_v19, %v661_v16  ;;  %v1165_v17 = vmul.f32 0.6931472, %v3278_v10  ;;  %v975_v16 = vmul.f32 %v974_v42, %v887_v7  ;;  %v3280_v21 = vpop.eup %3279  ;;  %v1004_v47 = vsel %vm1001_vm8, %v1003_v41, %v999_v55 }
 0x14f   : > { %v614_v0 = vmul.f32 %v3276_v45, %v613_v24  ;;  %v6733_v24 = vmax.f32 %v4458_v25, 1e-15  ;;  %v1157_v28 = vmul.f32 0.6931472, %v3280_v21  ;;  %v1020_v25 = vmul.f32 %v1019_v40, %v890_v37 }
 0x150   : > { %v663_v11 = vmul.f32 0.5, %v662_v34  ;;  %v1192_v13 = vmul.f32 0.5, %v1165_v17  ;;  %v1005_v21 = vmul.f32 %v1004_v47, %v889_v38  ;;  %v622_v40 = vand.u32 2147483648, %v4525_v23 }
 0x151   : > { %v615_v12 = vmul.f32 0.5, %v614_v0  ;;  %3281 = vrcp.f32 %v6733_v24  ;;  %v1188_v41 = vmul.f32 0.5, %v1157_v28  ;;  %vm715_vm1 = vcmp.eq.f32.partialorder %v4607_v54, inf }
 0x152   : > { %v664_v32 = vsub.f32 1.5, %v663_v11  ;;  %3283 = vrcp.f32 %v4550_v50  ;;  %v1030_v11 = vand.u32 2147483647, %v4399_v43 }
 0x153   : > { %v616_v34 = vsub.f32 1.5, %v615_v12  ;;  %3285 = vlog2.f32 %v945_v53 }
 0x154   : > { %v665_v58 = vmul.f32 %v3274_v19, %v664_v32  ;;  %v4638_v7 = vpop.xlane.xlu2 %582  ;;  %3287 = vlog2.f32 %v975_v16  ;;  %v1052_v19 = vmul.f32 %v4480_v44, %v4417_v46  ;;  %v1025_v32 = vadd.f32 %v4463_v56, %v1024_v39 }
 0x155   : > { %v4636_v61 = vpop.xlane.xlu1 %598  ;;  %v617_v51 = vmul.f32 %v3276_v45, %v616_v34  ;;  %3289 = vrsqrt.f32 %v4638_v7  ;;  %vm4683_vm0 = vcmp.eq.f32.partialorder %v1030_v11, 8.507059e+37  ;;  %vm631_vm7 = vcmp.eq.f32.partialorder %v4638_v7, inf }
 0x156   : > { %v666_v3 = vmul.f32 %v665_v58, %v4523_v2  ;;  %v4642_v10 = vpop.xlane.xlu0 %590  ;;  %3291 = vlog2.f32 %v1020_v25  ;;  %v1053_v30 = vsub.f32 1.0, %v1052_v19  ;;  %vm633_vm8 = vcmp.eq.f32.partialorder %v4638_v7, 0.0 }
 0x157   : > { %v618_v55 = vmul.f32 %v617_v51, %v4525_v23  ;;  %v4650_v45 = vpop.eup %3281  ;;  %3293 = vlog2.f32 %v1005_v21  ;;  %v891_v51 = vadd.f32 1.0, %v4376_v33  ;;  %v1060_v21 = vand.u32 2147483647, %v4417_v46 }
 0x158   : > { %v668_v9 = vsel %vm667_vm9, %v4523_v2, %v666_v3  ;;  %v4656_v8 = vpop.eup %3283  ;;  %v1032_v2 = vand.u32 2147483648, %v4399_v43  ;;  %3295 = vrsqrt.f32 %v4594_v4  ;;  %v1054_v19 = vmul.f32 %v4480_v44, %v1053_v30 }
 0x159   : > { %v671_v42 = vsel %vm669_vm11, %v670_v59, %v668_v9  ;;  %v620_v52 = vsel %vm619_vm10, %v4525_v23, %v618_v55  ;;  %v3286_v0 = vpop.eup %3285  ;;  %v4700_v9 = vadd.f32 1.0, %v4393_v57  ;;  %vm4730_vm4 = vcmp.eq.f32.partialorder %v1060_v21, 8.507059e+37 }
 0x15a   : > { %v808_v37 = vmax.f32 %v671_v42, 1e-15  ;;  %v623_v26 = vsel %vm621_vm12, %v622_v40, %v620_v52  ;;  %v3288_v17 = vpop.eup %3287  ;;  %v1159_v58 = vmul.f32 0.6931472, %v3286_v0  ;;  %v1033_v3 = vor.u32 1.1754944e-38, %v1032_v2 }
 0x15b   : > { %v804_v53 = vmax.f32 %v623_v26, 1e-15  ;;  %v3290_v12 = vpop.eup %3289  ;;  %v1163_v39 = vmul.f32 0.6931472, %v3288_v17  ;;  %v1062_v0 = vand.u32 2147483648, %v4417_v46  ;;  %v1055_v17 = vadd.f32 %v4480_v44, %v1054_v19 }
 0x15c   : > { %v840_v16 = vmul.f32 %v4184_v15, %v808_v37  ;;  %v4667_v23 = vpop.xlane.xlu2 %606  ;;  %v625_v38 = vmul.f32 %v3290_v12, %v4638_v7  ;;  %v3292_v33 = vpop.eup %3291  ;;  %v4694_v55 = vmul.f32 0.5, %v1159_v58  ;;  %vm1042_vm9 = vweird.f32 %v4312_v62 }
 0x15d   : > { %v4665_v24 = vpop.xlane.xlu1 %592  ;;  %v836_v34 = vmul.f32 %v4258_v14, %v804_v53  ;;  %v4697_v40 = vpop.eup %3293  ;;  %v4714_v11 = vmul.f32 0.5, %v1163_v39  ;;  %vm1332_vm10 = vcmp.eq.f32.partialorder %v4592_v29, 0.0  ;;  %vm4807_vm12 = vmor %vm1041_vm6, %vm1042_vm9  ;;  %vm679_vm2 = vcmp.eq.f32.partialorder %v4642_v10, inf }
 0x15e   : > { %v1208_v47 = vmul.f32 %v1192_v13, %v840_v16  ;;  %3297 = vrsqrt.f32 %v4665_v24  ;;  %v626_v25 = vmul.f32 %v3290_v12, %v625_v38  ;;  %v4688_v43 = vpop.xlane.xlu0 %1302  ;;  %v1029_v13 = vsel %vm4677_vm15, %v4463_v56, %v1025_v32  ;;  %v4704_v56 = vpop.eup %3295 }
 0x15f   : > { %v1204_v28 = vmul.f32 %v1188_v41, %v836_v34  ;;  %3299 = vrsqrt.f32 %v4642_v10  ;;  %v1034_v52 = vsel %vm4683_vm0, %v1033_v3, %v1029_v13  ;;  %v1037_v41 = vmul.f32 %v4312_v62, %v4245_v18 }
 0x160   : > { %3301 = vtanh.f32 %v1208_v47  ;;  %v627_v59 = vmul.f32 0.5, %v626_v25  ;;  %v4735_v34 = vadd.f32 1.0, %v4218_v27  ;;  %v1035_v58 = vmul.f32 %v1034_v52, %v891_v51 }
 0x161   : > { %3303 = vtanh.f32 %v1204_v28  ;;  %v1063_v28 = vor.u32 1.1754944e-38, %v1062_v0  ;;  %v1059_v27 = vsel %vm4726_vm3, %v4480_v44, %v1055_v17  ;;  %v1038_v39 = vsub.f32 1.0, %v1037_v41 }
 0x162   : > { %3305 = vrcp.f32 %v808_v37  ;;  %v628_v42 = vsub.f32 1.5, %v627_v59  ;;  %v757_v6 = vmul.f32 %v4704_v56, %v4594_v4  ;;  %vm691_vm11 = vcmp.eq.f32.partialorder %v4665_v24, inf }
 0x163   : > { %3307 = vrsqrt.f32 %v4607_v54  ;;  %vm693_vm13 = vcmp.eq.f32.partialorder %v4665_v24, 0.0  ;;  %vm727_vm15 = vcmp.eq.f32.partialorder %v4636_v61, inf  ;;  %vm1333_vm0 = vcmp.eq.f32.partialorder %v4688_v43, 0.0 }
 0x164   : > { %v3298_v26 = vpop.eup %3297  ;;  %3309 = vrcp.f32 %v804_v53  ;;  %v4710_v37 = vpop.xlane.xlu2 %600  ;;  %v629_v16 = vmul.f32 %v3290_v12, %v628_v42  ;;  %v4739_v12 = vmul.f32 0.6931472, %v3292_v33  ;;  %vm681_vm3 = vcmp.eq.f32.partialorder %v4642_v10, 0.0 }
 0x165   : > { %v4712_v57 = vpop.xlane.xlu1 %1304  ;;  %v4719_v2 = vpop.eup %3299  ;;  %v685_v32 = vmul.f32 %v3298_v26, %v4665_v24  ;;  %3311 = vrsqrt.f32 %v4636_v61 }
 0x166   : > { %v3302_v38 = vpop.eup %3301  ;;  %v630_v47 = vmul.f32 %v629_v16, %v4638_v7  ;;  %v673_v59 = vmul.f32 %v4719_v2, %v4642_v10  ;;  %v4756_v44 = vpop.xlane.xlu0 %584  ;;  %3313 = vlog2.f32 %v1035_v58 }
 0x167   : > { %v3304_v46 = vpop.eup %3303  ;;  %v1240_v15 = vmul.f32 %v3302_v38, %v3952_v49  ;;  %v686_v14 = vmul.f32 %v3298_v26, %v685_v32  ;;  %v634_v49 = vand.u32 2147483648, %v4638_v7  ;;  %3315 = vrsqrt.f32 %v4667_v23 }
 0x168   : > { %v3306_v25 = vpop.eup %3305  ;;  %v1236_v3 = vmul.f32 %v3304_v46, %v3950_v48  ;;  %v632_v48 = vsel %vm631_vm7, %v4638_v7, %v630_v47  ;;  %v1064_v7 = vsel %vm4730_vm4, %v1063_v28, %v1059_v27  ;;  %v1039_v46 = vmul.f32 %v4312_v62, %v1038_v39 }
 0x169   : > { %v4748_v13 = vpop.eup %3307  ;;  %v1272_v51 = vmul.f32 %v3306_v25, %v1240_v15  ;;  %v687_v19 = vmul.f32 0.5, %v686_v14  ;;  %v635_v0 = vsel %vm633_vm8, %v634_v49, %v632_v48  ;;  %v674_v15 = vmul.f32 %v4719_v2, %v673_v59 }
 0x16a   : > { %v3310_v33 = vpop.eup %3309  ;;  %v805_v41 = vmax.f32 %v635_v0, 1e-15  ;;  %v709_v53 = vmul.f32 %v4748_v13, %v4607_v54  ;;  %v1045_v28 = vand.u32 2147483647, %v4245_v18  ;;  %v758_v25 = vmul.f32 %v4704_v56, %v757_v6 }
 0x16b   : > { %v4761_v21 = vsel %vm1336_vm5, 0.0, %v1272_v51  ;;  %v1268_v42 = vmul.f32 %v3310_v33, %v1236_v3  ;;  %v688_v52 = vsub.f32 1.5, %v687_v19  ;;  %v4763_v17 = vpop.eup %3311  ;;  %v1040_v27 = vadd.f32 %v4312_v62, %v1039_v46 }
 0x16c   : > { %v4765_v16 = vpop.xlane.xlu2 %594  ;;  %v1400_v32 = vmul.f32 %v4761_v21, %v4761_v21  ;;  %v837_v58 = vmul.f32 %v4342_v35, %v805_v41  ;;  %v721_v14 = vmul.f32 %v4763_v17, %v4636_v61  ;;  %v1047_v35 = vand.u32 2147483648, %v4245_v18  ;;  %v3314_v39 = vpop.eup %3313 }
 0x16d   : > { %v689_v38 = vmul.f32 %v3298_v26, %v688_v52  ;;  %v4780_v47 = vpop.xlane.xlu1 %586  ;;  %v4782_v30 = vsel %vm1332_vm10, 0.0, %v1268_v42  ;;  %3317 = vrsqrt.f32 %v4765_v16  ;;  %v710_v3 = vmul.f32 %v4748_v13, %v709_v53  ;;  %v4811_v42 = vpop.eup %3315 }
 0x16e   : > { %1420 = vadd.xlane.f32.xlu1 %v1400_v32  ;;  %v1205_v29 = vmul.f32 %v4694_v55, %v837_v58  ;;  %3319 = vrsqrt.f32 %v4710_v37  ;;  %v675_v51 = vmul.f32 0.5, %v674_v15  ;;  %v1396_v55 = vmul.f32 %v4782_v30, %v4782_v30  ;;  %v4814_v52 = vpop.xlane.xlu0 %608 }
 0x16f   : > { %v690_v26 = vmul.f32 %v689_v38, %v4665_v24  ;;  %3321 = vrsqrt.f32 %v4780_v47  ;;  %v722_v49 = vmul.f32 %v4763_v17, %v721_v14  ;;  %v694_v19 = vand.u32 2147483648, %v4665_v24 }
 0x170   : > { %3323 = vtanh.f32 %v1205_v29  ;;  %v1167_v59 = vmul.f32 0.6931472, %v4697_v40  ;;  %1412 = vadd.xlane.f32.xlu0 %v1396_v55  ;;  %v1194_v0 = vmul.f32 0.5, %v4739_v12  ;;  %v1065_v40 = vmul.f32 %v1064_v7, %v4700_v9 }
 0x171   : > { %v692_v33 = vsel %vm691_vm11, %v4665_v24, %v690_v26  ;;  %3325 = vrsqrt.f32 %v4756_v44  ;;  %v759_v18 = vmul.f32 0.5, %v758_v25  ;;  %v1048_v53 = vor.u32 1.1754944e-38, %v1047_v35 }
 0x172   : > { %3327 = vrcp.f32 %v805_v41  ;;  %v695_v6 = vsel %vm693_vm13, %v694_v19, %v692_v33  ;;  %v711_v46 = vmul.f32 0.5, %v710_v3  ;;  %v676_v15 = vsub.f32 1.5, %v675_v51 }
 0x173   : > { %v4819_v32 = vpop.eup %3317  ;;  %v1044_v58 = vsel %vm4807_vm12, %v4312_v62, %v1040_v27  ;;  %vm1046_vm14 = vcmp.eq.f32.partialorder %v1045_v28, 8.507059e+37  ;;  %v723_v12 = vmul.f32 0.5, %v722_v49  ;;  %v769_v9 = vmul.f32 %v4811_v42, %v4667_v23 }
 0x174   : > { %v4821_v38 = vpop.eup %3319  ;;  %3329 = vrsqrt.f32 %v4814_v52  ;;  %v4831_v41 = vmul.f32 0.5, %v1167_v59  ;;  %v766_v14 = vand.u32 2147483648, %v4594_v4  ;;  %v697_v26 = vmul.f32 %v4819_v32, %v4765_v16 }
 0x175   : > { %v4826_v24 = vpop.eup %3321  ;;  %v810_v29 = vmax.f32 %v695_v6, 1e-15  ;;  %v1171_v35 = vmul.f32 0.6931472, %v3314_v39  ;;  %v760_v62 = vsub.f32 1.5, %v759_v18  ;;  %v733_v25 = vmul.f32 %v4821_v38, %v4710_v37 }
 0x176   : > { %v3324_v7 = vpop.eup %3323  ;;  %v1049_v3 = vsel %vm1046_vm14, %v1048_v53, %v1044_v58  ;;  %v712_v51 = vsub.f32 1.5, %v711_v46  ;;  %v718_v55 = vand.u32 2147483648, %v4607_v54  ;;  %v677_v49 = vmul.f32 %v4719_v2, %v676_v15 }
 0x177   : > { %v1237_v28 = vmul.f32 %v3324_v7, %v3973_v60  ;;  %v4839_v27 = vpop.eup %3325  ;;  %v649_v19 = vmul.f32 %v4826_v24, %v4780_v47  ;;  %v724_v59 = vsub.f32 1.5, %v723_v12  ;;  %v770_v39 = vmul.f32 %v4811_v42, %v769_v9  ;;  %v4856_v12 = vpop.xlane.xlu1 %610 }
 0x178   : > { %v3328_v33 = vpop.eup %3327  ;;  %v842_v60 = vmul.f32 %v4421_v63, %v810_v29  ;;  %3331 = vlog2.f32 %v1065_v40  ;;  %v698_v18 = vmul.f32 %v4819_v32, %v697_v26  ;;  %v4848_v6 = vmul.f32 0.5, %v1171_v35 }
 0x179   : > { %v1269_v48 = vmul.f32 %v3328_v33, %v1237_v28  ;;  %v1050_v53 = vmul.f32 %v1049_v3, %v4735_v34  ;;  %v761_v2 = vmul.f32 %v4704_v56, %v760_v62  ;;  %v730_v15 = vand.u32 2147483648, %v4636_v61  ;;  %v4875_v3 = vpop.xlane.xlu0 %602 }
 0x17a   : > { %v4851_v46 = vpop.eup %3329  ;;  %v734_v58 = vmul.f32 %v4821_v38, %v733_v25  ;;  %v1210_v9 = vmul.f32 %v1194_v0, %v842_v60  ;;  %v713_v63 = vmul.f32 %v4748_v13, %v712_v51  ;;  %v678_v40 = vmul.f32 %v677_v49, %v4642_v10 }
 0x17b   : > { %v637_v34 = vmul.f32 %v4839_v27, %v4756_v44  ;;  %v650_v7 = vmul.f32 %v4826_v24, %v649_v19  ;;  %v725_v56 = vmul.f32 %v4763_v17, %v724_v59  ;;  %v771_v26 = vmul.f32 0.5, %v770_v39 }
 0x17c   : > { %3333 = vtanh.f32 %v1210_v9  ;;  %v4866_v35 = vsel %vm1333_vm0, 0.0, %v1269_v48  ;;  %v699_v0 = vmul.f32 0.5, %v698_v18  ;;  %v781_v13 = vmul.f32 %v4851_v46, %v4814_v52 }
 0x17d   : > { %3335 = vrsqrt.f32 %v4856_v12  ;;  %v682_v28 = vand.u32 2147483648, %v4642_v10  ;;  %v735_v17 = vmul.f32 0.5, %v734_v58  ;;  %v638_v43 = vmul.f32 %v4839_v27, %v637_v34 }
 0x17e   : > { %v3332_v62 = vpop.eup %3331  ;;  %3337 = vrcp.f32 %v810_v29  ;;  %v651_v25 = vmul.f32 0.5, %v650_v7  ;;  %v680_v51 = vsel %vm679_vm2, %v4642_v10, %v678_v40  ;;  %v726_v49 = vmul.f32 %v725_v56, %v4636_v61 }
 0x17f   : > { %3339 = vlog2.f32 %v1050_v53  ;;  %v772_v19 = vsub.f32 1.5, %v771_v26  ;;  %v1397_v33 = vmul.f32 %v4866_v35, %v4866_v35  ;;  %v4883_v59 = vmul.f32 %v761_v2, %v4594_v4  ;;  %v6753_v26 = vld [vmem:[#allocation33_spill] sm:$0xff] }
 0x180   : > { %v714_v29 = vmul.f32 %v713_v63, %v4607_v54  ;;  %v700_v39 = vsub.f32 1.5, %v699_v0  ;;  %v782_v60 = vmul.f32 %v4851_v46, %v781_v13  ;;  %v778_v18 = vand.u32 2147483648, %v4667_v23 }
 0x181   : > { %v736_v53 = vsub.f32 1.5, %v735_v17  ;;  %3341 = vrsqrt.f32 %v4875_v3  ;;  %v683_v58 = vsel %vm681_vm3, %v682_v28, %v680_v51  ;;  %1414 = vadd.xlane.f32.xlu1 %v1397_v33  ;;  %v639_v9 = vmul.f32 0.5, %v638_v43 }
 0x182   : > { %v3334_v48 = vpop.eup %3333  ;;  %v652_v40 = vsub.f32 1.5, %v651_v25  ;;  %vm729_vm4 = vcmp.eq.f32.partialorder %v4636_v61, 0.0  ;;  %v4893_v63 = vmul.f32 0.6931472, %v3332_v62  ;;  %v773_v7 = vmul.f32 %v4811_v42, %v772_v19 }
 0x183   : > { %v4889_v10 = vpop.eup %3335  ;;  %v1242_v2 = vmul.f32 %v3334_v48, %v3989_v5  ;;  %v742_v56 = vand.u32 2147483648, %v4710_v37  ;;  %v728_v0 = vsel %vm727_vm15, %v4636_v61, %v726_v49  ;;  %v701_v28 = vmul.f32 %v4819_v32, %v700_v39  ;;  %v6754_v39 = vld [vmem:[#allocation40_spill] sm:$0xff] }
 0x184   : > { %v3338_v34 = vpop.eup %3337  ;;  %v783_v17 = vmul.f32 0.5, %v782_v60  ;;  %v809_v43 = vmax.f32 %v683_v58, 1e-15  ;;  %v737_v62 = vmul.f32 %v4821_v38, %v736_v53  ;;  %vm703_vm5 = vcmp.eq.f32.partialorder %v4765_v16, inf  ;;  %v4923_v53 = vpop.xlane.xlu1 %1310 }
 0x185   : > { %v3340_v13 = vpop.eup %3339  ;;  %v4902_v5 = vmul.f32 %v3338_v34, %v1242_v2  ;;  %v706_v42 = vand.u32 2147483648, %v4765_v16  ;;  %v793_v25 = vmul.f32 %v4889_v10, %v4856_v12  ;;  %v640_v51 = vsub.f32 1.5, %v639_v9 }
 0x186   : > { %v653_v19 = vmul.f32 %v4826_v24, %v652_v40  ;;  %vm655_vm6 = vcmp.eq.f32.partialorder %v4780_v47, inf  ;;  %v658_v32 = vand.u32 2147483648, %v4780_v47  ;;  %v716_v49 = vsel %vm715_vm1, %v4607_v54, %v714_v29 }
 0x187   : > { %v4915_v33 = vpop.eup %3341  ;;  %v4918_v38 = vmul.f32 %v773_v7, %v4667_v23  ;;  %v1173_v60 = vmul.f32 0.6931472, %v3340_v13  ;;  %vm717_vm7 = vcmp.eq.f32.partialorder %v4607_v54, 0.0  ;;  %v702_v24 = vmul.f32 %v701_v28, %v4765_v16 }
 0x188   : > { %v784_v48 = vsub.f32 1.5, %v783_v17  ;;  %v841_v58 = vmul.f32 %v4242_v36, %v809_v43  ;;  %v719_v29 = vsel %vm717_vm7, %v718_v55, %v716_v49  ;;  %v4929_v9 = vmul.f32 %v737_v62, %v4710_v37 }
 0x189   : > { %vm657_vm8 = vcmp.eq.f32.partialorder %v4780_v47, 0.0  ;;  %v794_v40 = vmul.f32 %v4889_v10, %v793_v25  ;;  %v812_v2 = vmax.f32 %v719_v29, 1e-15  ;;  %v1067_v34 = vmul.f32 %v4521_v1, %v4451_v20  ;;  %v6746_v29 = vld [vmem:[#allocation46_spill] sm:$0xff] }
 0x18a   : > { %v641_v7 = vmul.f32 %v4839_v27, %v640_v51  ;;  %v654_v13 = vmul.f32 %v653_v19, %v4780_v47  ;;  %v745_v54 = vmul.f32 %v4915_v33, %v4875_v3  ;;  %v4944_v55 = vsel %vm729_vm4, %v730_v15, %v728_v0 }
 0x18b   : > { %v1196_v28 = vmul.f32 0.5, %v1173_v60  ;;  %v844_v17 = vmul.f32 %v4277_v22, %v812_v2  ;;  %v1068_v62 = vsub.f32 1.0, %v1067_v34  ;;  %v785_v25 = vmul.f32 %v4851_v46, %v784_v48  ;;  %v4974_v48 = vpop.xlane.xlu2 %1306 }
 0x18c   : > { %v1209_v27 = vmul.f32 %v4831_v41, %v841_v58  ;;  %v704_v51 = vsel %vm703_vm5, %v4765_v16, %v702_v24  ;;  %vm705_vm9 = vcmp.eq.f32.partialorder %v4765_v16, 0.0  ;;  %vm763_vm10 = vcmp.eq.f32.partialorder %v4594_v4, inf }
 0x18d   : > { %v795_v19 = vmul.f32 0.5, %v794_v40  ;;  %3343 = vrcp.f32 %v809_v43  ;;  %v1212_v61 = vmul.f32 %v1196_v28, %v844_v17  ;;  %v1069_v15 = vmul.f32 %v4521_v1, %v1068_v62 }
 0x18e   : > { %v746_v22 = vmul.f32 %v4915_v33, %v745_v54  ;;  %v813_v0 = vmax.f32 %v4944_v55, 1e-15  ;;  %vm1071_vm11 = vweird.f32 %v4451_v20  ;;  %vm1072_vm12 = vweird.f32 %v4521_v1 }
 0x18f   : > { %v656_v41 = vsel %vm655_vm6, %v4780_v47, %v654_v13  ;;  %v4962_v16 = vsel %vm705_vm9, %v706_v42, %v704_v51  ;;  %3345 = vtanh.f32 %v1212_v61  ;;  %v1077_v46 = vand.u32 2147483648, %v4451_v20  ;;  %vm4978_vm14 = vmor %vm1071_vm11, %vm1072_vm12 }
 0x190   : > { %vm739_vm13 = vcmp.eq.f32.partialorder %v4710_v37, inf  ;;  %v4967_v43 = vmul.f32 %v641_v7, %v4756_v44  ;;  %3347 = vtanh.f32 %v1209_v27  ;;  %v1070_v49 = vadd.f32 %v4521_v1, %v1069_v15 }
 0x191   : > { %v1075_v60 = vand.u32 2147483647, %v4451_v20  ;;  %v4972_v24 = vmul.f32 %v785_v25, %v4814_v52  ;;  %v796_v42 = vsub.f32 1.5, %v795_v19  ;;  %3349 = vrcp.f32 %v812_v2  ;;  %v6747_v2 = vld [vmem:[#allocation39_spill] sm:$0xff]  ;;  %v1317_v20 = vpop.xlane.xlu1 %1316 }
 0x192   : > { %v1097_v40 = vmul.f32 %v6746_v29, %v4471_v31  ;;  %v4986_v34 = vsel %vm657_vm8, %v658_v32, %v656_v41  ;;  %v4988_v7 = vmul.f32 0.5, %v746_v22  ;;  %v811_v13 = vmax.f32 %v4962_v16, 1e-15  ;;  %v6748_v22 = vld [vmem:[#allocation11_spill] sm:$0xff] }
 0x193   : > { %v845_v54 = vmul.f32 %v6747_v2, %v813_v0  ;;  %v3344_v28 = vpop.eup %3343  ;;  %v1078_v17 = vor.u32 1.1754944e-38, %v1077_v46  ;;  %vm1101_vm15 = vweird.f32 %v4471_v31  ;;  %vm1102_vm0 = vweird.f32 %v6746_v29  ;;  %v6749_v46 = vld [vmem:[#allocation34_spill] sm:$0xff]  ;;  %v6752_v2 = vld [vmem:[#allocation35_spill] sm:$0xff] }
 0x194   : > { %v1098_v62 = vsub.f32 1.0, %v1097_v40  ;;  %vm1337_vm1 = vcmp.eq.f32.partialorder %v4923_v53, 0.0  ;;  %v1074_v47 = vsel %vm4978_vm14, %v4521_v1, %v1070_v49  ;;  %vm1076_vm2 = vcmp.eq.f32.partialorder %v1075_v60, 8.507059e+37  ;;  %vm5015_vm4 = vmor %vm1101_vm15, %vm1102_vm0  ;;  %v6759_v53 = vld [vmem:[#allocation43_spill] sm:$0xff] }
 0x195   : > { %v1105_v32 = vand.u32 2147483647, %v4471_v31  ;;  %v1107_v25 = vand.u32 2147483648, %v4471_v31  ;;  %v3346_v27 = vpop.eup %3345  ;;  %v1197_v19 = vmul.f32 0.5, %v4893_v63  ;;  %vm1340_vm3 = vcmp.eq.f32.partialorder %v1317_v20, 0.0  ;;  %v6755_v31 = vld [vmem:[#allocation13_spill] sm:$0xff] }
 0x196   : > { %v1099_v61 = vmul.f32 %v6746_v29, %v1098_v62  ;;  %v3348_v15 = vpop.eup %3347  ;;  %v1244_v41 = vmul.f32 %v3346_v27, %v6748_v22  ;;  %v894_v40 = vadd.f32 1.0, %v6749_v46  ;;  %v764_v1 = vsel %vm763_vm10, %v4594_v4, %v4883_v59 }
 0x197   : > { %v1108_v63 = vor.u32 1.1754944e-38, %v1107_v25  ;;  %v3350_v60 = vpop.eup %3349  ;;  %v1079_v58 = vsel %vm1076_vm2, %v1078_v17, %v1074_v47  ;;  %v896_v62 = vadd.f32 1.0, %v6752_v2  ;;  %vm1106_vm5 = vcmp.eq.f32.partialorder %v1105_v32, 8.507059e+37 }
 0x198   : > { %v1100_v27 = vadd.f32 %v6746_v29, %v1099_v61  ;;  %v797_v22 = vmul.f32 %v4889_v10, %v796_v42  ;;  %v1213_v46 = vmul.f32 %v1197_v19, %v845_v54  ;;  %v1276_v59 = vmul.f32 %v3350_v60, %v1244_v41  ;;  %v6757_v19 = vld [vmem:[#allocation47_spill] sm:$0xff] }
 0x199   : > { %v1127_v36 = vmul.f32 %v6754_v39, %v6753_v26  ;;  %v1241_v51 = vmul.f32 %v3348_v15, %v6755_v31  ;;  %v740_v25 = vsel %vm739_vm13, %v4710_v37, %v4929_v9  ;;  %vm765_vm6 = vcmp.eq.f32.partialorder %v4594_v4, 0.0  ;;  %v5042_v9 = vpop.xlane.xlu2 %1312 }
 0x19a   : > { %v1104_v17 = vsel %vm5015_vm4, %v6746_v29, %v1100_v27  ;;  %v5034_v10 = vsel %vm1340_vm3, 0.0, %v1276_v59  ;;  %v1080_v42 = vmul.f32 %v1079_v58, %v894_v40  ;;  %v5038_v54 = vsel %vm765_vm6, %v766_v14, %v764_v1  ;;  %v6756_v14 = vld [vmem:[#allocation42_spill] sm:$0xff]  ;;  %v6758_v40 = vld [vmem:[#allocation36_spill] sm:$0xff] }
 0x19b   : > { %v1109_v47 = vsel %vm1106_vm5, %v1108_v63, %v1104_v17  ;;  %vm775_vm7 = vcmp.eq.f32.partialorder %v4667_v23, inf  ;;  %v748_v32 = vsub.f32 1.5, %v4988_v7  ;;  %3351 = vrcp.f32 %v813_v0  ;;  %v6778_v7 = vld [vmem:[#allocation14_spill] sm:$0xff] }
 0x19c   : > { %v1404_v29 = vmul.f32 %v5034_v10, %v5034_v10  ;;  %v1110_v20 = vmul.f32 %v1109_v47, %v896_v62  ;;  %3353 = vtanh.f32 %v1213_v46  ;;  %vm741_vm8 = vcmp.eq.f32.partialorder %v4710_v37, 0.0  ;;  %v6762_v46 = vld [vmem:[#allocation38_spill] sm:$0xff] }
 0x19d   : > { %v1128_v4 = vsub.f32 1.0, %v1127_v36  ;;  %v1112_v61 = vmul.f32 %v6757_v19, %v6756_v14  ;;  %v1273_v15 = vmul.f32 %v3344_v28, %v1241_v51  ;;  %v5053_v41 = vsel %vm741_vm8, %v742_v56, %v740_v25 }
 0x19e   : > { %1428 = vadd.xlane.f32.xlu2 %v1404_v29  ;;  %v816_v55 = vmax.f32 %v5038_v54, 1e-15  ;;  %3355 = vlog2.f32 %v1110_v20  ;;  %v5057_v0 = vmul.f32 %v797_v22, %v4856_v12  ;;  %v5062_v1 = vmul.f32 %v6758_v40, %v811_v13 }
 0x19f   : > { %3357 = vlog2.f32 %v1080_v42  ;;  %v1135_v36 = vand.u32 2147483647, %v6753_v26  ;;  %v5067_v37 = vsel %vm1337_vm1, 0.0, %v1273_v15  ;;  %v1113_v56 = vsub.f32 1.0, %v1112_v61 }
 0x1a0   : > { %vm1116_vm9 = vweird.f32 %v6756_v14  ;;  %vm1117_vm10 = vweird.f32 %v6757_v19  ;;  %v814_v28 = vmax.f32 %v5053_v41, 1e-15  ;;  %v1129_v51 = vmul.f32 %v6754_v39, %v1128_v4 }
 0x1a1   : > { %v1120_v49 = vand.u32 2147483647, %v6756_v14  ;;  %v1122_v63 = vand.u32 2147483648, %v6756_v14  ;;  %v5075_v60 = vpop.eup %3351  ;;  %v848_v58 = vmul.f32 %v6759_v53, %v816_v55  ;;  %vm1131_vm11 = vweird.f32 %v6753_v26  ;;  %vm5091_vm14 = vmor %vm1116_vm9, %vm1117_vm10  ;;  %v5111_v40 = vpop.xlane.xlu2 %1318 }
 0x1a2   : > { %vm1132_vm12 = vweird.f32 %v6754_v39  ;;  %v1114_v2 = vmul.f32 %v6757_v19, %v1113_v56  ;;  %v3354_v62 = vpop.eup %3353  ;;  %vm5083_vm13 = vcmp.eq.f32.partialorder %v1135_v36, 8.507059e+37  ;;  %v1137_v22 = vand.u32 2147483648, %v6753_v26 }
 0x1a3   : > { %v897_v59 = vadd.f32 1.0, %v6762_v46  ;;  %v1123_v25 = vor.u32 1.1754944e-38, %v1122_v63  ;;  %vm5096_vm15 = vcmp.eq.f32.partialorder %v1120_v49, 8.507059e+37  ;;  %v1401_v29 = vmul.f32 %v5067_v37, %v5067_v37  ;;  %vm5117_vm2 = vmor %vm1131_vm11, %vm1132_vm12  ;;  %v5126_v49 = vpop.xlane.xlu0 %1314 }
 0x1a4   : > { %v3356_v17 = vpop.eup %3355  ;;  %v1115_v42 = vadd.f32 %v6757_v19, %v1114_v2  ;;  %v1142_v20 = vmul.f32 %v4656_v8, %v4550_v50  ;;  %vm799_vm0 = vcmp.eq.f32.partialorder %v4856_v12, inf  ;;  %v1130_v61 = vadd.f32 %v6754_v39, %v1129_v51 }
 0x1a5   : > { %v3358_v4 = vpop.eup %3357  ;;  %v1181_v14 = vmul.f32 0.6931472, %v3356_v17  ;;  %v776_v15 = vsel %vm775_vm7, %v4667_v23, %v4918_v38  ;;  %vm1146_vm1 = vweird.f32 %v4550_v50  ;;  %vm1147_vm3 = vweird.f32 %v4656_v8 }
 0x1a6   : > { %v1119_v56 = vsel %vm5091_vm14, %v6757_v19, %v1115_v42  ;;  %1422 = vadd.xlane.f32.xlu2 %v1401_v29  ;;  %v1143_v51 = vsub.f32 1.0, %v1142_v20  ;;  %v1150_v38 = vand.u32 2147483647, %v4550_v50  ;;  %v1138_v53 = vor.u32 1.1754944e-38, %v1137_v22  ;;  %vm5142_vm5 = vmor %vm1146_vm1, %vm1147_vm3  ;;  %v6781_v22 = vld [vmem:[#allocation12_spill] sm:$0xff] }
 0x1a7   : > { %v1200_v63 = vmul.f32 0.5, %v1181_v14  ;;  %v1124_v26 = vsel %vm5096_vm15, %v1123_v25, %v1119_v56  ;;  %v1152_v2 = vand.u32 2147483648, %v4550_v50  ;;  %v1177_v46 = vmul.f32 0.6931472, %v3358_v4  ;;  %v6775_v14 = vld [vmem:[#allocation30_spill] sm:$0xff]  ;;  %v6776_v50 = vld [vmem:[#allocation32_spill] sm:$0xff] }
 0x1a8   : > { %vm777_vm4 = vcmp.eq.f32.partialorder %v4667_v23, 0.0  ;;  %v1125_v31 = vmul.f32 %v1124_v26, %v897_v59  ;;  %v1144_v19 = vmul.f32 %v4656_v8, %v1143_v51  ;;  %v1134_v42 = vsel %vm5117_vm2, %v6754_v39, %v1130_v61  ;;  %v6771_v59 = vld [vmem:[#allocation44_spill] sm:$0xff]  ;;  %v6773_v39 = vld [vmem:[#allocation29_spill] sm:$0xff]  ;;  %v6774_v23 = vld [vmem:[#allocation31_spill] sm:$0xff] }
 0x1a9   : > { %v1216_v17 = vmul.f32 %v1200_v63, %v848_v58  ;;  %v5138_v29 = vsel %vm777_vm4, %v778_v18, %v776_v15  ;;  %v1153_v25 = vor.u32 1.1754944e-38, %v1152_v2  ;;  %v899_v47 = vadd.f32 1.0, %v6771_v59  ;;  %v6777_v15 = vld [vmem:[#allocation41_spill] sm:$0xff] }
 0x1aa   : > { %3359 = vlog2.f32 %v1125_v31  ;;  %v1145_v58 = vadd.f32 %v4656_v8, %v1144_v19  ;;  %vm1151_vm6 = vcmp.eq.f32.partialorder %v1150_v38, 8.507059e+37  ;;  %v6772_v20 = vmax.f32 %v4986_v34, 1e-15 }
 0x1ab   : > { %3361 = vtanh.f32 %v1216_v17  ;;  %v898_v18 = vadd.f32 1.0, %v6774_v23  ;;  %v1082_v61 = vmul.f32 %v6776_v50, %v6775_v14  ;;  %v846_v36 = vmul.f32 %v6777_v15, %v814_v28 }
 0x1ac   : > { %v839_v4 = vmul.f32 %v6773_v39, %v6772_v20  ;;  %v1139_v56 = vsel %vm5083_vm13, %v1138_v53, %v1134_v42  ;;  %v817_v51 = vmax.f32 %v5138_v29, 1e-15  ;;  %v1149_v38 = vsel %vm5142_vm5, %v4656_v8, %v1145_v58  ;;  %v6782_v58 = vld [vmem:[#allocation24_spill] sm:$0xff]  ;;  %v6783_v20 = vld [vmem:[#allocation27_spill] sm:$0xff] }
 0x1ad   : > { %v5166_v63 = vmul.f32 %v4915_v33, %v748_v32  ;;  %3363 = vrcp.f32 %v816_v55  ;;  %v1154_v26 = vsel %vm1151_vm6, %v1153_v25, %v1149_v38  ;;  %v1083_v2 = vsub.f32 1.0, %v1082_v61 }
 0x1ae   : > { %v5172_v27 = vmul.f32 %v4848_v6, %v5062_v1  ;;  %v1198_v53 = vmul.f32 0.5, %v1177_v46  ;;  %v800_v8 = vsel %vm799_vm0, %v4856_v12, %v5057_v0  ;;  %v1155_v31 = vmul.f32 %v1154_v26, %v899_v47  ;;  %v1325_v6 = vpop.xlane.xlu2 %1324  ;;  %v6779_v1 = vld [vmem:[#allocation45_spill] sm:$0xff]  ;;  %v5185_v0 = vpop.xlane.xlu0 %1320 }
 0x1af   : > { %vm787_vm7 = vcmp.eq.f32.partialorder %v4814_v52, inf  ;;  %v1207_v33 = vmul.f32 %v4714_v11, %v839_v4  ;;  %v1245_v54 = vmul.f32 %v3354_v62, %v6778_v7  ;;  %v1140_v32 = vmul.f32 %v1139_v56, %v898_v18 }
 0x1b0   : > { %v1084_v55 = vmul.f32 %v6776_v50, %v1083_v2  ;;  %v3360_v19 = vpop.eup %3359  ;;  %v1214_v17 = vmul.f32 %v1198_v53, %v846_v36  ;;  %v849_v46 = vmul.f32 %v6779_v1, %v817_v51  ;;  %vm801_vm8 = vcmp.eq.f32.partialorder %v4856_v12, 0.0 }
 0x1b1   : > { %3365 = vlog2.f32 %v1155_v31  ;;  %v3362_v42 = vpop.eup %3361  ;;  %vm1341_vm9 = vcmp.eq.f32.partialorder %v5111_v40, 0.0  ;;  %v1183_v29 = vmul.f32 0.6931472, %v3360_v19  ;;  %v6780_v11 = vand.u32 2147483648, %v4856_v12 }
 0x1b2   : > { %vm1086_vm10 = vweird.f32 %v6775_v14  ;;  %vm1087_vm11 = vweird.f32 %v6776_v50  ;;  %v1248_v25 = vmul.f32 %v3362_v42, %v6781_v22  ;;  %v1090_v59 = vand.u32 2147483647, %v6775_v14 }
 0x1b3   : > { %v5189_v62 = vsel %vm801_vm8, %v6780_v11, %v800_v8  ;;  %v1092_v47 = vand.u32 2147483648, %v6775_v14  ;;  %v947_v39 = vmul.f32 %v6783_v20, %v6782_v58  ;;  %v3364_v4 = vpop.eup %3363  ;;  %vm643_vm12 = vcmp.eq.f32.partialorder %v4756_v44, inf  ;;  %vm5203_vm14 = vmor %vm1086_vm10, %vm1087_vm11 }
 0x1b4   : > { %vm1344_vm13 = vcmp.eq.f32.partialorder %v1325_v6, 0.0  ;;  %3367 = vlog2.f32 %v1140_v32  ;;  %v1201_v12 = vmul.f32 0.5, %v1183_v29  ;;  %v1085_v23 = vadd.f32 %v6776_v50, %v1084_v55 }
 0x1b5   : > { %v1277_v18 = vmul.f32 %v5075_v60, %v1245_v54  ;;  %3369 = vtanh.f32 %v1214_v17  ;;  %v1280_v61 = vmul.f32 %v3364_v4, %v1248_v25  ;;  %v948_v36 = vsub.f32 1.0, %v947_v39 }
 0x1b6   : > { %v1217_v56 = vmul.f32 %v1201_v12, %v849_v46  ;;  %v819_v38 = vmax.f32 %v5189_v62, 1e-15  ;;  %vm951_vm15 = vweird.f32 %v6782_v58  ;;  %vm952_vm0 = vweird.f32 %v6783_v20  ;;  %v6791_v46 = vld [vmem:[#allocation23_spill] sm:$0xff] }
 0x1b7   : > { %v3366_v26 = vpop.eup %3365  ;;  %vm645_vm1 = vcmp.eq.f32.partialorder %v4756_v44, 0.0  ;;  %v5211_v60 = vsel %vm1344_vm13, 0.0, %v1280_v61  ;;  %vm5213_vm2 = vcmp.eq.f32.partialorder %v1090_v59, 8.507059e+37  ;;  %v1093_v14 = vor.u32 1.1754944e-38, %v1092_v47  ;;  %vm5223_vm3 = vmor %vm951_vm15, %vm952_vm0  ;;  %v1327_v59 = vpop.xlane.xlu0 %1326  ;;  %v6793_v61 = vld [vmem:[#allocation15_spill] sm:$0xff] }
 0x1b8   : > { %v949_v53 = vmul.f32 %v6783_v20, %v948_v36  ;;  %3371 = vtanh.f32 %v1217_v56  ;;  %v1408_v8 = vmul.f32 %v5211_v60, %v5211_v60  ;;  %v1089_v31 = vsel %vm5203_vm14, %v6776_v50, %v1085_v23  ;;  %v6790_v50 = vld [vmem:[#allocation28_spill] sm:$0xff]  ;;  %v6796_v36 = vld [vmem:[#allocation17_spill] sm:$0xff] }
 0x1b9   : > { %v955_v54 = vand.u32 2147483647, %v6782_v58  ;;  %v788_v32 = vsel %vm787_vm7, %v4814_v52, %v4972_v24  ;;  %3373 = vrcp.f32 %v817_v51  ;;  %v957_v19 = vand.u32 2147483648, %v6782_v58 }
 0x1ba   : > { %v950_v55 = vadd.f32 %v6783_v20, %v949_v53  ;;  %v3368_v17 = vpop.eup %3367  ;;  %1436 = vadd.xlane.f32.xlu0 %v1408_v8  ;;  %v1187_v6 = vmul.f32 0.6931472, %v3366_v26  ;;  %v895_v1 = vadd.f32 1.0, %v6790_v50  ;;  %v886_v42 = vadd.f32 1.0, %v6791_v46 }
 0x1bb   : > { %vm956_vm4 = vcmp.eq.f32.partialorder %v955_v54, 8.507059e+37  ;;  %v3370_v29 = vpop.eup %3369  ;;  %vm789_vm5 = vcmp.eq.f32.partialorder %v4814_v52, 0.0  ;;  %v1094_v11 = vsel %vm5213_vm2, %v1093_v14, %v1089_v31  ;;  %v958_v51 = vor.u32 1.1754944e-38, %v957_v19  ;;  %v6797_v31 = vld [vmem:[#allocation37_spill] sm:$0xff] }
 0x1bc   : > { %v954_v24 = vsel %vm5223_vm3, %v6783_v20, %v950_v55  ;;  %3375 = vtanh.f32 %v1207_v33  ;;  %vm751_vm6 = vcmp.eq.f32.partialorder %v4875_v3, inf  ;;  %v6792_v22 = vand.u32 2147483648, %v4814_v52  ;;  %v6798_v55 = vld [vmem:[#allocation19_spill] sm:$0xff] }
 0x1bd   : > { %v851_v47 = vmul.f32 %v4650_v45, %v819_v38  ;;  %v644_v58 = vsel %vm643_vm12, %v4756_v44, %v4967_v43  ;;  %v750_v20 = vmul.f32 %v5166_v63, %v4875_v3  ;;  %v5258_v33 = vsel %vm1341_vm9, 0.0, %v1277_v18 }
 0x1be   : > { %v5245_v25 = vsel %vm789_vm5, %v6792_v22, %v788_v32  ;;  %v959_v52 = vsel %vm956_vm4, %v958_v51, %v954_v24  ;;  %v3372_v39 = vpop.eup %3371  ;;  %3377 = vrcp.f32 %v814_v28  ;;  %v1203_v4 = vmul.f32 0.5, %v1187_v6 }
 0x1bf   : > { %v1095_v12 = vmul.f32 %v1094_v11, %v895_v1  ;;  %v960_v45 = vmul.f32 %v959_v52, %v886_v42  ;;  %v3374_v23 = vpop.eup %3373  ;;  %3379 = vtanh.f32 %v5172_v27  ;;  %v818_v43 = vmax.f32 %v5245_v25, 1e-15  ;;  %v6801_v11 = vld [vmem:[#allocation25_spill] sm:$0xff] }
 0x1c0   : > { %v1249_v15 = vmul.f32 %v3372_v39, %v6793_v61  ;;  %vm1345_vm7 = vcmp.eq.f32.partialorder %v1327_v59, 0.0  ;;  %v1219_v63 = vmul.f32 %v1203_v4, %v851_v47  ;;  %v1405_v40 = vmul.f32 %v5258_v33, %v5258_v33 }
 0x1c1   : > { %v6794_v18 = vand.u32 2147483648, %v4756_v44  ;;  %3381 = vlog2.f32 %v960_v45  ;;  %v6795_v28 = vmax.f32 %v4986_v34, 1e-15  ;;  %v1246_v27 = vmul.f32 %v3370_v29, %v6796_v36 }
 0x1c2   : > { %v1281_v56 = vmul.f32 %v3374_v23, %v1249_v15  ;;  %v3376_v26 = vpop.eup %3375  ;;  %v754_v2 = vand.u32 2147483648, %v4875_v3  ;;  %v1185_v14 = vmul.f32 0.6931472, %v3368_v17  ;;  %1430 = vadd.xlane.f32.xlu0 %v1405_v40  ;;  %v752_v44 = vsel %vm751_vm6, %v4875_v3, %v750_v20  ;;  %v6803_v15 = vld [vmem:[#allocation21_spill] sm:$0xff] }
 0x1c3   : > { %v647_v41 = vsel %vm645_vm1, %v6794_v18, %v644_v58  ;;  %3383 = vrcp.f32 %v6795_v28  ;;  %vm753_vm8 = vcmp.eq.f32.partialorder %v4875_v3, 0.0  ;;  %vm1338_vm9 = vcmp.eq.f32.partialorder %v5042_v9, 0.0  ;;  %v6799_v9 = vld [vmem:[#allocation26_spill] sm:$0xff] }
 0x1c4   : > { %3385 = vlog2.f32 %v1095_v12  ;;  %v5275_v53 = vsel %vm1345_vm7, 0.0, %v1281_v56  ;;  %v806_v8 = vmax.f32 %v647_v41, 1e-15  ;;  %v3378_v34 = vpop.eup %3377  ;;  %v850_v7 = vmul.f32 %v6797_v31, %v818_v43  ;;  %v1331_v41 = vpop.xlane.xlu2 %1330 }
 0x1c5   : > { %v1409_v54 = vmul.f32 %v5275_v53, %v5275_v53  ;;  %3387 = vtanh.f32 %v1219_v63  ;;  %v3380_v32 = vpop.eup %3379  ;;  %v1239_v19 = vmul.f32 %v3376_v26, %v6798_v55  ;;  %v5289_v17 = vsel %vm1338_vm9, 0.0, %v4902_v5  ;;  %v6802_v5 = vld [vmem:[#allocation20_spill] sm:$0xff] }
 0x1c6   : > { %3389 = vrcp.f32 %v811_v13  ;;  %v1278_v6 = vmul.f32 %v3378_v34, %v1246_v27  ;;  %v6800_v1 = vmax.f32 %v6799_v9, 1e-15  ;;  %v1202_v46 = vmul.f32 0.5, %v1185_v14  ;;  %v6804_v26 = vld [vmem:[#allocation16_spill] sm:$0xff] }
 0x1c7   : > { %v3382_v50 = vpop.eup %3381  ;;  %1438 = vadd.xlane.f32.xlu1 %v1409_v54  ;;  %v755_v42 = vsel %vm753_vm8, %v754_v2, %v752_v44  ;;  %v838_v24 = vmul.f32 %v6801_v11, %v806_v8  ;;  %v1243_v59 = vmul.f32 %v3380_v32, %v6802_v5  ;;  %vm1342_vm10 = vcmp.eq.f32.partialorder %v5185_v0, 0.0 }
 0x1c8   : > { %3391 = vrcp.f32 %v6800_v1  ;;  %v1161_v51 = vmul.f32 0.6931472, %v3382_v50  ;;  %v1218_v16 = vmul.f32 %v1202_v46, %v850_v7  ;;  %v1402_v13 = vmul.f32 %v5289_v17, %v5289_v17  ;;  %v1329_v7 = vpop.xlane.xlu1 %1328  ;;  %v6806_v50 = vld [vmem:[#allocation22_spill] sm:$0xff] }
 0x1c9   : > { %v3384_v29 = vpop.eup %3383  ;;  %v5302_v58 = vsel %vm1342_vm10, 0.0, %v1278_v6  ;;  %v815_v20 = vmax.f32 %v755_v42, 1e-15  ;;  %3393 = vrcp.f32 %v819_v38  ;;  %vm1335_vm11 = vcmp.eq.f32.partialorder %v4974_v48, 0.0 }
 0x1ca   : > { %v3386_v22 = vpop.eup %3385  ;;  %v1271_v47 = vmul.f32 %v3384_v29, %v1239_v19  ;;  %v1190_v52 = vmul.f32 0.5, %v1161_v51  ;;  %1424 = vadd.xlane.f32.xlu0 %v1402_v13  ;;  %3395 = vtanh.f32 %v1218_v16  ;;  %v1406_v23 = vmul.f32 %v5302_v58, %v5302_v58 }
 0x1cb   : > { %v3388_v3 = vpop.eup %3387  ;;  %v1179_v4 = vmul.f32 0.6931472, %v3386_v22  ;;  %vm1339_vm12 = vcmp.eq.f32.partialorder %v5126_v49, 0.0  ;;  %vm1347_vm13 = vcmp.eq.f32.partialorder %v1331_v41, 0.0  ;;  %vm1334_vm14 = vcmp.eq.f32.partialorder %v4712_v57, 0.0 }
 0x1cc   : > { %v3390_v39 = vpop.eup %3389  ;;  %v1206_v12 = vmul.f32 %v1190_v52, %v838_v24  ;;  %v5309_v61 = vsel %vm1335_vm11, 0.0, %v1271_v47  ;;  %v1251_v63 = vmul.f32 %v3388_v3, %v6803_v15  ;;  %vm1346_vm15 = vcmp.eq.f32.partialorder %v1329_v7, 0.0 }
 0x1cd   : > { %v1275_v0 = vmul.f32 %v3390_v39, %v1243_v59  ;;  %v1199_v62 = vmul.f32 0.5, %v1179_v4  ;;  %v1399_v48 = vmul.f32 %v5309_v61, %v5309_v61 }
 0x1ce   : > { %v3392_v45 = vpop.eup %3391  ;;  %3397 = vtanh.f32 %v1206_v12 }
 0x1cf   : > { %v847_v40 = vmul.f32 %v3392_v45, %v815_v20  ;;  %1432 = vadd.xlane.f32.xlu1 %v1406_v23  ;;  %3399 = vrcp.f32 %v806_v8  ;;  %v3394_v38 = vpop.eup %3393  ;;  %v5315_v18 = vsel %vm1339_vm12, 0.0, %v1275_v0  ;;  %v6805_v8 = vld [vmem:[#allocation18_spill] sm:$0xff] }
 0x1d0   : > { %v1283_v28 = vmul.f32 %v3394_v38, %v1251_v63  ;;  %v3396_v27 = vpop.eup %3395  ;;  %3401 = vrcp.f32 %v818_v43  ;;  %v1403_v49 = vmul.f32 %v5315_v18, %v5315_v18  ;;  %v1323_v46 = vpop.xlane.xlu1 %1322 }
 0x1d1   : > { %v1215_v36 = vmul.f32 %v1199_v62, %v847_v40  ;;  %v1250_v34 = vmul.f32 %v3396_v27, %v6805_v8  ;;  %vm1343_vm0 = vcmp.eq.f32.partialorder %v1323_v46, 0.0  ;;  %v5357_v8 = vld [vmem:[%s6631_s2] ss:$0 sm:$0xff] }
 0x1d2   : > { %1418 = vadd.xlane.f32.xlu0 %v1399_v48  ;;  %v5322_v44 = vsel %vm1347_vm13, 0.0, %v1283_v28 }
 0x1d3   : > { %3403 = vtanh.f32 %v1215_v36  ;;  %v1411_v25 = vmul.f32 %v5322_v44, %v5322_v44 }
 0x1d4   : > { %v3398_v56 = vpop.eup %3397  ;;  %3405 = vrcp.f32 %v815_v20 }
 0x1d5   : > { %v1238_v2 = vmul.f32 %v3398_v56, %v6804_v26  ;;  %v3400_v14 = vpop.eup %3399 }
 0x1d6   : > { %v3402_v43 = vpop.eup %3401 }
 0x1d7   : > { %v1270_v31 = vmul.f32 %v3400_v14, %v1238_v2  ;;  %1426 = vadd.xlane.f32.xlu1 %v1403_v49  ;;  %v1282_v55 = vmul.f32 %v3402_v43, %v1250_v34 }
 0x1d8   : > { %v5341_v24 = vpop.xlane.xlu1 %1815 }
 0x1d9   : > { %v5326_v54 = vsel %vm1334_vm14, 0.0, %v1270_v31  ;;  %v3404_v19 = vpop.eup %3403  ;;  %v5332_v6 = vsel %vm1346_vm15, 0.0, %v1282_v55 }
 0x1da   : > { %v1398_v32 = vmul.f32 %v5326_v54, %v5326_v54  ;;  %1442 = vadd.xlane.f32.xlu0 %v1411_v25  ;;  %v1247_v57 = vmul.f32 %v3404_v19, %v6806_v50  ;;  %v3406_v9 = vpop.eup %3405  ;;  %v1410_v1 = vmul.f32 %v5332_v6, %v5332_v6 }
 0x1dc   : > { %1416 = vadd.xlane.f32.xlu2 %v1398_v32  ;;  %v1279_v42 = vmul.f32 %v3406_v9, %v1247_v57 }
 0x1de   : > { %v5337_v29 = vsel %vm1343_vm0, 0.0, %v1279_v42 }
 0x1df   : > { %v1407_v11 = vmul.f32 %v5337_v29, %v5337_v29 }
 0x1e1   : > { %v1421_v51 = vpop.xlane.xlu1 %1420 }
 0x1e2   : > { %3407 = vrsqrt.f32 %v1421_v51  ;;  %vm1499_vm1 = vcmp.eq.f32.partialorder %v1421_v51, inf  ;;  %v1502_v15 = vand.u32 2147483648, %v1421_v51  ;;  %vm1501_vm2 = vcmp.eq.f32.partialorder %v1421_v51, 0.0 }
 0x1e3   : > { %v1413_v22 = vpop.xlane.xlu0 %1412 }
 0x1e4   : > { %1440 = vadd.xlane.f32.xlu2 %v1410_v1  ;;  %3409 = vrsqrt.f32 %v1413_v22  ;;  %vm1451_vm3 = vcmp.eq.f32.partialorder %v1413_v22, inf  ;;  %v1454_v62 = vand.u32 2147483648, %v1413_v22  ;;  %vm1453_vm4 = vcmp.eq.f32.partialorder %v1413_v22, 0.0 }
 0x1e8   : > { %v3408_v5 = vpop.eup %3407 }
 0x1e9   : > { %v1493_v16 = vmul.f32 %v3408_v5, %v1421_v51 }
 0x1ea   : > { %v3410_v59 = vpop.eup %3409 }
 0x1eb   : > { %v1445_v13 = vmul.f32 %v3410_v59, %v1413_v22  ;;  %v1494_v47 = vmul.f32 %v3408_v5, %v1493_v16 }
 0x1ec   : > { %1434 = vadd.xlane.f32.xlu2 %v1407_v11 }
 0x1ed   : > { %v1446_v20 = vmul.f32 %v3410_v59, %v1445_v13  ;;  %v1495_v52 = vmul.f32 0.5, %v1494_v47 }
 0x1ef   : > { %v1447_v3 = vmul.f32 0.5, %v1446_v20  ;;  %v1496_v39 = vsub.f32 1.5, %v1495_v52 }
 0x1f1   : > { %v1448_v4 = vsub.f32 1.5, %v1447_v3  ;;  %v1497_v45 = vmul.f32 %v3408_v5, %v1496_v39 }
 0x1f3   : > { %v1449_v0 = vmul.f32 %v3410_v59, %v1448_v4  ;;  %v1498_v23 = vmul.f32 %v1497_v45, %v1421_v51 }
 0x1f4   : > { %v5345_v27 = vpop.xlane.xlu1 %1414 }
 0x1f5   : > { %v1450_v63 = vmul.f32 %v1449_v0, %v1413_v22  ;;  %v1500_v40 = vsel %vm1499_vm1, %v1421_v51, %v1498_v23  ;;  %vm1463_vm13 = vcmp.eq.f32.partialorder %v5345_v27, inf  ;;  %vm1465_vm14 = vcmp.eq.f32.partialorder %v5345_v27, 0.0 }
 0x1f6   : > { %v1503_v38 = vsel %vm1501_vm2, %v1502_v15, %v1500_v40 }
 0x1f7   : > { %v1452_v48 = vsel %vm1451_vm3, %v1413_v22, %v1450_v63  ;;  %v1640_v41 = vmax.f32 %v1503_v38, 1e-15 }
 0x1f8   : > { %v1455_v28 = vsel %vm1453_vm4, %v1454_v62, %v1452_v48 }
 0x1f9   : > { %v1636_v36 = vmax.f32 %v1455_v28, 1e-15  ;;  %3411 = vrcp.f32 %v1640_v41  ;;  %vm1704_vm5 = vcmp.gt.f32.partialorder %v1640_v41, 0.996 }
 0x1fb   : > { %3413 = vrcp.f32 %v1636_v36  ;;  %vm1700_vm6 = vcmp.gt.f32.partialorder %v1636_v36, 0.996 }
 0x1ff   : > { %v3412_v2 = vpop.eup %3411 }
 0x200   : > { %v1672_v14 = vmul.f32 0.996, %v3412_v2 }
 0x201   : > { %v3414_v49 = vpop.eup %3413 }
 0x202   : > { %v1668_v34 = vmul.f32 0.996, %v3414_v49  ;;  %v1688_v31 = vmul.f32 %v1672_v14, %v4761_v21 }
 0x204   : > { %v1684_v43 = vmul.f32 %v1668_v34, %v4782_v30  ;;  %v5365_v55 = vsel %vm1704_vm5, %v1688_v31, %v4761_v21 }
 0x205   : > { %v1824_v19 = vmul.f32 %v5357_v8, %v5365_v55  ;;  %v1768_v50 = vmul.f32 %v5365_v55, %v5365_v55 }
 0x206   : > { %v5372_v57 = vsel %vm1700_vm6, %v1684_v43, %v4782_v30 }
 0x207   : > { %v1820_v21 = vmul.f32 %v5357_v8, %v5372_v57  ;;  %1844 = vadd.xlane.f32.xlu0 %v1824_v19  ;;  %1788 = vadd.xlane.f32.xlu1 %v1768_v50  ;;  %v1764_v13 = vmul.f32 %v5372_v57, %v5372_v57 }
 0x209   : > { %1836 = vadd.xlane.f32.xlu2 %v1820_v21 }
 0x20f   : > { %1780 = vadd.xlane.f32.xlu0 %v1764_v13 }
 0x211   : > { %v5343_v12 = vpop.xlane.xlu2 %1428 }
 0x212   : > { %3415 = vrsqrt.f32 %v5343_v12  ;;  %vm1547_vm7 = vcmp.eq.f32.partialorder %v5343_v12, inf  ;;  %vm1549_vm8 = vcmp.eq.f32.partialorder %v5343_v12, 0.0 }
 0x218   : > { %v3416_v7 = vpop.eup %3415 }
 0x219   : > { %v5347_v56 = vpop.xlane.xlu2 %1422  ;;  %v1541_v1 = vmul.f32 %v3416_v7, %v5343_v12 }
 0x21a   : > { %3417 = vrsqrt.f32 %v5347_v56  ;;  %vm1511_vm9 = vcmp.eq.f32.partialorder %v5347_v56, inf  ;;  %vm1513_vm10 = vcmp.eq.f32.partialorder %v5347_v56, 0.0 }
 0x21b   : > { %3419 = vrsqrt.f32 %v5345_v27  ;;  %v1542_v51 = vmul.f32 %v3416_v7, %v1541_v1 }
 0x21d   : > { %v1543_v20 = vmul.f32 0.5, %v1542_v51 }
 0x21f   : > { %v1544_v15 = vsub.f32 1.5, %v1543_v20 }
 0x220   : > { %v3418_v32 = vpop.eup %3417 }
 0x221   : > { %v5374_v9 = vpop.eup %3419  ;;  %v1505_v11 = vmul.f32 %v3418_v32, %v5347_v56  ;;  %v1545_v34 = vmul.f32 %v3416_v7, %v1544_v15 }
 0x222   : > { %v1457_v30 = vmul.f32 %v5374_v9, %v5345_v27 }
 0x223   : > { %v1506_v5 = vmul.f32 %v3418_v32, %v1505_v11  ;;  %v1546_v21 = vmul.f32 %v1545_v34, %v5343_v12  ;;  %v1550_v11 = vand.u32 2147483648, %v5343_v12 }
 0x224   : > { %v1458_v47 = vmul.f32 %v5374_v9, %v1457_v30 }
 0x225   : > { %v1507_v39 = vmul.f32 0.5, %v1506_v5 }
 0x226   : > { %v1459_v23 = vmul.f32 0.5, %v1458_v47 }
 0x227   : > { %v1508_v40 = vsub.f32 1.5, %v1507_v39 }
 0x228   : > { %v1460_v36 = vsub.f32 1.5, %v1459_v23 }
 0x229   : > { %v1509_v19 = vmul.f32 %v3418_v32, %v1508_v40  ;;  %v1548_v32 = vsel %vm1547_vm7, %v5343_v12, %v1546_v21 }
 0x22a   : > { %v1551_v47 = vsel %vm1549_vm8, %v1550_v11, %v1548_v32  ;;  %v1466_v32 = vand.u32 2147483648, %v5345_v27 }
 0x22b   : > { %v1510_v30 = vmul.f32 %v1509_v19, %v5347_v56 }
 0x22d   : > { %v5349_v26 = vpop.xlane.xlu0 %1436  ;;  %v1512_v20 = vsel %vm1511_vm9, %v5347_v56, %v1510_v30 }
 0x22e   : > { %3421 = vrsqrt.f32 %v5349_v26  ;;  %vm1595_vm11 = vcmp.eq.f32.partialorder %v5349_v26, inf  ;;  %vm1597_vm12 = vcmp.eq.f32.partialorder %v5349_v26, 0.0 }
 0x234   : > { %v3422_v42 = vpop.eup %3421 }
 0x235   : > { %v5380_v46 = vpop.xlane.xlu0 %1430  ;;  %v1589_v22 = vmul.f32 %v3422_v42, %v5349_v26 }
 0x237   : > { %v1590_v52 = vmul.f32 %v3422_v42, %v1589_v22  ;;  %v1514_v22 = vand.u32 2147483648, %v5347_v56 }
 0x239   : > { %v1591_v63 = vmul.f32 0.5, %v1590_v52  ;;  %v1644_v52 = vmax.f32 %v1551_v47, 1e-15  ;;  %v1515_v39 = vsel %vm1513_vm10, %v1514_v22, %v1512_v20  ;;  %vm1559_vm10 = vcmp.eq.f32.partialorder %v5380_v46, inf }
 0x23a   : > { %v5361_v25 = vpop.xlane.xlu1 %1438  ;;  %v1641_v15 = vmax.f32 %v1515_v39, 1e-15 }
 0x23b   : > { %3423 = vrsqrt.f32 %v5361_v25  ;;  %v1592_v2 = vsub.f32 1.5, %v1591_v63  ;;  %v1461_v63 = vmul.f32 %v5374_v9, %v1460_v36  ;;  %vm5479_vm15 = vcmp.gt.f32.partialorder %v1644_v52, 0.996 }
 0x23c   : > { %3425 = vrsqrt.f32 %v5380_v46  ;;  %vm5487_vm0 = vcmp.gt.f32.partialorder %v1641_v15, 0.996  ;;  %vm1607_vm3 = vcmp.eq.f32.partialorder %v5361_v25, inf  ;;  %vm1609_vm5 = vcmp.eq.f32.partialorder %v5361_v25, 0.0 }
 0x23d   : > { %v5395_v3 = vpop.xlane.xlu0 %1424  ;;  %v1593_v5 = vmul.f32 %v3422_v42, %v1592_v2  ;;  %v1598_v42 = vand.u32 2147483648, %v5349_v26 }
 0x241   : > { %v5389_v16 = vpop.eup %3423 }
 0x242   : > { %v5387_v59 = vpop.xlane.xlu1 %1432  ;;  %v1601_v4 = vmul.f32 %v5389_v16, %v5361_v25  ;;  %v5400_v45 = vpop.eup %3425 }
 0x243   : > { %3427 = vrsqrt.f32 %v5387_v59  ;;  %v1553_v38 = vmul.f32 %v5400_v45, %v5380_v46 }
 0x244   : > { %3429 = vrsqrt.f32 %v5395_v3  ;;  %v1602_v62 = vmul.f32 %v5389_v16, %v1601_v4  ;;  %v1594_v4 = vmul.f32 %v1593_v5, %v5349_v26 }
 0x245   : > { %v5416_v14 = vpop.xlane.xlu0 %1418  ;;  %v1554_v43 = vmul.f32 %v5400_v45, %v1553_v38 }
 0x246   : > { %v5418_v31 = vmul.f32 0.5, %v1602_v62  ;;  %v1596_v62 = vsel %vm1595_vm11, %v5349_v26, %v1594_v4  ;;  %vm1561_vm11 = vcmp.eq.f32.partialorder %v5380_v46, 0.0 }
 0x247   : > { %v5456_v2 = vmul.f32 0.5, %v1554_v43  ;;  %v1462_v43 = vmul.f32 %v1461_v63, %v5345_v27 }
 0x248   : > { %v1604_v21 = vsub.f32 1.5, %v5418_v31 }
 0x249   : > { %v5402_v0 = vpop.eup %3427  ;;  %v1556_v30 = vsub.f32 1.5, %v5456_v2 }
 0x24a   : > { %v5407_v48 = vpop.xlane.xlu1 %1426  ;;  %v1565_v41 = vmul.f32 %v5402_v0, %v5387_v59  ;;  %v5412_v28 = vpop.eup %3429 }
 0x24b   : > { %3431 = vrsqrt.f32 %v5407_v48  ;;  %v1517_v49 = vmul.f32 %v5412_v28, %v5395_v3 }
 0x24c   : > { %3433 = vrsqrt.f32 %v5416_v14  ;;  %v1566_v1 = vmul.f32 %v5402_v0, %v1565_v41 }
 0x24d   : > { %v1518_v7 = vmul.f32 %v5412_v28, %v1517_v49  ;;  %v5450_v56 = vpop.xlane.xlu0 %1442  ;;  %v1599_v49 = vsel %vm1597_vm12, %v1598_v42, %v1596_v62  ;;  %vm1571_vm12 = vcmp.eq.f32.partialorder %v5387_v59, inf }
 0x24e   : > { %v5454_v41 = vmul.f32 0.5, %v1566_v1  ;;  %v1648_v19 = vmax.f32 %v1599_v49, 1e-15 }
 0x24f   : > { %v5422_v50 = vpop.xlane.xlu2 %1416  ;;  %v5462_v34 = vmul.f32 0.5, %v1518_v7  ;;  %v1464_v7 = vsel %vm1463_vm13, %v5345_v27, %v1462_v43  ;;  %vm1573_vm13 = vcmp.eq.f32.partialorder %v5387_v59, 0.0 }
 0x250   : > { %3435 = vrsqrt.f32 %v5422_v50  ;;  %v1568_v5 = vsub.f32 1.5, %v5454_v41  ;;  %v1467_v4 = vsel %vm1465_vm14, %v1466_v32, %v1464_v7  ;;  %vm5496_vm1 = vcmp.gt.f32.partialorder %v1648_v19, 0.996 }
 0x251   : > { %v5432_v51 = vpop.eup %3431  ;;  %3437 = vrcp.f32 %v1644_v52  ;;  %v1637_v27 = vmax.f32 %v1467_v4, 1e-15  ;;  %vm1475_vm2 = vcmp.eq.f32.partialorder %v5422_v50, inf  ;;  %vm1477_vm4 = vcmp.eq.f32.partialorder %v5422_v50, 0.0 }
 0x252   : > { %v1529_v13 = vmul.f32 %v5432_v51, %v5407_v48  ;;  %v5443_v12 = vpop.eup %3433  ;;  %3439 = vrsqrt.f32 %v5450_v56  ;;  %vm1523_vm14 = vcmp.eq.f32.partialorder %v5395_v3, inf }
 0x253   : > { %v1481_v40 = vmul.f32 %v5443_v12, %v5416_v14  ;;  %3441 = vrcp.f32 %v1641_v15  ;;  %vm5539_vm6 = vcmp.gt.f32.partialorder %v1637_v27, 0.996 }
 0x254   : > { %v1530_v23 = vmul.f32 %v5432_v51, %v1529_v13  ;;  %v1520_v13 = vsub.f32 1.5, %v5462_v34 }
 0x255   : > { %v1482_v11 = vmul.f32 %v5443_v12, %v1481_v40 }
 0x256   : > { %v3436_v38 = vpop.eup %3435  ;;  %v5466_v26 = vmul.f32 0.5, %v1530_v23  ;;  %v1605_v23 = vmul.f32 %v5389_v16, %v1604_v21  ;;  %v1521_v41 = vmul.f32 %v5412_v28, %v1520_v13 }
 0x257   : > { %v1469_v9 = vmul.f32 %v3436_v38, %v5422_v50  ;;  %v5460_v36 = vpop.xlane.xlu2 %1440  ;;  %v3438_v22 = vpop.eup %3437  ;;  %v5485_v40 = vmul.f32 0.5, %v1482_v11 }
 0x258   : > { %3443 = vrsqrt.f32 %v5460_v36  ;;  %v5477_v47 = vpop.eup %3439  ;;  %v1676_v20 = vmul.f32 0.996, %v3438_v22  ;;  %v1532_v63 = vsub.f32 1.5, %v5466_v26  ;;  %vm1619_vm7 = vcmp.eq.f32.partialorder %v5460_v36, inf }
 0x259   : > { %v1470_v1 = vmul.f32 %v3436_v38, %v1469_v9  ;;  %3445 = vrcp.f32 %v1648_v19  ;;  %v3442_v42 = vpop.eup %3441  ;;  %vm1621_vm8 = vcmp.eq.f32.partialorder %v5460_v36, 0.0  ;;  %v1522_v13 = vmul.f32 %v1521_v41, %v5395_v3 }
 0x25a   : > { %v1692_v52 = vmul.f32 %v1676_v20, %v5034_v10  ;;  %v1673_v43 = vmul.f32 0.996, %v3442_v42  ;;  %3447 = vrcp.f32 %v1637_v27  ;;  %v1625_v20 = vmul.f32 %v5477_v47, %v5450_v56 }
 0x25b   : > { %v1471_v31 = vmul.f32 0.5, %v1470_v1  ;;  %v1606_v1 = vmul.f32 %v1605_v23, %v5361_v25 }
 0x25c   : > { %v5505_v15 = vsel %vm5479_vm15, %v1692_v52, %v5034_v10  ;;  %v1689_v32 = vmul.f32 %v1673_v43, %v5067_v37  ;;  %v1610_v10 = vand.u32 2147483648, %v5361_v25  ;;  %v1478_v52 = vand.u32 2147483648, %v5422_v50 }
 0x25d   : > { %v1472_v9 = vsub.f32 1.5, %v1471_v31  ;;  %v1828_v19 = vmul.f32 %v5357_v8, %v5505_v15  ;;  %v1608_v42 = vsel %vm1607_vm3, %v5361_v25, %v1606_v1 }
 0x25e   : > { %v3444_v49 = vpop.eup %3443  ;;  %v5522_v43 = vsel %vm5487_vm0, %v1689_v32, %v5067_v37  ;;  %v1611_v1 = vsel %vm1609_vm5, %v1610_v10, %v1608_v42  ;;  %v5537_v37 = vmul.f32 %v5477_v47, %v1625_v20  ;;  %v1557_v10 = vmul.f32 %v5400_v45, %v1556_v30 }
 0x25f   : > { %v3446_v7 = vpop.eup %3445  ;;  %v1613_v16 = vmul.f32 %v3444_v49, %v5460_v36  ;;  %v5494_v21 = vpop.xlane.xlu2 %1434  ;;  %v1473_v23 = vmul.f32 %v3436_v38, %v1472_v9  ;;  %1852 = vadd.xlane.f32.xlu1 %v1828_v19  ;;  %v1622_v30 = vand.u32 2147483648, %v5460_v36  ;;  %v1524_v45 = vsel %vm1523_vm14, %v5395_v3, %v1522_v13 }
 0x260   : > { %3449 = vrsqrt.f32 %v5494_v21  ;;  %v1680_v22 = vmul.f32 0.996, %v3446_v7  ;;  %v3448_v7 = vpop.eup %3447  ;;  %vm1525_vm0 = vcmp.eq.f32.partialorder %v5395_v3, 0.0  ;;  %vm1583_vm5 = vcmp.eq.f32.partialorder %v5494_v21, inf }
 0x261   : > { %v1614_v31 = vmul.f32 %v3444_v49, %v1613_v16  ;;  %v1474_v9 = vmul.f32 %v1473_v23, %v5422_v50  ;;  %v1669_v11 = vmul.f32 0.996, %v3448_v7  ;;  %v1569_v7 = vmul.f32 %v5402_v0, %v1568_v5 }
 0x262   : > { %v1696_v4 = vmul.f32 %v1680_v22, %v5211_v60  ;;  %v1574_v0 = vand.u32 2147483648, %v5387_v59 }
 0x263   : > { %v1615_v39 = vmul.f32 0.5, %v1614_v31  ;;  %v1649_v31 = vmax.f32 %v1611_v1, 1e-15  ;;  %v1476_v32 = vsel %vm1475_vm2, %v5422_v50, %v1474_v9  ;;  %v1685_v27 = vmul.f32 %v1669_v11, %v4866_v35 }
 0x264   : > { %v5527_v38 = vsel %vm5496_vm1, %v1696_v4, %v5211_v60  ;;  %v1825_v4 = vmul.f32 %v5357_v8, %v5522_v43  ;;  %v1479_v20 = vsel %vm1477_vm4, %v1478_v52, %v1476_v32  ;;  %v1772_v9 = vmul.f32 %v5505_v15, %v5505_v15 }
 0x265   : > { %v1616_v16 = vsub.f32 1.5, %v1615_v39  ;;  %v1832_v22 = vmul.f32 %v5357_v8, %v5527_v38  ;;  %v1776_v25 = vmul.f32 %v5527_v38, %v5527_v38  ;;  %3451 = vrcp.f32 %v1649_v31 }
 0x266   : > { %v5534_v62 = vpop.eup %3449  ;;  %v1638_v23 = vmax.f32 %v1479_v20, 1e-15  ;;  %v1769_v1 = vmul.f32 %v5522_v43, %v5522_v43  ;;  %v5565_v50 = vsel %vm5539_vm6, %v1685_v27, %v4866_v35  ;;  %vm5569_vm9 = vcmp.gt.f32.partialorder %v1649_v31, 0.996 }
 0x267   : > { %v1577_v19 = vmul.f32 %v5534_v62, %v5494_v21  ;;  %1860 = vadd.xlane.f32.xlu2 %v1832_v22  ;;  %1804 = vadd.xlane.f32.xlu0 %v1776_v25  ;;  %v1617_v42 = vmul.f32 %v3444_v49, %v1616_v16  ;;  %v1558_v49 = vmul.f32 %v1557_v10, %v5380_v46  ;;  %v1562_v35 = vand.u32 2147483648, %v5380_v46 }
 0x268   : > { %3453 = vrcp.f32 %v1638_v23  ;;  %1846 = vadd.xlane.f32.xlu1 %v1825_v4  ;;  %v1821_v25 = vmul.f32 %v5357_v8, %v5565_v50  ;;  %v1765_v27 = vmul.f32 %v5565_v50, %v5565_v50  ;;  %vm1702_vm15 = vcmp.gt.f32.partialorder %v1638_v23, 0.996 }
 0x269   : > { %v1578_v39 = vmul.f32 %v5534_v62, %v1577_v19  ;;  %v1618_v2 = vmul.f32 %v1617_v42, %v5460_v36  ;;  %v1560_v11 = vsel %vm1559_vm10, %v5380_v46, %v1558_v49  ;;  %vm1535_vm1 = vcmp.eq.f32.partialorder %v5407_v48, inf }
 0x26a   : > { %v1563_v19 = vsel %vm1561_vm11, %v1562_v35, %v1560_v11  ;;  %vm1537_vm2 = vcmp.eq.f32.partialorder %v5407_v48, 0.0  ;;  %vm1585_vm6 = vcmp.eq.f32.partialorder %v5494_v21, 0.0  ;;  %vm1631_vm11 = vcmp.eq.f32.partialorder %v5450_v56, inf }
 0x26b   : > { %v1620_v52 = vsel %vm1619_vm7, %v5460_v36, %v1618_v2  ;;  %v3452_v16 = vpop.eup %3451  ;;  %v1579_v22 = vmul.f32 0.5, %v1578_v39  ;;  %v1570_v36 = vmul.f32 %v1569_v7, %v5387_v59  ;;  %v1645_v4 = vmax.f32 %v1563_v19, 1e-15 }
 0x26c   : > { %v1623_v31 = vsel %vm1621_vm8, %v1622_v30, %v1620_v52  ;;  %v1681_v60 = vmul.f32 0.996, %v3452_v16  ;;  %v1533_v2 = vmul.f32 %v5432_v51, %v1532_v63  ;;  %v1538_v63 = vand.u32 2147483648, %v5407_v48 }
 0x26d   : > { %v1650_v32 = vmax.f32 %v1623_v31, 1e-15  ;;  %v1572_v46 = vsel %vm1571_vm12, %v5387_v59, %v1570_v36  ;;  %v1580_v39 = vsub.f32 1.5, %v1579_v22  ;;  %v1484_v16 = vsub.f32 1.5, %v5485_v40 }
 0x26e   : > { %v3454_v5 = vpop.eup %3453  ;;  %v1697_v20 = vmul.f32 %v1681_v60, %v5275_v53  ;;  %v5596_v10 = vsel %vm1573_vm13, %v1574_v0, %v1572_v46  ;;  %v1534_v49 = vmul.f32 %v1533_v2, %v5407_v48  ;;  %vm1709_vm4 = vcmp.gt.f32.partialorder %v1645_v4, 0.996 }
 0x26f   : > { %1796 = vadd.xlane.f32.xlu2 %v1772_v9  ;;  %1838 = vadd.xlane.f32.xlu0 %v1821_v25  ;;  %3455 = vrcp.f32 %v1650_v32  ;;  %v1670_v42 = vmul.f32 0.996, %v3454_v5  ;;  %v1646_v34 = vmax.f32 %v5596_v10, 1e-15  ;;  %v1526_v9 = vand.u32 2147483648, %v5395_v3 }
 0x270   : > { %3457 = vrcp.f32 %v1645_v4  ;;  %v5601_v28 = vsel %vm5569_vm9, %v1697_v20, %v5275_v53  ;;  %1782 = vadd.xlane.f32.xlu1 %v1765_v27  ;;  %v1581_v23 = vmul.f32 %v5534_v62, %v1580_v39  ;;  %v1536_v7 = vsel %vm1535_vm1, %v5407_v48, %v1534_v49 }
 0x271   : > { %v1686_v59 = vmul.f32 %v1670_v42, %v5326_v54  ;;  %v1833_v53 = vmul.f32 %v5357_v8, %v5601_v28  ;;  %3459 = vrcp.f32 %v1646_v34  ;;  %v1527_v30 = vsel %vm1525_vm0, %v1526_v9, %v1524_v45 }
 0x272   : > { %v1642_v51 = vmax.f32 %v1527_v30, 1e-15  ;;  %v5627_v25 = vsel %vm1537_vm2, %v1538_v63, %v1536_v7  ;;  %v1582_v62 = vmul.f32 %v1581_v23, %v5494_v21  ;;  %vm1714_vm3 = vcmp.gt.f32.partialorder %v1650_v32, 0.996 }
 0x273   : > { %v5620_v26 = vsel %vm1702_vm15, %v1686_v59, %v5326_v54  ;;  %v1643_v31 = vmax.f32 %v5627_v25, 1e-15  ;;  %v1586_v40 = vand.u32 2147483648, %v5494_v21  ;;  %vm1487_vm7 = vcmp.eq.f32.partialorder %v5416_v14, inf }
 0x274   : > { %3461 = vrcp.f32 %v1642_v51  ;;  %v1822_v54 = vmul.f32 %v5357_v8, %v5620_v26  ;;  %v1584_v36 = vsel %vm1583_vm5, %v5494_v21, %v1582_v62  ;;  %v1490_v27 = vand.u32 2147483648, %v5416_v14 }
 0x275   : > { %v3456_v52 = vpop.eup %3455  ;;  %3463 = vrcp.f32 %v1643_v31  ;;  %v1587_v4 = vsel %vm1585_vm6, %v1586_v40, %v1584_v36  ;;  %vm1489_vm8 = vcmp.eq.f32.partialorder %v5416_v14, 0.0  ;;  %vm1706_vm9 = vcmp.gt.f32.partialorder %v1642_v51, 0.996 }
 0x276   : > { %v3458_v35 = vpop.eup %3457  ;;  %v1682_v3 = vmul.f32 0.996, %v3456_v52  ;;  %v1647_v46 = vmax.f32 %v1587_v4, 1e-15  ;;  %vm1710_vm10 = vcmp.gt.f32.partialorder %v1646_v34, 0.996  ;;  %v1766_v7 = vmul.f32 %v5620_v26, %v5620_v26 }
 0x277   : > { %1790 = vadd.xlane.f32.xlu2 %v1769_v1  ;;  %1862 = vadd.xlane.f32.xlu0 %v1833_v53  ;;  %v1677_v22 = vmul.f32 0.996, %v3458_v35  ;;  %v1627_v1 = vmul.f32 0.5, %v5537_v37  ;;  %v3460_v48 = vpop.eup %3459  ;;  %v1485_v37 = vmul.f32 %v5443_v12, %v1484_v16  ;;  %vm1633_vm12 = vcmp.eq.f32.partialorder %v5450_v56, 0.0 }
 0x278   : > { %v1698_v11 = vmul.f32 %v1682_v3, %v5332_v6  ;;  %1840 = vadd.xlane.f32.xlu1 %v1822_v54  ;;  %v1678_v5 = vmul.f32 0.996, %v3460_v48  ;;  %3465 = vrcp.f32 %v1647_v46  ;;  %vm1707_vm13 = vcmp.gt.f32.partialorder %v1643_v31, 0.996 }
 0x279   : > { %v1693_v60 = vmul.f32 %v1677_v22, %v5258_v33  ;;  %v1486_v20 = vmul.f32 %v1485_v37, %v5416_v14  ;;  %v1628_v21 = vsub.f32 1.5, %v1627_v1  ;;  %vm1711_vm15 = vcmp.gt.f32.partialorder %v1647_v46, 0.996 }
 0x27a   : > { %v3462_v41 = vpop.eup %3461  ;;  %v1694_v13 = vmul.f32 %v1678_v5, %v5302_v58  ;;  %v1845_v5 = vpop.xlane.xlu0 %1844 }
 0x27b   : > { %v5639_v19 = vsel %vm1709_vm4, %v1693_v60, %v5258_v33  ;;  %v5651_v33 = vsel %vm1714_vm3, %v1698_v11, %v5332_v6  ;;  %v1674_v12 = vmul.f32 0.996, %v3462_v41  ;;  %v1488_v6 = vsel %vm1487_vm7, %v5416_v14, %v1486_v20  ;;  %v3464_v9 = vpop.eup %3463  ;;  %v1789_v41 = vpop.xlane.xlu1 %1788 }
 0x27c   : > { %v1829_v0 = vmul.f32 %v5357_v8, %v5639_v19  ;;  %v1773_v32 = vmul.f32 %v5639_v19, %v5639_v19  ;;  %v1834_v42 = vmul.f32 %v5357_v8, %v5651_v33  ;;  %v1491_v59 = vsel %vm1489_vm8, %v1490_v27, %v1488_v6 }
 0x27d   : > { %v1690_v39 = vmul.f32 %v1674_v12, %v5289_v17  ;;  %v1639_v53 = vmax.f32 %v1491_v59, 1e-15  ;;  %v1629_v45 = vmul.f32 %v5477_v47, %v1628_v21  ;;  %v5674_v52 = vsel %vm1710_vm10, %v1694_v13, %v5302_v58  ;;  %v1837_v12 = vpop.xlane.xlu2 %1836 }
 0x27e   : > { %v1634_v47 = vand.u32 2147483648, %v5450_v56  ;;  %v1774_v51 = vmul.f32 %v5674_v52, %v5674_v52  ;;  %v3466_v23 = vpop.eup %3465  ;;  %v1778_v4 = vmul.f32 %v5651_v33, %v5651_v33  ;;  %v5725_v20 = vperm.slane %v5341_v24, 0 }
 0x27f   : > { %1854 = vadd.xlane.f32.xlu2 %v1829_v0  ;;  %1798 = vadd.xlane.f32.xlu0 %v1773_v32  ;;  %v5663_v2 = vsel %vm1706_vm9, %v1690_v39, %v5289_v17  ;;  %3467 = vrcp.f32 %v1639_v53  ;;  %v1630_v49 = vmul.f32 %v1629_v45, %v5450_v56  ;;  %v1675_v17 = vmul.f32 0.996, %v3464_v9 }
 0x280   : > { %1864 = vadd.xlane.f32.xlu1 %v1834_v42  ;;  %v1826_v30 = vmul.f32 %v5357_v8, %v5663_v2  ;;  %v1770_v14 = vmul.f32 %v5663_v2, %v5663_v2  ;;  %v1679_v22 = vmul.f32 0.996, %v3466_v23  ;;  %vm1703_vm14 = vcmp.gt.f32.partialorder %v1639_v53, 0.996 }
 0x281   : > { %v1632_v10 = vsel %vm1631_vm11, %v5450_v56, %v1630_v49  ;;  %v1691_v58 = vmul.f32 %v1675_v17, %v5315_v18  ;;  %v1830_v56 = vmul.f32 %v5357_v8, %v5674_v52  ;;  %v1872_v21 = vmul.f32 2.0, %v1845_v5 }
 0x282   : > { %v1635_v34 = vsel %vm1633_vm12, %v1634_v47, %v1632_v10  ;;  %v1695_v25 = vmul.f32 %v1679_v22, %v5337_v29  ;;  %v1985_v46 = vmul.f32 %v5725_v20, %v1789_v41  ;;  %v1868_v42 = vmul.f32 2.0, %v1837_v12  ;;  %v1781_v9 = vpop.xlane.xlu0 %1780 }
 0x283   : > { %v1651_v63 = vmax.f32 %v1635_v34, 1e-15  ;;  %v5690_v16 = vsel %vm1707_vm13, %v1691_v58, %v5315_v18  ;;  %v1888_v27 = vadd.f32 1.0, %v1872_v21  ;;  %v1937_v59 = vsub.f32 1.0, %v1789_v41 }
 0x284   : > { %v1771_v1 = vmul.f32 %v5690_v16, %v5690_v16  ;;  %v1827_v18 = vmul.f32 %v5357_v8, %v5690_v16  ;;  %v5704_v48 = vsel %vm1711_vm15, %v1695_v25, %v5337_v29  ;;  %v1777_v29 = vmul.f32 %v5601_v28, %v5601_v28 }
 0x285   : > { %v3468_v35 = vpop.eup %3467  ;;  %3469 = vrcp.f32 %v1651_v63  ;;  %vm1715_vm0 = vcmp.gt.f32.partialorder %v1651_v63, 0.996  ;;  %v1775_v32 = vmul.f32 %v5704_v48, %v5704_v48  ;;  %v2001_v39 = vadd.f32 %v1985_v46, %v1888_v27 }
 0x286   : > { %v1671_v3 = vmul.f32 0.996, %v3468_v35  ;;  %v1905_v6 = vadd.f32 %v5725_v20, %v1888_v27  ;;  %v1884_v53 = vadd.f32 1.0, %v1868_v42  ;;  %v1981_v45 = vmul.f32 %v5725_v20, %v1781_v9 }
 0x287   : > { %1848 = vadd.xlane.f32.xlu2 %v1826_v30  ;;  %1792 = vadd.xlane.f32.xlu0 %v1770_v14  ;;  %v2017_v13 = vmax.f32 %v2001_v39, 1e-15  ;;  %v1953_v14 = vmul.f32 %v5357_v8, %v1937_v59  ;;  %v1933_v49 = vsub.f32 1.0, %v1781_v9 }
 0x288   : > { %1800 = vadd.xlane.f32.xlu1 %v1774_v51  ;;  %v1687_v54 = vmul.f32 %v1671_v3, %v5309_v61  ;;  %v1921_v30 = vmul.f32 %v1905_v6, %v5365_v55  ;;  %v1997_v24 = vadd.f32 %v1981_v45, %v1884_v53  ;;  %v1901_v47 = vadd.f32 %v5725_v20, %v1884_v53 }
 0x289   : > { %3471 = vrcp.f32 %v2017_v13  ;;  %v1949_v51 = vmul.f32 %v5357_v8, %v1933_v49 }
 0x28a   : > { %v5697_v31 = vsel %vm1703_vm14, %v1687_v54, %v5309_v61  ;;  %v1831_v61 = vmul.f32 %v5357_v8, %v5704_v48  ;;  %v2013_v17 = vmax.f32 %v1997_v24, 1e-15  ;;  %v1969_v10 = vadd.f32 %v1953_v14, %v1921_v30 }
 0x28b   : > { %v3470_v62 = vpop.eup %3469  ;;  %v1823_v60 = vmul.f32 %v5357_v8, %v5697_v31  ;;  %v1767_v37 = vmul.f32 %v5697_v31, %v5697_v31  ;;  %v1917_v23 = vmul.f32 %v1901_v47, %v5372_v57 }
 0x28c   : > { %v1683_v11 = vmul.f32 0.996, %v3470_v62  ;;  %3473 = vrcp.f32 %v2013_v17 }
 0x28d   : > { %v1965_v55 = vadd.f32 %v1949_v51, %v1917_v23 }
 0x28e   : > { %v1699_v40 = vmul.f32 %v1683_v11, %v5322_v44 }
 0x28f   : > { %1784 = vadd.xlane.f32.xlu2 %v1766_v7  ;;  %1856 = vadd.xlane.f32.xlu0 %v1830_v56  ;;  %v3472_v34 = vpop.eup %3471 }
 0x290   : > { %1794 = vadd.xlane.f32.xlu1 %v1771_v1  ;;  %v5710_v36 = vsel %vm1715_vm0, %v1699_v40, %v5322_v44  ;;  %v5734_v63 = vmul.f32 %v3472_v34, %v1969_v10 }
 0x291   : > { %v1835_v0 = vmul.f32 %v5357_v8, %v5710_v36  ;;  %v1779_v44 = vmul.f32 %v5710_v36, %v5710_v36 }
 0x292   : > { %v2065_v58 = vmul.f32 %v5734_v63, %v5734_v63  ;;  %v3474_v35 = vpop.eup %3473 }
 0x293   : > { %v5739_v3 = vmul.f32 %v3474_v35, %v1965_v55 }
 0x295   : > { %v2061_v7 = vmul.f32 %v5739_v3, %v5739_v3 }
 0x297   : > { %1850 = vadd.xlane.f32.xlu0 %v1827_v18  ;;  %1842 = vadd.xlane.f32.xlu2 %v1823_v60 }
 0x298   : > { %1858 = vadd.xlane.f32.xlu1 %v1831_v61 }
 0x29f   : > { %1786 = vadd.xlane.f32.xlu0 %v1767_v37  ;;  %1866 = vadd.xlane.f32.xlu2 %v1835_v0 }
 0x2a0   : > { %1806 = vadd.xlane.f32.xlu1 %v1777_v29 }
 0x2a7   : > { %1802 = vadd.xlane.f32.xlu2 %v1775_v32  ;;  %1810 = vadd.xlane.f32.xlu0 %v1779_v44 }
 0x2a8   : > { %2077 = vadd.xlane.f32.xlu1 %v2061_v7 }
 0x2af   : > { %1808 = vadd.xlane.f32.xlu2 %v1778_v4 }
 0x2b7   : > { %2085 = vadd.xlane.f32.xlu2 %v2065_v58 }
 0x2d2   : > { %v1853_v56 = vpop.xlane.xlu1 %1852 }
 0x2d3   : > { %v1876_v18 = vmul.f32 2.0, %v1853_v56 }
 0x2d5   : > { %v1892_v29 = vadd.f32 1.0, %v1876_v18 }
 0x2d7   : > { %v1909_v59 = vadd.f32 %v5725_v20, %v1892_v29 }
 0x2d9   : > { %v1925_v34 = vmul.f32 %v1909_v59, %v5505_v15 }
 0x2da   : > { %v1861_v22 = vpop.xlane.xlu2 %1860  ;;  %v1805_v54 = vpop.xlane.xlu0 %1804 }
 0x2db   : > { %v1880_v62 = vmul.f32 2.0, %v1861_v22  ;;  %v1993_v25 = vmul.f32 %v5725_v20, %v1805_v54  ;;  %v1847_v57 = vpop.xlane.xlu1 %1846  ;;  %v1945_v61 = vsub.f32 1.0, %v1805_v54 }
 0x2dc   : > { %v1873_v46 = vmul.f32 2.0, %v1847_v57 }
 0x2dd   : > { %v1896_v1 = vadd.f32 1.0, %v1880_v62  ;;  %v1961_v41 = vmul.f32 %v5357_v8, %v1945_v61 }
 0x2de   : > { %v1889_v24 = vadd.f32 1.0, %v1873_v46 }
 0x2df   : > { %v2009_v11 = vadd.f32 %v1993_v25, %v1896_v1  ;;  %v1913_v60 = vadd.f32 %v5725_v20, %v1896_v1 }
 0x2e0   : > { %v1906_v22 = vadd.f32 %v5725_v20, %v1889_v24 }
 0x2e1   : > { %v2025_v40 = vmax.f32 %v2009_v11, 1e-15  ;;  %v1929_v32 = vmul.f32 %v1913_v60, %v5527_v38 }
 0x2e2   : > { %v1797_v37 = vpop.xlane.xlu2 %1796  ;;  %v1839_v0 = vpop.xlane.xlu0 %1838  ;;  %v1922_v18 = vmul.f32 %v1906_v22, %v5522_v43 }
 0x2e3   : > { %3475 = vrcp.f32 %v2025_v40  ;;  %v1989_v44 = vmul.f32 %v5725_v20, %v1797_v37  ;;  %v1869_v4 = vmul.f32 2.0, %v1839_v0  ;;  %v1783_v5 = vpop.xlane.xlu1 %1782  ;;  %v1941_v42 = vsub.f32 1.0, %v1797_v37 }
 0x2e4   : > { %v1982_v27 = vmul.f32 %v5725_v20, %v1783_v5  ;;  %v1977_v39 = vadd.f32 %v1961_v41, %v1929_v32  ;;  %v1934_v47 = vsub.f32 1.0, %v1783_v5 }
 0x2e5   : > { %v2005_v21 = vadd.f32 %v1989_v44, %v1892_v29  ;;  %v1885_v12 = vadd.f32 1.0, %v1869_v4  ;;  %v1957_v14 = vmul.f32 %v5357_v8, %v1941_v42 }
 0x2e6   : > { %v1950_v54 = vmul.f32 %v5357_v8, %v1934_v47 }
 0x2e7   : > { %v2021_v6 = vmax.f32 %v2005_v21, 1e-15  ;;  %v1998_v9 = vadd.f32 %v1982_v27, %v1885_v12  ;;  %v1902_v38 = vadd.f32 %v5725_v20, %v1885_v12  ;;  %v1973_v35 = vadd.f32 %v1957_v14, %v1925_v34 }
 0x2e9   : > { %v3476_v13 = vpop.eup %3475  ;;  %3477 = vrcp.f32 %v2021_v6  ;;  %v2014_v49 = vmax.f32 %v1998_v9, 1e-15  ;;  %v1918_v23 = vmul.f32 %v1902_v38, %v5565_v50 }
 0x2ea   : > { %v1791_v53 = vpop.xlane.xlu2 %1790  ;;  %v5751_v45 = vpop.xlane.xlu0 %1862  ;;  %v5753_v30 = vmul.f32 %v3476_v13, %v1977_v39 }
 0x2eb   : > { %v1986_v17 = vmul.f32 %v5725_v20, %v1791_v53  ;;  %3479 = vrcp.f32 %v2014_v49  ;;  %v1841_v58 = vpop.xlane.xlu1 %1840  ;;  %v1938_v55 = vsub.f32 1.0, %v1791_v53  ;;  %v1966_v1 = vadd.f32 %v1950_v54, %v1918_v23 }
 0x2ec   : > { %v2073_v10 = vmul.f32 %v5753_v30, %v5753_v30  ;;  %v1870_v38 = vmul.f32 2.0, %v1841_v58 }
 0x2ed   : > { %v2002_v51 = vadd.f32 %v1986_v17, %v1889_v24  ;;  %v1954_v15 = vmul.f32 %v5357_v8, %v1938_v55 }
 0x2ee   : > { %2101 = vadd.xlane.f32.xlu1 %v2073_v10 }
 0x2ef   : > { %v2018_v7 = vmax.f32 %v2002_v51, 1e-15  ;;  %v3478_v56 = vpop.eup %3477  ;;  %v1970_v0 = vadd.f32 %v1954_v15, %v1922_v18 }
 0x2f0   : > { %v5763_v62 = vmul.f32 %v3478_v56, %v1973_v35 }
 0x2f1   : > { %3481 = vrcp.f32 %v2018_v7  ;;  %v3480_v11 = vpop.eup %3479 }
 0x2f2   : > { %v1855_v25 = vpop.xlane.xlu2 %1854  ;;  %v1799_v57 = vpop.xlane.xlu0 %1798  ;;  %v2069_v60 = vmul.f32 %v5763_v62, %v5763_v62  ;;  %v5769_v40 = vmul.f32 %v3480_v11, %v1966_v1 }
 0x2f3   : > { %v1877_v50 = vmul.f32 2.0, %v1855_v25  ;;  %v1990_v37 = vmul.f32 %v5725_v20, %v1799_v57  ;;  %v5772_v29 = vpop.xlane.xlu1 %1864  ;;  %v1942_v21 = vsub.f32 1.0, %v1799_v57 }
 0x2f4   : > { %2093 = vadd.xlane.f32.xlu0 %v2069_v60  ;;  %v2062_v32 = vmul.f32 %v5769_v40, %v5769_v40 }
 0x2f5   : > { %v1893_v61 = vadd.f32 1.0, %v1877_v50  ;;  %v1958_v59 = vmul.f32 %v5357_v8, %v1942_v21 }
 0x2f6   : > { %2079 = vadd.xlane.f32.xlu2 %v2062_v32 }
 0x2f7   : > { %v3482_v44 = vpop.eup %3481  ;;  %v2006_v4 = vadd.f32 %v1990_v37, %v1893_v61  ;;  %v1910_v41 = vadd.f32 %v5725_v20, %v1893_v61 }
 0x2f8   : > { %v5777_v43 = vmul.f32 %v3482_v44, %v1970_v0 }
 0x2f9   : > { %v2022_v5 = vmax.f32 %v2006_v4, 1e-15  ;;  %v1926_v39 = vmul.f32 %v1910_v41, %v5639_v19  ;;  %v1886_v19 = vadd.f32 1.0, %v1870_v38 }
 0x2fa   : > { %v1849_v12 = vpop.xlane.xlu2 %1848  ;;  %v1793_v46 = vpop.xlane.xlu0 %1792  ;;  %v2066_v27 = vmul.f32 %v5777_v43, %v5777_v43 }
 0x2fb   : > { %3483 = vrcp.f32 %v2022_v5  ;;  %v1874_v42 = vmul.f32 2.0, %v1849_v12  ;;  %v1987_v13 = vmul.f32 %v5725_v20, %v1793_v46  ;;  %v1801_v9 = vpop.xlane.xlu1 %1800  ;;  %v1974_v24 = vadd.f32 %v1958_v59, %v1926_v39 }
 0x2fc   : > { %2087 = vadd.xlane.f32.xlu0 %v2066_v27  ;;  %v1939_v47 = vsub.f32 1.0, %v1793_v46  ;;  %v1991_v56 = vmul.f32 %v5725_v20, %v1801_v9  ;;  %v1903_v57 = vadd.f32 %v5725_v20, %v1886_v19  ;;  %v1943_v41 = vsub.f32 1.0, %v1801_v9 }
 0x2fd   : > { %v1890_v6 = vadd.f32 1.0, %v1874_v42 }
 0x2fe   : > { %v1955_v22 = vmul.f32 %v5357_v8, %v1939_v47  ;;  %v1919_v4 = vmul.f32 %v1903_v57, %v5620_v26  ;;  %v1881_v47 = vmul.f32 2.0, %v5751_v45 }
 0x2ff   : > { %v2003_v53 = vadd.f32 %v1987_v13, %v1890_v6  ;;  %v1907_v14 = vadd.f32 %v5725_v20, %v1890_v6 }
 0x301   : > { %v3484_v49 = vpop.eup %3483  ;;  %v2019_v17 = vmax.f32 %v2003_v53, 1e-15  ;;  %v1923_v55 = vmul.f32 %v1907_v14, %v5663_v2  ;;  %v5797_v2 = vld [vmem:[%s6631_s2] ss:$0 sm:$0xff] }
 0x302   : > { %v1785_v10 = vpop.xlane.xlu2 %1784  ;;  %v1857_v34 = vpop.xlane.xlu0 %1856  ;;  %v5785_v51 = vmul.f32 %v3484_v49, %v1974_v24  ;;  %v1959_v13 = vmul.f32 %v5797_v2, %v1943_v41 }
 0x303   : > { %3485 = vrcp.f32 %v2019_v17  ;;  %v1983_v23 = vmul.f32 %v5725_v20, %v1785_v10  ;;  %v1878_v35 = vmul.f32 2.0, %v1857_v34  ;;  %v1795_v54 = vpop.xlane.xlu1 %1794  ;;  %v1935_v1 = vsub.f32 1.0, %v1785_v10 }
 0x304   : > { %v2070_v58 = vmul.f32 %v5785_v51, %v5785_v51  ;;  %v1971_v11 = vadd.f32 %v1955_v22, %v1923_v55  ;;  %v1988_v21 = vmul.f32 %v5725_v20, %v1795_v54  ;;  %v1940_v24 = vsub.f32 1.0, %v1795_v54 }
 0x305   : > { %v1999_v7 = vadd.f32 %v1983_v23, %v1886_v19  ;;  %v1894_v15 = vadd.f32 1.0, %v1878_v35  ;;  %v1951_v60 = vmul.f32 %v5797_v2, %v1935_v1 }
 0x306   : > { %2095 = vadd.xlane.f32.xlu1 %v2070_v58  ;;  %v1956_v55 = vmul.f32 %v5797_v2, %v1940_v24 }
 0x307   : > { %v2015_v25 = vmax.f32 %v1999_v7, 1e-15  ;;  %v2007_v50 = vadd.f32 %v1991_v56, %v1894_v15  ;;  %v1911_v8 = vadd.f32 %v5725_v20, %v1894_v15  ;;  %v1967_v46 = vadd.f32 %v1951_v60, %v1919_v4 }
 0x308   : > { %v1897_v56 = vadd.f32 1.0, %v1881_v47 }
 0x309   : > { %v3486_v18 = vpop.eup %3485  ;;  %3487 = vrcp.f32 %v2015_v25  ;;  %v2023_v61 = vmax.f32 %v2007_v50, 1e-15  ;;  %v1927_v27 = vmul.f32 %v1911_v8, %v5674_v52 }
 0x30a   : > { %v1843_v37 = vpop.xlane.xlu2 %1842  ;;  %v1851_v0 = vpop.xlane.xlu0 %1850  ;;  %v5801_v32 = vmul.f32 %v3486_v18, %v1971_v11  ;;  %v1914_v4 = vadd.f32 %v5725_v20, %v1897_v56 }
 0x30b   : > { %v1875_v44 = vmul.f32 2.0, %v1851_v0  ;;  %3489 = vrcp.f32 %v2023_v61  ;;  %v1859_v42 = vpop.xlane.xlu1 %1858  ;;  %v1871_v59 = vmul.f32 2.0, %v1843_v37  ;;  %v1975_v14 = vadd.f32 %v1959_v13, %v1927_v27 }
 0x30c   : > { %v2067_v5 = vmul.f32 %v5801_v32, %v5801_v32  ;;  %v1879_v22 = vmul.f32 2.0, %v1859_v42 }
 0x30d   : > { %v1891_v12 = vadd.f32 1.0, %v1875_v44  ;;  %v1887_v10 = vadd.f32 1.0, %v1871_v59 }
 0x30e   : > { %2089 = vadd.xlane.f32.xlu1 %v2067_v5  ;;  %v1895_v61 = vadd.f32 1.0, %v1879_v22 }
 0x30f   : > { %v3488_v39 = vpop.eup %3487  ;;  %v2004_v6 = vadd.f32 %v1988_v21, %v1891_v12  ;;  %v1908_v26 = vadd.f32 %v5725_v20, %v1891_v12  ;;  %v1904_v57 = vadd.f32 %v5725_v20, %v1887_v10 }
 0x310   : > { %v5810_v9 = vmul.f32 %v3488_v39, %v1967_v46  ;;  %v1912_v24 = vadd.f32 %v5725_v20, %v1895_v61 }
 0x311   : > { %v2020_v38 = vmax.f32 %v2004_v6, 1e-15  ;;  %v3490_v53 = vpop.eup %3489  ;;  %v1924_v34 = vmul.f32 %v1908_v26, %v5690_v16  ;;  %v1920_v12 = vmul.f32 %v1904_v57, %v5697_v31  ;;  %v1882_v6 = vmul.f32 2.0, %v5772_v29 }
 0x312   : > { %v1867_v49 = vpop.xlane.xlu2 %1866  ;;  %v1787_v17 = vpop.xlane.xlu0 %1786  ;;  %v2063_v52 = vmul.f32 %v5810_v9, %v5810_v9  ;;  %v5817_v23 = vmul.f32 %v3490_v53, %v1975_v14  ;;  %v1930_v53 = vmul.f32 %v1914_v4, %v5601_v28 }
 0x313   : > { %3491 = vrcp.f32 %v2020_v38  ;;  %v1984_v19 = vmul.f32 %v5725_v20, %v1787_v17  ;;  %v1807_v35 = vpop.xlane.xlu1 %1806  ;;  %v1936_v54 = vsub.f32 1.0, %v1787_v17  ;;  %v1972_v1 = vadd.f32 %v1956_v55, %v1924_v34 }
 0x314   : > { %2081 = vadd.xlane.f32.xlu0 %v2063_v52  ;;  %v2071_v7 = vmul.f32 %v5817_v23, %v5817_v23  ;;  %v1994_v45 = vmul.f32 %v5725_v20, %v1807_v35  ;;  %v1883_v15 = vmul.f32 2.0, %v1867_v49  ;;  %v1946_v50 = vsub.f32 1.0, %v1807_v35 }
 0x315   : > { %v2000_v58 = vadd.f32 %v1984_v19, %v1887_v10  ;;  %v1952_v0 = vmul.f32 %v5797_v2, %v1936_v54  ;;  %v1898_v10 = vadd.f32 1.0, %v1882_v6  ;;  %v1928_v55 = vmul.f32 %v1912_v24, %v5704_v48 }
 0x316   : > { %2097 = vadd.xlane.f32.xlu2 %v2071_v7  ;;  %v2010_v11 = vadd.f32 %v1994_v45, %v1897_v56  ;;  %v1899_v41 = vadd.f32 1.0, %v1883_v15  ;;  %v1962_v27 = vmul.f32 %v5797_v2, %v1946_v50 }
 0x317   : > { %v2016_v16 = vmax.f32 %v2000_v58, 1e-15  ;;  %v1968_v13 = vadd.f32 %v1952_v0, %v1920_v12 }
 0x318   : > { %v2026_v37 = vmax.f32 %v2010_v11, 1e-15  ;;  %v1916_v31 = vadd.f32 %v5725_v20, %v1899_v41  ;;  %v1978_v17 = vadd.f32 %v1962_v27, %v1930_v53 }
 0x319   : > { %v3492_v25 = vpop.eup %3491  ;;  %3493 = vrcp.f32 %v2016_v16 }
 0x31a   : > { %v1803_v18 = vpop.xlane.xlu2 %1802  ;;  %v1811_v60 = vpop.xlane.xlu0 %1810  ;;  %v5824_v8 = vmul.f32 %v3492_v25, %v1972_v1  ;;  %3495 = vrcp.f32 %v2026_v37  ;;  %v1932_v58 = vmul.f32 %v1916_v31, %v5710_v36  ;;  %v1915_v25 = vadd.f32 %v5725_v20, %v1898_v10 }
 0x31b   : > { %v1992_v44 = vmul.f32 %v5725_v20, %v1803_v18  ;;  %v1996_v5 = vmul.f32 %v5725_v20, %v1811_v60  ;;  %v1944_v42 = vsub.f32 1.0, %v1803_v18  ;;  %v1948_v26 = vsub.f32 1.0, %v1811_v60 }
 0x31c   : > { %v2068_v21 = vmul.f32 %v5824_v8, %v5824_v8  ;;  %v1931_v18 = vmul.f32 %v1915_v25, %v5651_v33 }
 0x31d   : > { %v2008_v46 = vadd.f32 %v1992_v44, %v1895_v61  ;;  %v2012_v39 = vadd.f32 %v1996_v5, %v1899_v41  ;;  %v1960_v52 = vmul.f32 %v5797_v2, %v1944_v42  ;;  %v1964_v34 = vmul.f32 %v5797_v2, %v1948_v26  ;;  %v2078_v5 = vpop.xlane.xlu1 %2077 }
 0x31e   : > { %2091 = vadd.xlane.f32.xlu2 %v2068_v21  ;;  %vm2116_vm3 = vcmp.eq.f32.partialorder %v2078_v5, inf  ;;  %vm2118_vm4 = vcmp.eq.f32.partialorder %v2078_v5, 0.0 }
 0x31f   : > { %v2024_v59 = vmax.f32 %v2008_v46, 1e-15  ;;  %v3494_v38 = vpop.eup %3493  ;;  %v2028_v14 = vmax.f32 %v2012_v39, 1e-15  ;;  %v1976_v56 = vadd.f32 %v1960_v52, %v1928_v55  ;;  %v1980_v1 = vadd.f32 %v1964_v34, %v1932_v58 }
 0x320   : > { %v5838_v49 = vmul.f32 %v3494_v38, %v1968_v13  ;;  %v3496_v47 = vpop.eup %3495 }
 0x321   : > { %3497 = vrcp.f32 %v2024_v59  ;;  %v5846_v35 = vmul.f32 %v3496_v47, %v1978_v17 }
 0x322   : > { %3499 = vrcp.f32 %v2028_v14  ;;  %v1809_v29 = vpop.xlane.xlu2 %1808  ;;  %v2064_v19 = vmul.f32 %v5838_v49, %v5838_v49  ;;  %v2119_v14 = vand.u32 2147483648, %v2078_v5 }
 0x323   : > { %v1995_v28 = vmul.f32 %v5725_v20, %v1809_v29  ;;  %v1947_v22 = vsub.f32 1.0, %v1809_v29  ;;  %v2074_v45 = vmul.f32 %v5846_v35, %v5846_v35 }
 0x324   : > { %2083 = vadd.xlane.f32.xlu1 %v2064_v19 }
 0x325   : > { %v2011_v7 = vadd.f32 %v1995_v28, %v1898_v10  ;;  %v1963_v36 = vmul.f32 %v5797_v2, %v1947_v22 }
 0x326   : > { %2103 = vadd.xlane.f32.xlu2 %v2074_v45 }
 0x327   : > { %v3498_v54 = vpop.eup %3497  ;;  %v2027_v15 = vmax.f32 %v2011_v7, 1e-15  ;;  %v1979_v60 = vadd.f32 %v1963_v36, %v1931_v18 }
 0x328   : > { %v3500_v16 = vpop.eup %3499  ;;  %v5852_v57 = vmul.f32 %v3498_v54, %v1976_v56 }
 0x329   : > { %3501 = vrcp.f32 %v2027_v15  ;;  %v5854_v48 = vmul.f32 %v3500_v16, %v1980_v1 }
 0x32a   : > { %v2072_v11 = vmul.f32 %v5852_v57, %v5852_v57  ;;  %v2086_v0 = vpop.xlane.xlu2 %2085 }
 0x32b   : > { %v2076_v50 = vmul.f32 %v5854_v48, %v5854_v48  ;;  %3503 = vrsqrt.f32 %v2086_v0  ;;  %vm2164_vm1 = vcmp.eq.f32.partialorder %v2086_v0, inf  ;;  %v2167_v59 = vand.u32 2147483648, %v2086_v0 }
 0x32c   : > { %2099 = vadd.xlane.f32.xlu0 %v2072_v11  ;;  %3505 = vrsqrt.f32 %v2078_v5  ;;  %vm2166_vm2 = vcmp.eq.f32.partialorder %v2086_v0, 0.0 }
 0x32d   : > { %2107 = vadd.xlane.f32.xlu1 %v2076_v50 }
 0x32f   : > { %v3502_v20 = vpop.eup %3501 }
 0x330   : > { %v5862_v61 = vmul.f32 %v3502_v20, %v1979_v60 }
 0x331   : > { %v3504_v2 = vpop.eup %3503 }
 0x332   : > { %v2075_v37 = vmul.f32 %v5862_v61, %v5862_v61  ;;  %v2158_v44 = vmul.f32 %v3504_v2, %v2086_v0  ;;  %v3506_v33 = vpop.eup %3505 }
 0x333   : > { %v2110_v46 = vmul.f32 %v3506_v33, %v2078_v5 }
 0x334   : > { %2105 = vadd.xlane.f32.xlu0 %v2075_v37  ;;  %v2159_v4 = vmul.f32 %v3504_v2, %v2158_v44 }
 0x335   : > { %v2111_v27 = vmul.f32 %v3506_v33, %v2110_v46 }
 0x336   : > { %v2160_v41 = vmul.f32 0.5, %v2159_v4 }
 0x337   : > { %v2112_v39 = vmul.f32 0.5, %v2111_v27 }
 0x338   : > { %v2161_v21 = vsub.f32 1.5, %v2160_v41 }
 0x339   : > { %v2113_v6 = vsub.f32 1.5, %v2112_v39 }
 0x33a   : > { %v2162_v12 = vmul.f32 %v3504_v2, %v2161_v21 }
 0x33b   : > { %v2114_v26 = vmul.f32 %v3506_v33, %v2113_v6 }
 0x33c   : > { %v2163_v42 = vmul.f32 %v2162_v12, %v2086_v0 }
 0x33d   : > { %v2115_v53 = vmul.f32 %v2114_v26, %v2078_v5 }
 0x33e   : > { %v2165_v13 = vsel %vm2164_vm1, %v2086_v0, %v2163_v42 }
 0x33f   : > { %v2168_v38 = vsel %vm2166_vm2, %v2167_v59, %v2165_v13  ;;  %v2117_v24 = vsel %vm2116_vm3, %v2078_v5, %v2115_v53 }
 0x340   : > { %v5866_v31 = vmax.f32 %v2168_v38, 1e-15  ;;  %v2120_v17 = vsel %vm2118_vm4, %v2119_v14, %v2117_v24 }
 0x341   : > { %v5869_v52 = vmax.f32 %v2120_v17, 1e-15 }
 0x342   : > { %vm2321_vm5 = vcmp.gt.f32.partialorder %v5866_v31, 0.996 }
 0x343   : > { %v5874_v29 = vsel %vm2321_vm5, 0.996, %v5866_v31  ;;  %vm2317_vm6 = vcmp.gt.f32.partialorder %v5869_v52, 0.996 }
 0x344   : > { %v3007_v10 = vclamps-f32 %v5874_v29, 0.9999999  ;;  %v5881_v34 = vsel %vm2317_vm6, 0.996, %v5869_v52 }
 0x345   : > { %v3003_v19 = vclamps-f32 %v5881_v34, 0.9999999 }
 0x346   : > { %v2497_v28 = vsub.f32 1.0, %v3007_v10  ;;  %v2481_v13 = vadd.f32 1.0, %v3007_v10 }
 0x347   : > { %v2493_v7 = vsub.f32 1.0, %v3003_v19 }
 0x348   : > { %v2580_v4 = vand.u32 2147483648, %v2497_v28  ;;  %vm2574_vm10 = vweird.f32 %v2497_v28  ;;  %v2578_v5 = vand.u32 2147483647, %v2497_v28 }
 0x349   : > { %v2520_v46 = vand.u32 2147483648, %v2493_v7  ;;  %vm2514_vm15 = vweird.f32 %v2493_v7  ;;  %v2518_v27 = vand.u32 2147483647, %v2493_v7 }
 0x34a   : > { %v2581_v12 = vor.u32 1.1754944e-38, %v2580_v4  ;;  %vm2579_vm14 = vcmp.eq.f32.partialorder %v2578_v5, 8.507059e+37 }
 0x34b   : > { %v2521_v53 = vor.u32 1.1754944e-38, %v2520_v46  ;;  %vm2519_vm1 = vcmp.eq.f32.partialorder %v2518_v27, 8.507059e+37 }
 0x361   : > { %v2102_v47 = vpop.xlane.xlu1 %2101 }
 0x362   : > { %3507 = vrsqrt.f32 %v2102_v47  ;;  %vm2260_vm7 = vcmp.eq.f32.partialorder %v2102_v47, inf  ;;  %v2263_v20 = vand.u32 2147483648, %v2102_v47  ;;  %vm2262_vm8 = vcmp.eq.f32.partialorder %v2102_v47, 0.0 }
 0x363   : > { %3509 = vrcp.f32 %v2497_v28 }
 0x364   : > { %3511 = vrcp.f32 %v2493_v7 }
 0x367   : > { %v2094_v44 = vpop.xlane.xlu0 %2093 }
 0x368   : > { %v3508_v55 = vpop.eup %3507  ;;  %3513 = vrsqrt.f32 %v2094_v44  ;;  %vm2212_vm2 = vcmp.eq.f32.partialorder %v2094_v44, inf  ;;  %vm2214_vm3 = vcmp.eq.f32.partialorder %v2094_v44, 0.0 }
 0x369   : > { %v2254_v58 = vmul.f32 %v3508_v55, %v2102_v47  ;;  %v3510_v54 = vpop.eup %3509  ;;  %v5887_v42 = vpop.xlane.xlu2 %2079 }
 0x36a   : > { %v2570_v15 = vmul.f32 %v3510_v54, %v2497_v28  ;;  %v3512_v16 = vpop.eup %3511  ;;  %vm2575_vm9 = vweird.f32 %v3510_v54  ;;  %3515 = vrsqrt.f32 %v5887_v42  ;;  %v2477_v28 = vadd.f32 1.0, %v3003_v19 }
 0x36b   : > { %v2255_v56 = vmul.f32 %v3508_v55, %v2254_v58  ;;  %v2510_v11 = vmul.f32 %v3512_v16, %v2493_v7  ;;  %vm2576_vm11 = vmor %vm2574_vm10, %vm2575_vm9  ;;  %vm2515_vm12 = vweird.f32 %v3512_v16 }
 0x36c   : > { %v2571_v36 = vsub.f32 1.0, %v2570_v15  ;;  %vm2516_vm0 = vmor %vm2514_vm15, %vm2515_vm12 }
 0x36d   : > { %v2256_v22 = vmul.f32 0.5, %v2255_v56  ;;  %v2511_v60 = vsub.f32 1.0, %v2510_v11 }
 0x36e   : > { %v2572_v18 = vmul.f32 %v3510_v54, %v2571_v36  ;;  %v3514_v39 = vpop.eup %3513 }
 0x36f   : > { %v2257_v45 = vsub.f32 1.5, %v2256_v22  ;;  %v2512_v2 = vmul.f32 %v3512_v16, %v2511_v60  ;;  %v2206_v38 = vmul.f32 %v3514_v39, %v2094_v44  ;;  %v5896_v58 = vpop.xlane.xlu0 %2087 }
 0x370   : > { %v2573_v0 = vadd.f32 %v3510_v54, %v2572_v18  ;;  %v3516_v7 = vpop.eup %3515  ;;  %3517 = vrsqrt.f32 %v5896_v58  ;;  %vm2176_vm10 = vcmp.eq.f32.partialorder %v5896_v58, inf }
 0x371   : > { %v2258_v1 = vmul.f32 %v3508_v55, %v2257_v45  ;;  %v2513_v33 = vadd.f32 %v3512_v16, %v2512_v2  ;;  %v2207_v14 = vmul.f32 %v3514_v39, %v2206_v38  ;;  %v2122_v22 = vmul.f32 %v3516_v7, %v5887_v42 }
 0x372   : > { %v2577_v21 = vsel %vm2576_vm11, %v3510_v54, %v2573_v0  ;;  %vm2178_vm11 = vcmp.eq.f32.partialorder %v5896_v58, 0.0 }
 0x373   : > { %v2259_v25 = vmul.f32 %v2258_v1, %v2102_v47  ;;  %v2582_v6 = vsel %vm2579_vm14, %v2581_v12, %v2577_v21  ;;  %v2517_v59 = vsel %vm2516_vm0, %v3512_v16, %v2513_v33  ;;  %v2208_v55 = vmul.f32 0.5, %v2207_v14 }
 0x374   : > { %v2583_v24 = vmul.f32 %v2582_v6, %v2481_v13  ;;  %v2522_v17 = vsel %vm2519_vm1, %v2521_v53, %v2517_v59  ;;  %v2123_v1 = vmul.f32 %v3516_v7, %v2122_v22 }
 0x375   : > { %v2261_v50 = vsel %vm2260_vm7, %v2102_v47, %v2259_v25  ;;  %v2523_v10 = vmul.f32 %v2522_v17, %v2477_v28  ;;  %v2209_v56 = vsub.f32 1.5, %v2208_v55  ;;  %v2215_v25 = vand.u32 2147483648, %v2094_v44 }
 0x376   : > { %v2264_v37 = vsel %vm2262_vm8, %v2263_v20, %v2261_v50  ;;  %3519 = vlog2.f32 %v2583_v24  ;;  %v2124_v15 = vmul.f32 0.5, %v2123_v1  ;;  %v3518_v16 = vpop.eup %3517  ;;  %vm2128_vm7 = vcmp.eq.f32.partialorder %v5887_v42, inf }
 0x377   : > { %v5884_v41 = vmax.f32 %v2264_v37, 1e-15  ;;  %3521 = vrcp.f32 %v5866_v31  ;;  %v2210_v54 = vmul.f32 %v3514_v39, %v2209_v56  ;;  %v2170_v18 = vmul.f32 %v3518_v16, %v5896_v58 }
 0x378   : > { %3523 = vrcp.f32 %v5869_v52  ;;  %v2125_v50 = vsub.f32 1.5, %v2124_v15  ;;  %v2131_v39 = vand.u32 2147483648, %v5887_v42  ;;  %vm2130_vm8 = vcmp.eq.f32.partialorder %v5887_v42, 0.0 }
 0x379   : > { %vm2329_vm13 = vcmp.gt.f32.partialorder %v5884_v41, 0.996  ;;  %3525 = vlog2.f32 %v2523_v10  ;;  %v2211_v19 = vmul.f32 %v2210_v54, %v2094_v44  ;;  %v2171_v2 = vmul.f32 %v3518_v16, %v2170_v18  ;;  %v5910_v4 = vpop.xlane.xlu1 %2095 }
 0x37a   : > { %v5893_v26 = vsel %vm2329_vm13, 0.996, %v5884_v41  ;;  %v2126_v0 = vmul.f32 %v3516_v7, %v2125_v50  ;;  %vm2226_vm12 = vcmp.eq.f32.partialorder %v5910_v4, 0.0 }
 0x37b   : > { %v3015_v47 = vclamps-f32 %v5893_v26, 0.9999999  ;;  %v2213_v11 = vsel %vm2212_vm2, %v2094_v44, %v2211_v19  ;;  %v2172_v12 = vmul.f32 0.5, %v2171_v2 }
 0x37c   : > { %v3520_v36 = vpop.eup %3519  ;;  %v2216_v60 = vsel %vm2214_vm3, %v2215_v25, %v2213_v11  ;;  %v2127_v44 = vmul.f32 %v2126_v0, %v5887_v42 }
 0x37d   : > { %v5902_v45 = vsub.f32 1.0, %v3015_v47  ;;  %v3522_v20 = vpop.eup %3521  ;;  %v5908_v37 = vmax.f32 %v2216_v60, 1e-15  ;;  %v2758_v21 = vmul.f32 0.6931472, %v3520_v36  ;;  %v2173_v53 = vsub.f32 1.5, %v2172_v12 }
 0x37e   : > { %v3524_v5 = vpop.eup %3523  ;;  %v2129_v6 = vsel %vm2128_vm7, %v5887_v42, %v2127_v44  ;;  %v2353_v13 = vmul.f32 0.996, %v3522_v20  ;;  %v2179_v36 = vand.u32 2147483648, %v5896_v58  ;;  %v5979_v31 = vadd.f32 1.0, %v3015_v47 }
 0x37f   : > { %3527 = vrcp.f32 %v5902_v45  ;;  %v3526_v33 = vpop.eup %3525  ;;  %vm2325_vm4 = vcmp.gt.f32.partialorder %v5908_v37, 0.996  ;;  %v2785_v59 = vmul.f32 0.5, %v2758_v21  ;;  %v2132_v38 = vsel %vm2130_vm8, %v2131_v39, %v2129_v6 }
 0x380   : > { %3529 = vrcp.f32 %v5874_v29  ;;  %v5920_v27 = vsel %vm2325_vm4, 0.996, %v5908_v37  ;;  %v2750_v24 = vmul.f32 0.6931472, %v3526_v33  ;;  %v5934_v28 = vmax.f32 %v2132_v38, 1e-15 }
 0x381   : > { %3531 = vrsqrt.f32 %v5910_v4  ;;  %v3011_v29 = vclamps-f32 %v5920_v27, 0.9999999  ;;  %v2349_v55 = vmul.f32 0.996, %v3524_v5  ;;  %v2174_v7 = vmul.f32 %v3518_v16, %v2173_v53  ;;  %v5940_v54 = vpop.xlane.xlu1 %2089 }
 0x382   : > { %3533 = vrcp.f32 %v5881_v34  ;;  %v2369_v56 = vmul.f32 %v2353_v13, %v5734_v63  ;;  %vm2318_vm9 = vcmp.gt.f32.partialorder %v5934_v28, 0.996  ;;  %v2781_v1 = vmul.f32 0.5, %v2750_v24 }
 0x383   : > { %v5932_v17 = vsub.f32 1.0, %v3011_v29  ;;  %v5945_v15 = vsel %vm2318_vm9, 0.996, %v5934_v28  ;;  %v2175_v34 = vmul.f32 %v2174_v7, %v5896_v58  ;;  %v2365_v16 = vmul.f32 %v2349_v55, %v5739_v3 }
 0x384   : > { %v3004_v25 = vclamps-f32 %v5945_v15, 0.9999999  ;;  %v2417_v60 = vsel %vm2321_vm5, %v2369_v56, %v5734_v63  ;;  %v2698_v6 = vand.u32 2147483647, %v5902_v45  ;;  %vm2188_vm1 = vcmp.eq.f32.partialorder %v5940_v54, inf }
 0x385   : > { %v5915_v46 = vpop.eup %3527  ;;  %3535 = vrcp.f32 %v5932_v17  ;;  %v2177_v11 = vsel %vm2176_vm10, %v5896_v58, %v2175_v34  ;;  %v2413_v63 = vsel %vm2317_vm6, %v2365_v16, %v5739_v3  ;;  %v2638_v24 = vand.u32 2147483647, %v5932_v17 }
 0x386   : > { %v2690_v14 = vmul.f32 %v5915_v46, %v5902_v45  ;;  %v3530_v10 = vpop.eup %3529  ;;  %3537 = vrsqrt.f32 %v5940_v54  ;;  %v5959_v20 = vsub.f32 1.0, %v3004_v25  ;;  %v2180_v0 = vsel %vm2178_vm11, %v2179_v36, %v2177_v11 }
 0x387   : > { %v3532_v42 = vpop.eup %3531  ;;  %v2817_v22 = vmul.f32 %v3530_v10, %v2785_v59  ;;  %v5964_v33 = vmax.f32 %v2180_v0, 1e-15  ;;  %v5966_v44 = vpop.xlane.xlu0 %2081  ;;  %vm2224_vm6 = vcmp.eq.f32.partialorder %v5910_v4, inf  ;;  %v2227_v34 = vand.u32 2147483648, %v5910_v4 }
 0x388   : > { %v2691_v19 = vsub.f32 1.0, %v2690_v14  ;;  %v2218_v50 = vmul.f32 %v3532_v42, %v5910_v4  ;;  %v3534_v18 = vpop.eup %3533  ;;  %3539 = vrcp.f32 %v5959_v20  ;;  %v2640_v14 = vand.u32 2147483648, %v5932_v17 }
 0x389   : > { %v2813_v5 = vmul.f32 %v3534_v18, %v2781_v1  ;;  %v5968_v12 = vmul.f32 %v2817_v22, %v2417_v60  ;;  %3541 = vrcp.f32 %v5884_v41  ;;  %vm2322_vm5 = vcmp.gt.f32.partialorder %v5964_v33, 0.996 }
 0x38a   : > { %v2692_v21 = vmul.f32 %v5915_v46, %v2691_v19  ;;  %v2219_v58 = vmul.f32 %v3532_v42, %v2218_v50  ;;  %3543 = vrsqrt.f32 %v5966_v44  ;;  %v5993_v47 = vsel %vm2322_vm5, 0.996, %v5964_v33 }
 0x38b   : > { %v5961_v2 = vpop.eup %3535  ;;  %v5984_v53 = vmul.f32 %v2813_v5, %v2413_v63  ;;  %v6666_v55 = vclamps-f32 %v5993_v47, 0.9999999  ;;  %3545 = vrcp.f32 %v5908_v37  ;;  %v6012_v36 = vadd.f32 1.0, %v3011_v29 }
 0x38c   : > { %v2630_v39 = vmul.f32 %v5961_v2, %v5932_v17  ;;  %v2220_v59 = vmul.f32 0.5, %v2219_v58  ;;  %v3538_v38 = vpop.eup %3537  ;;  %v5987_v52 = vadd.f32 %v5915_v46, %v2692_v21  ;;  %3547 = vrcp.f32 %v5934_v28 }
 0x38d   : > { %v2182_v56 = vmul.f32 %v3538_v38, %v5940_v54  ;;  %v6005_v1 = vsub.f32 1.0, %v6666_v55  ;;  %vm2634_vm14 = vweird.f32 %v5932_v17  ;;  %vm6019_vm15 = vcmp.eq.f32.partialorder %v2638_v24, 8.507059e+37 }
 0x38e   : > { %v2631_v13 = vsub.f32 1.0, %v2630_v39  ;;  %v2221_v7 = vsub.f32 1.5, %v2220_v59  ;;  %v3540_v22 = vpop.eup %3539  ;;  %vm2635_vm0 = vweird.f32 %v5961_v2  ;;  %v2478_v29 = vadd.f32 1.0, %v3004_v25 }
 0x38f   : > { %v6008_v16 = vpop.eup %3541  ;;  %v2525_v11 = vmul.f32 %v3540_v22, %v5959_v20  ;;  %v2183_v50 = vmul.f32 %v3538_v38, %v2182_v56  ;;  %3549 = vrcp.f32 %v6005_v1  ;;  %v2535_v21 = vand.u32 2147483648, %v5959_v20  ;;  %vm6043_vm8 = vmor %vm2634_vm14, %vm2635_vm0 }
 0x390   : > { %v2632_v10 = vmul.f32 %v5961_v2, %v2631_v13  ;;  %v2222_v19 = vmul.f32 %v3532_v42, %v2221_v7  ;;  %v6016_v18 = vpop.eup %3543  ;;  %v2641_v42 = vor.u32 1.1754944e-38, %v2640_v14  ;;  %vm2190_vm2 = vcmp.eq.f32.partialorder %v5940_v54, 0.0  ;;  %v6031_v13 = vpop.xlane.xlu2 %2097 }
 0x391   : > { %v2526_v5 = vsub.f32 1.0, %v2525_v11  ;;  %v2184_v39 = vmul.f32 0.5, %v2183_v50  ;;  %v2191_v63 = vand.u32 2147483648, %v5940_v54  ;;  %vm2530_vm3 = vweird.f32 %v3540_v22  ;;  %v6036_v14 = vpop.eup %3545 }
 0x392   : > { %v2633_v0 = vadd.f32 %v5961_v2, %v2632_v10  ;;  %v2223_v58 = vmul.f32 %v2222_v19, %v5910_v4  ;;  %v2533_v24 = vand.u32 2147483647, %v5959_v20  ;;  %v2134_v25 = vmul.f32 %v6016_v18, %v5966_v44  ;;  %v3548_v19 = vpop.eup %3547 }
 0x393   : > { %v2527_v59 = vmul.f32 %v3540_v22, %v2526_v5  ;;  %vm2695_vm7 = vweird.f32 %v5915_v46  ;;  %vm2529_vm10 = vweird.f32 %v5959_v20  ;;  %3551 = vrcp.f32 %v5964_v33 }
 0x394   : > { %v2225_v10 = vsel %vm2224_vm6, %v5910_v4, %v2223_v58  ;;  %v2185_v56 = vsub.f32 1.5, %v2184_v39  ;;  %v2637_v11 = vsel %vm6043_vm8, %v5961_v2, %v2633_v0  ;;  %v2135_v5 = vmul.f32 %v6016_v18, %v2134_v25  ;;  %vm2531_vm14 = vmor %vm2529_vm10, %vm2530_vm3 }
 0x395   : > { %v2528_v50 = vadd.f32 %v3540_v22, %v2527_v59  ;;  %v2228_v17 = vsel %vm2226_vm12, %v2227_v34, %v2225_v10  ;;  %v3550_v3 = vpop.eup %3549  ;;  %vm2694_vm11 = vweird.f32 %v5902_v45  ;;  %v2536_v20 = vor.u32 1.1754944e-38, %v2535_v21 }
 0x396   : > { %v6060_v55 = vmax.f32 %v2228_v17, 1e-15  ;;  %v2186_v58 = vmul.f32 %v3538_v38, %v2185_v56  ;;  %3553 = vrsqrt.f32 %v6031_v13  ;;  %vm2534_vm6 = vcmp.eq.f32.partialorder %v2533_v24, 8.507059e+37  ;;  %vm6108_vm8 = vmor %vm2694_vm11, %vm2695_vm7 }
 0x397   : > { %v2532_v39 = vsel %vm2531_vm14, %v3540_v22, %v2528_v50  ;;  %v2585_v2 = vmul.f32 %v3550_v3, %v6005_v1  ;;  %v2136_v0 = vmul.f32 0.5, %v2135_v5  ;;  %v2642_v4 = vsel %vm6019_vm15, %v2641_v42, %v2637_v11 }
 0x398   : > { %v2537_v34 = vsel %vm2534_vm6, %v2536_v20, %v2532_v39  ;;  %vm2326_vm12 = vcmp.gt.f32.partialorder %v6060_v55, 0.996  ;;  %v2187_v59 = vmul.f32 %v2186_v58, %v5940_v54  ;;  %v2593_v7 = vand.u32 2147483647, %v6005_v1  ;;  %v6090_v20 = vpop.xlane.xlu2 %2091 }
 0x399   : > { %v2538_v25 = vmul.f32 %v2537_v34, %v2478_v29  ;;  %v2586_v21 = vsub.f32 1.0, %v2585_v2  ;;  %v6072_v38 = vsel %vm2326_vm12, 0.996, %v6060_v55  ;;  %v3552_v22 = vpop.eup %3551  ;;  %v2595_v24 = vand.u32 2147483648, %v6005_v1 }
 0x39a   : > { %v3012_v60 = vclamps-f32 %v6072_v38, 0.9999999  ;;  %v2189_v42 = vsel %vm2188_vm1, %v5940_v54, %v2187_v59  ;;  %v2137_v10 = vsub.f32 1.5, %v2136_v0  ;;  %vm2590_vm15 = vweird.f32 %v3550_v3 }
 0x39b   : > { %3555 = vlog2.f32 %v2538_v25  ;;  %v2587_v29 = vmul.f32 %v3550_v3, %v2586_v21  ;;  %v2192_v56 = vsel %vm2190_vm2, %v2191_v63, %v2189_v42  ;;  %v2350_v50 = vmul.f32 0.996, %v3548_v19 }
 0x39c   : > { %v6081_v11 = vpop.eup %3553  ;;  %3557 = vrcp.f32 %v5945_v15  ;;  %v6086_v17 = vsub.f32 1.0, %v3012_v60  ;;  %v6088_v5 = vmax.f32 %v2192_v56, 1e-15  ;;  %vm6094_vm0 = vcmp.eq.f32.partialorder %v2698_v6, 8.507059e+37 }
 0x39d   : > { %v2643_v54 = vmul.f32 %v2642_v4, %v6012_v36  ;;  %v6823_v63 = vclamps-f32 %v5993_v47, 0.9999999  ;;  %v2588_v15 = vadd.f32 %v3550_v3, %v2587_v29  ;;  %vm2589_vm1 = vweird.f32 %v6005_v1 }
 0x39e   : > { %vm2591_vm2 = vmor %vm2589_vm1, %vm2590_vm15  ;;  %vm2594_vm3 = vcmp.eq.f32.partialorder %v2593_v7, 8.507059e+37  ;;  %v2596_v39 = vor.u32 1.1754944e-38, %v2595_v24  ;;  %3559 = vrcp.f32 %v6086_v17  ;;  %v2138_v2 = vmul.f32 %v6016_v18, %v2137_v10 }
 0x39f   : > { %v2482_v19 = vadd.f32 1.0, %v6823_v63  ;;  %v2592_v36 = vsel %vm2591_vm2, %v3550_v3, %v2588_v15  ;;  %vm2323_vm10 = vcmp.gt.f32.partialorder %v6088_v5, 0.996  ;;  %v2230_v1 = vmul.f32 %v6081_v11, %v6031_v13 }
 0x3a0   : > { %3561 = vrsqrt.f32 %v6090_v20  ;;  %v2697_v18 = vsel %vm6108_vm8, %v5915_v46, %v5987_v52  ;;  %v6826_v0 = vand.u32 2147483648, %v5902_v45  ;;  %v2597_v34 = vsel %vm2594_vm3, %v2596_v39, %v2592_v36 }
 0x3a1   : > { %3563 = vrcp.f32 %v5920_v27  ;;  %v3556_v59 = vpop.eup %3555  ;;  %v2366_v3 = vmul.f32 %v2350_v50, %v5769_v40  ;;  %v2598_v25 = vmul.f32 %v2597_v34, %v2482_v19  ;;  %v6127_v21 = vsel %vm2323_vm10, 0.996, %v6088_v5 }
 0x3a2   : > { %v2701_v4 = vor.u32 1.1754944e-38, %v6826_v0  ;;  %vm2140_vm7 = vcmp.eq.f32.partialorder %v5966_v44, inf  ;;  %v3558_v7 = vpop.eup %3557  ;;  %3565 = vlog2.f32 %v2643_v54  ;;  %v2752_v46 = vmul.f32 0.6931472, %v3556_v59 }
 0x3a3   : > { %v3009_v45 = vclamps-f32 %v6127_v21, 0.9999999  ;;  %v2139_v52 = vmul.f32 %v2138_v2, %v5966_v44  ;;  %v2354_v27 = vmul.f32 0.996, %v3552_v22  ;;  %3567 = vlog2.f32 %v2598_v25 }
 0x3a4   : > { %v2143_v24 = vand.u32 2147483648, %v5966_v44  ;;  %v2231_v42 = vmul.f32 %v6081_v11, %v2230_v1  ;;  %v3560_v10 = vpop.eup %3559  ;;  %v2782_v29 = vmul.f32 0.5, %v2752_v46  ;;  %vm2142_vm11 = vcmp.eq.f32.partialorder %v5966_v44, 0.0 }
 0x3a5   : > { %v6136_v56 = vsub.f32 1.0, %v3009_v45  ;;  %v2141_v50 = vsel %vm2140_vm7, %v5966_v44, %v2139_v52  ;;  %3569 = vrcp.f32 %v5993_v47  ;;  %v2645_v22 = vmul.f32 %v3560_v10, %v6086_v17 }
 0x3a6   : > { %v6140_v54 = vpop.eup %3561  ;;  %v2144_v63 = vsel %vm2142_vm11, %v2143_v24, %v2141_v50  ;;  %v2232_v19 = vmul.f32 0.5, %v2231_v42  ;;  %v6148_v39 = vsel %vm6094_vm0, %v2701_v4, %v2697_v18  ;;  %v6151_v2 = vmul.f32 0.996, %v6036_v14 }
 0x3a7   : > { %v6144_v15 = vpop.eup %3563  ;;  %v2814_v6 = vmul.f32 %v3558_v7, %v2782_v29  ;;  %3571 = vrcp.f32 %v6136_v56  ;;  %v2414_v44 = vsel %vm2318_vm9, %v2366_v3, %v5769_v40  ;;  %v2370_v47 = vmul.f32 %v2354_v27, %v5777_v43 }
 0x3a8   : > { %v2646_v36 = vsub.f32 1.0, %v2645_v22  ;;  %v6159_v1 = vmax.f32 %v2144_v63, 1e-15  ;;  %v3566_v0 = vpop.eup %3565  ;;  %v2655_v18 = vand.u32 2147483648, %v6086_v17  ;;  %v2233_v4 = vsub.f32 1.5, %v2232_v19 }
 0x3a9   : > { %v2830_v58 = vmul.f32 %v2814_v6, %v2414_v44  ;;  %v2194_v14 = vmul.f32 %v6140_v54, %v6090_v20  ;;  %v3568_v34 = vpop.eup %3567  ;;  %vm2650_vm14 = vweird.f32 %v3560_v10  ;;  %v2653_v25 = vand.u32 2147483647, %v6086_v17 }
 0x3aa   : > { %v2647_v59 = vmul.f32 %v3560_v10, %v2646_v36  ;;  %vm2319_vm9 = vcmp.gt.f32.partialorder %v6159_v1, 0.996  ;;  %v2760_v28 = vmul.f32 0.6931472, %v3568_v34  ;;  %3573 = vrcp.f32 %v6060_v55 }
 0x3ab   : > { %v3029_v40 = vpack.c.bf16 %v2830_v58, %v5984_v53  ;;  %v6171_v3 = vsel %vm2319_vm9, 0.996, %v6159_v1  ;;  %v3570_v7 = vpop.eup %3569  ;;  %v2766_v46 = vmul.f32 0.6931472, %v3566_v0  ;;  %vm2649_vm6 = vweird.f32 %v6086_v17 }
 0x3ac   : > { %v2648_v52 = vadd.f32 %v3560_v10, %v2647_v59  ;;  %v3005_v27 = vclamps-f32 %v6171_v3, 0.9999999  ;;  %v2786_v53 = vmul.f32 0.5, %v2760_v28  ;;  %vm2651_vm15 = vmor %vm2649_vm6, %vm2650_vm14  ;;  %v2656_v42 = vor.u32 1.1754944e-38, %v2655_v18  ;;  %v6203_v59 = vpop.xlane.xlu1 %2083 }
 0x3ad   : > { %v6175_v24 = vpop.eup %3571  ;;  %3030 = vst [vmem:[%s6177_s24] sm:$0xff] %v3029_v40   ;;  %v2234_v29 = vmul.f32 %v6081_v11, %v2233_v4  ;;  %v2195_v50 = vmul.f32 %v6140_v54, %v2194_v14  ;;  %v2486_v22 = vadd.f32 1.0, %v3012_v60  ;;  %vm2654_vm0 = vcmp.eq.f32.partialorder %v2653_v25, 8.507059e+37 }
 0x3ae   : > { %v2652_v17 = vsel %vm2651_vm15, %v3560_v10, %v2648_v52  ;;  %v2600_v63 = vmul.f32 %v6175_v24, %v6136_v56  ;;  %v2818_v19 = vmul.f32 %v3570_v7, %v2786_v53  ;;  %v6189_v44 = vsub.f32 1.0, %v3005_v27 }
 0x3af   : > { %v2657_v6 = vsel %vm2654_vm0, %v2656_v42, %v2652_v17  ;;  %v2235_v36 = vmul.f32 %v2234_v29, %v6031_v13  ;;  %v2418_v11 = vsel %vm2322_vm5, %v2370_v47, %v5777_v43  ;;  %v2196_v60 = vmul.f32 0.5, %v2195_v50 }
 0x3b0   : > { %v2658_v0 = vmul.f32 %v2657_v6, %v2486_v22  ;;  %v2601_v58 = vsub.f32 1.0, %v2600_v63  ;;  %v3574_v10 = vpop.eup %3573  ;;  %v2834_v18 = vmul.f32 %v2818_v19, %v2418_v11  ;;  %3575 = vrcp.f32 %v6189_v44 }
 0x3b1   : > { %vm2236_vm1 = vcmp.eq.f32.partialorder %v6031_v13, inf  ;;  %vm2238_vm2 = vcmp.eq.f32.partialorder %v6031_v13, 0.0  ;;  %v2789_v4 = vmul.f32 0.5, %v2766_v46  ;;  %v2239_v34 = vand.u32 2147483648, %v6031_v13 }
 0x3b2   : > { %3577 = vlog2.f32 %v2658_v0  ;;  %v2602_v14 = vmul.f32 %v6175_v24, %v2601_v58  ;;  %v3039_v43 = vpack.c.bf16 %v2834_v18, %v5968_v12  ;;  %vm2605_vm5 = vweird.f32 %v6175_v24 }
 0x3b3   : > { %v2237_v33 = vsel %vm2236_vm1, %v6031_v13, %v2235_v36  ;;  %v2197_v47 = vsub.f32 1.5, %v2196_v60  ;;  %3579 = vrcp.f32 %v6072_v38  ;;  %v2610_v40 = vand.u32 2147483648, %v6136_v56 }
 0x3b4   : > { %v2603_v25 = vadd.f32 %v6175_v24, %v2602_v14  ;;  %v2240_v28 = vsel %vm2238_vm2, %v2239_v34, %v2237_v33  ;;  %3067 = vst [vmem:[%s6177_s24 + $0x10] sm:$0xff] %v3039_v43   ;;  %vm2604_vm3 = vweird.f32 %v6136_v56  ;;  %v2608_v7 = vand.u32 2147483647, %v6136_v56 }
 0x3b5   : > { %v6211_v12 = vmax.f32 %v2240_v28, 1e-15  ;;  %v2198_v46 = vmul.f32 %v6140_v54, %v2197_v47  ;;  %v2703_v13 = vmul.f32 %v6148_v39, %v5979_v31  ;;  %v2373_v38 = vmul.f32 %v6151_v2, %v5763_v62  ;;  %vm6220_vm8 = vmor %vm2604_vm3, %vm2605_vm5 }
 0x3b6   : > { %v2358_v52 = vmul.f32 0.996, %v3574_v10  ;;  %3581 = vrsqrt.f32 %v6203_v59  ;;  %v6225_v56 = vpop.eup %3575  ;;  %v2821_v42 = vmul.f32 %v6144_v15, %v2789_v4  ;;  %v2607_v31 = vsel %vm6220_vm8, %v6175_v24, %v2603_v25  ;;  %v6239_v24 = vpop.xlane.xlu2 %2103 }
 0x3b7   : > { %v2199_v54 = vmul.f32 %v2198_v46, %v6090_v20  ;;  %vm2200_vm7 = vcmp.eq.f32.partialorder %v6090_v20, inf  ;;  %v2611_v2 = vor.u32 1.1754944e-38, %v2610_v40  ;;  %v2540_v29 = vmul.f32 %v6225_v56, %v6189_v44  ;;  %v6269_v25 = vpop.xlane.xlu0 %2099 }
 0x3b8   : > { %v3578_v39 = vpop.eup %3577  ;;  %vm2327_vm11 = vcmp.gt.f32.partialorder %v6211_v12, 0.996  ;;  %v2203_v50 = vand.u32 2147483648, %v6090_v20  ;;  %vm2609_vm14 = vcmp.eq.f32.partialorder %v2608_v7, 8.507059e+37  ;;  %vm2202_vm6 = vcmp.eq.f32.partialorder %v6090_v20, 0.0 }
 0x3b9   : > { %v2768_v22 = vmul.f32 0.6931472, %v3578_v39  ;;  %v2201_v15 = vsel %vm2200_vm7, %v6090_v20, %v2199_v54  ;;  %v3580_v17 = vpop.eup %3579  ;;  %v2374_v63 = vmul.f32 %v2358_v52, %v5785_v51  ;;  %3583 = vrcp.f32 %v6088_v5 }
 0x3ba   : > { %v2612_v19 = vsel %vm2609_vm14, %v2611_v2, %v2607_v31  ;;  %v2204_v6 = vsel %vm2202_vm6, %v2203_v50, %v2201_v15  ;;  %v2541_v11 = vsub.f32 1.0, %v2540_v29  ;;  %v6246_v0 = vsel %vm2327_vm11, 0.996, %v6211_v12 }
 0x3bb   : > { %v2790_v36 = vmul.f32 0.5, %v2768_v22  ;;  %v6248_v58 = vmax.f32 %v2204_v6, 1e-15  ;;  %v2421_v20 = vsel %vm2325_vm4, %v2373_v38, %v5763_v62  ;;  %v2483_v10 = vadd.f32 1.0, %v3009_v45 }
 0x3bc   : > { %v3582_v60 = vpop.eup %3581  ;;  %3585 = vrsqrt.f32 %v6239_v24  ;;  %v2837_v18 = vmul.f32 %v2821_v42, %v2421_v20  ;;  %v2422_v14 = vsel %vm2326_vm12, %v2374_v63, %v5785_v51  ;;  %v3013_v43 = vclamps-f32 %v6246_v0, 0.9999999  ;;  %v6286_v42 = vpop.xlane.xlu1 %2107 }
 0x3bd   : > { %3587 = vlog2.f32 %v2703_v13  ;;  %v2822_v4 = vmul.f32 %v3580_v17, %v2790_v36  ;;  %v2613_v34 = vmul.f32 %v2612_v19, %v2483_v10  ;;  %vm2324_vm15 = vcmp.gt.f32.partialorder %v6248_v58, 0.996 }
 0x3be   : > { %v2542_v62 = vmul.f32 %v6225_v56, %v2541_v11  ;;  %v6265_v45 = vsel %vm2324_vm15, 0.996, %v6248_v58  ;;  %v2146_v33 = vmul.f32 %v3582_v60, %v6203_v59  ;;  %3589 = vrcp.f32 %v5893_v26 }
 0x3bf   : > { %v2838_v37 = vmul.f32 %v2822_v4, %v2422_v14  ;;  %v3584_v47 = vpop.eup %3583  ;;  %v3010_v55 = vclamps-f32 %v6265_v45, 0.9999999  ;;  %vm2545_vm4 = vweird.f32 %v6225_v56  ;;  %v6275_v28 = vsub.f32 1.0, %v3013_v43 }
 0x3c0   : > { %3591 = vlog2.f32 %v2613_v34  ;;  %v2543_v13 = vadd.f32 %v6225_v56, %v2542_v62  ;;  %v2147_v38 = vmul.f32 %v3582_v60, %v2146_v33  ;;  %v2355_v53 = vmul.f32 0.996, %v3584_v47 }
 0x3c1   : > { %v3049_v51 = vpack.c.bf16 %v2838_v37, %v2837_v18  ;;  %v6279_v7 = vsub.f32 1.0, %v3010_v55  ;;  %3593 = vrcp.f32 %v6127_v21  ;;  %v2550_v26 = vand.u32 2147483648, %v6189_v44  ;;  %v6321_v18 = vpop.xlane.xlu0 %2105 }
 0x3c2   : > { %v3586_v40 = vpop.eup %3585  ;;  %vm2544_vm12 = vweird.f32 %v6189_v44  ;;  %v2548_v31 = vand.u32 2147483647, %v6189_v44  ;;  %v2148_v39 = vmul.f32 0.5, %v2147_v38  ;;  %v6299_v2 = vmul.f32 0.996, %v6008_v16 }
 0x3c3   : > { %v3588_v46 = vpop.eup %3587  ;;  %3069 = vst [vmem:[%s6177_s24 + $0x20] sm:$0xff] %v3049_v51   ;;  %v2266_v52 = vmul.f32 %v3586_v40, %v6239_v24  ;;  %3595 = vrcp.f32 %v6279_v7  ;;  %vm6293_vm0 = vmor %vm2544_vm12, %vm2545_vm4  ;;  %v6310_v22 = vmul.f32 %v2355_v53, %v5801_v32  ;;  %v2551_v15 = vor.u32 1.1754944e-38, %v2550_v26 }
 0x3c4   : > { %3597 = vrcp.f32 %v6275_v28  ;;  %v6301_v29 = vmul.f32 0.6931472, %v3588_v46  ;;  %v2547_v44 = vsel %vm6293_vm0, %v6225_v56, %v2543_v13  ;;  %v6307_v50 = vpop.eup %3589  ;;  %v2149_v17 = vsub.f32 1.5, %v2148_v39 }
 0x3c5   : > { %v2267_v21 = vmul.f32 %v3586_v40, %v2266_v52  ;;  %3599 = vrsqrt.f32 %v6286_v42  ;;  %v2479_v16 = vadd.f32 1.0, %v3005_v27  ;;  %vm2549_vm1 = vcmp.eq.f32.partialorder %v2548_v31, 8.507059e+37 }
 0x3c6   : > { %v3592_v19 = vpop.eup %3591  ;;  %3601 = vrcp.f32 %v6159_v1  ;;  %vm2152_vm2 = vcmp.eq.f32.partialorder %v6203_v59, inf  ;;  %v2552_v6 = vsel %vm2549_vm1, %v2551_v15, %v2547_v44  ;;  %v2150_v36 = vmul.f32 %v3582_v60, %v2149_v17 }
 0x3c7   : > { %v2268_v63 = vmul.f32 0.5, %v2267_v21  ;;  %v3594_v56 = vpop.eup %3593  ;;  %3603 = vrsqrt.f32 %v6269_v25  ;;  %vm2154_vm5 = vcmp.eq.f32.partialorder %v6203_v59, 0.0  ;;  %v2155_v10 = vand.u32 2147483648, %v6203_v59 }
 0x3c8   : > { %vm2272_vm3 = vcmp.eq.f32.partialorder %v6239_v24, inf  ;;  %vm2274_vm8 = vcmp.eq.f32.partialorder %v6239_v24, 0.0  ;;  %v2762_v4 = vmul.f32 0.6931472, %v3592_v19  ;;  %3605 = vrcp.f32 %v6248_v58 }
 0x3c9   : > { %v2269_v11 = vsub.f32 1.5, %v2268_v63  ;;  %v3596_v20 = vpop.eup %3595  ;;  %v2151_v14 = vmul.f32 %v2150_v36, %v6203_v59  ;;  %v2553_v37 = vmul.f32 %v2552_v6, %v2479_v16  ;;  %v2625_v62 = vand.u32 2147483648, %v6279_v7 }
 0x3ca   : > { %v6323_v27 = vpop.eup %3597  ;;  %v2615_v60 = vmul.f32 %v3596_v20, %v6279_v7  ;;  %v2275_v47 = vand.u32 2147483648, %v6239_v24  ;;  %3607 = vrsqrt.f32 %v6321_v18  ;;  %v2623_v53 = vand.u32 2147483647, %v6279_v7 }
 0x3cb   : > { %v3600_v34 = vpop.eup %3599  ;;  %v2270_v33 = vmul.f32 %v3586_v40, %v2269_v11  ;;  %v2153_v46 = vsel %vm2152_vm2, %v6203_v59, %v2151_v14  ;;  %v2660_v52 = vmul.f32 %v6323_v27, %v6275_v28  ;;  %vm2620_vm7 = vweird.f32 %v3596_v20 }
 0x3cc   : > { %v2616_v51 = vsub.f32 1.0, %v2615_v60  ;;  %v2290_v13 = vmul.f32 %v3600_v34, %v6286_v42  ;;  %v3602_v38 = vpop.eup %3601  ;;  %v2156_v40 = vsel %vm2154_vm5, %v2155_v10, %v2153_v46  ;;  %v2787_v44 = vmul.f32 0.5, %v2762_v4 }
 0x3cd   : > { %v2271_v26 = vmul.f32 %v2270_v33, %v6239_v24  ;;  %v6341_v31 = vpop.eup %3603  ;;  %v6343_v39 = vmax.f32 %v2156_v40, 1e-15  ;;  %v2484_v15 = vadd.f32 1.0, %v3010_v55  ;;  %vm2619_vm14 = vweird.f32 %v6279_v7 }
 0x3ce   : > { %v2617_v54 = vmul.f32 %v3596_v20, %v2616_v51  ;;  %v2291_v21 = vmul.f32 %v3600_v34, %v2290_v13  ;;  %v3606_v17 = vpop.eup %3605  ;;  %v2626_v19 = vor.u32 1.1754944e-38, %v2625_v62  ;;  %vm2621_vm4 = vmor %vm2619_vm14, %vm2620_vm7  ;;  %v2242_v36 = vmul.f32 %v6341_v31, %v6269_v25 }
 0x3cf   : > { %v2273_v59 = vsel %vm2272_vm3, %v6239_v24, %v2271_v26  ;;  %vm2320_vm6 = vcmp.gt.f32.partialorder %v6343_v39, 0.996  ;;  %v2661_v10 = vsub.f32 1.0, %v2660_v52  ;;  %vm2624_vm12 = vcmp.eq.f32.partialorder %v2623_v53, 8.507059e+37 }
 0x3d0   : > { %v2618_v63 = vadd.f32 %v3596_v20, %v2617_v54  ;;  %v2276_v16 = vsel %vm2274_vm8, %v2275_v47, %v2273_v59  ;;  %v6357_v6 = vsel %vm2320_vm6, 0.996, %v6343_v39  ;;  %v2292_v7 = vmul.f32 0.5, %v2291_v21  ;;  %v6363_v11 = vpop.eup %3607 }
 0x3d1   : > { %v6359_v55 = vmax.f32 %v2276_v16, 1e-15  ;;  %v3006_v24 = vclamps-f32 %v6357_v6, 0.9999999  ;;  %v2356_v60 = vmul.f32 0.996, %v3606_v17  ;;  %v2819_v33 = vmul.f32 %v3594_v56, %v2787_v44 }
 0x3d2   : > { %v2622_v4 = vsel %vm2621_vm4, %v3596_v20, %v2618_v63  ;;  %v2293_v62 = vsub.f32 1.5, %v2292_v7  ;;  %v2243_v52 = vmul.f32 %v6341_v31, %v2242_v36  ;;  %v2278_v53 = vmul.f32 %v6363_v11, %v6321_v18 }
 0x3d3   : > { %v2627_v14 = vsel %vm2624_vm12, %v2626_v19, %v2622_v4  ;;  %vm2330_vm0 = vcmp.gt.f32.partialorder %v6359_v55, 0.996  ;;  %v6367_v51 = vsub.f32 1.0, %v3006_v24  ;;  %v6380_v40 = vmul.f32 %v6299_v2, %v5753_v30 }
 0x3d4   : > { %v2628_v47 = vmul.f32 %v2627_v14, %v2484_v15  ;;  %v6372_v46 = vsel %vm2330_vm0, 0.996, %v6359_v55  ;;  %v2294_v20 = vmul.f32 %v3600_v34, %v2293_v62  ;;  %v6383_v56 = vmul.f32 0.5, %v6301_v29 }
 0x3d5   : > { %v3016_v13 = vclamps-f32 %v6372_v46, 0.9999999  ;;  %v2419_v26 = vsel %vm2323_vm10, %v6310_v22, %v5801_v32  ;;  %v6389_v54 = vmul.f32 0.996, %v3602_v38  ;;  %v2662_v34 = vmul.f32 %v6323_v27, %v2661_v10 }
 0x3d6   : > { %3609 = vlog2.f32 %v2628_v47  ;;  %v2372_v21 = vmul.f32 %v2356_v60, %v5824_v8  ;;  %v2670_v2 = vand.u32 2147483648, %v6275_v28  ;;  %v2295_v5 = vmul.f32 %v2294_v20, %v6286_v42 }
 0x3d7   : > { %3611 = vrcp.f32 %v6367_v51  ;;  %v6398_v29 = vsub.f32 1.0, %v3016_v13  ;;  %v6401_v32 = vmul.f32 %v2819_v33, %v2419_v26  ;;  %v2244_v22 = vmul.f32 0.5, %v2243_v52 }
 0x3d8   : > { %3613 = vrcp.f32 %v6265_v45  ;;  %v2279_v38 = vmul.f32 %v6363_v11, %v2278_v53  ;;  %vm2296_vm10 = vcmp.eq.f32.partialorder %v6286_v42, inf  ;;  %vm2298_vm1 = vcmp.eq.f32.partialorder %v6286_v42, 0.0 }
 0x3d9   : > { %3615 = vlog2.f32 %v2553_v37  ;;  %v2299_v45 = vand.u32 2147483648, %v6286_v42  ;;  %v6409_v44 = vadd.f32 %v6323_v27, %v2662_v34  ;;  %v2420_v15 = vsel %vm2324_vm15, %v2372_v21, %v5824_v8 }
 0x3da   : > { %3617 = vrcp.f32 %v6398_v29  ;;  %v2297_v37 = vsel %vm2296_vm10, %v6286_v42, %v2295_v5  ;;  %vm2248_vm2 = vcmp.eq.f32.partialorder %v6269_v25, inf  ;;  %v2245_v63 = vsub.f32 1.5, %v2244_v22 }
 0x3db   : > { %v2300_v17 = vsel %vm2298_vm1, %v2299_v45, %v2297_v37  ;;  %vm2250_vm5 = vcmp.eq.f32.partialorder %v6269_v25, 0.0  ;;  %v2251_v19 = vand.u32 2147483648, %v6269_v25  ;;  %v2565_v36 = vand.u32 2147483648, %v6367_v51 }
 0x3dc   : > { %v3610_v59 = vpop.eup %3609  ;;  %v6419_v10 = vmax.f32 %v2300_v17, 1e-15  ;;  %v2280_v4 = vmul.f32 0.5, %v2279_v38  ;;  %3619 = vrcp.f32 %v6343_v39  ;;  %v2480_v8 = vadd.f32 1.0, %v3006_v24 }
 0x3dd   : > { %v3612_v16 = vpop.eup %3611  ;;  %v2764_v7 = vmul.f32 0.6931472, %v3610_v59  ;;  %v2246_v60 = vmul.f32 %v6341_v31, %v2245_v63  ;;  %vm2284_vm15 = vcmp.eq.f32.partialorder %v6321_v18, inf  ;;  %vm2559_vm3 = vweird.f32 %v6367_v51 }
 0x3de   : > { %v3614_v58 = vpop.eup %3613  ;;  %v2555_v42 = vmul.f32 %v3612_v16, %v6367_v51  ;;  %vm6667_vm8 = vcmp.gt.f32.partialorder %v6419_v10, 0.996  ;;  %v2281_v33 = vsub.f32 1.5, %v2280_v4  ;;  %v2563_v52 = vand.u32 2147483647, %v6367_v51 }
 0x3df   : > { %v3616_v14 = vpop.eup %3615  ;;  %v2788_v62 = vmul.f32 0.5, %v2764_v7  ;;  %v6431_v24 = vsel %vm6667_vm8, 0.996, %v6419_v10  ;;  %v2247_v31 = vmul.f32 %v2246_v60, %v6269_v25  ;;  %vm2286_vm7 = vcmp.eq.f32.partialorder %v6321_v18, 0.0 }
 0x3e0   : > { %v3618_v47 = vpop.eup %3617  ;;  %v2556_v20 = vsub.f32 1.0, %v2555_v42  ;;  %vm2665_vm14 = vweird.f32 %v6323_v27  ;;  %v2566_v26 = vor.u32 1.1754944e-38, %v2565_v36  ;;  %v3018_v21 = vclamps-f32 %v6431_v24, 0.9999999 }
 0x3e1   : > { %v2820_v53 = vmul.f32 %v3614_v58, %v2788_v62  ;;  %v2705_v34 = vmul.f32 %v3618_v47, %v6398_v29  ;;  %vm2560_vm4 = vweird.f32 %v3612_v16  ;;  %v2249_v22 = vsel %vm2248_vm2, %v6269_v25, %v2247_v31 }
 0x3e2   : > { %v2557_v5 = vmul.f32 %v3612_v16, %v2556_v20  ;;  %v2282_v38 = vmul.f32 %v6363_v11, %v2281_v33  ;;  %vm2664_vm12 = vweird.f32 %v6275_v28  ;;  %v2713_v59 = vand.u32 2147483647, %v6398_v29  ;;  %v3620_v63 = vpop.eup %3619  ;;  %vm2561_vm10 = vmor %vm2559_vm3, %vm2560_vm4 }
 0x3e3   : > { %v2836_v45 = vmul.f32 %v2820_v53, %v2420_v15  ;;  %v2706_v37 = vsub.f32 1.0, %v2705_v34  ;;  %v6446_v17 = vsub.f32 1.0, %v3018_v21  ;;  %v2715_v36 = vand.u32 2147483648, %v6398_v29 }
 0x3e4   : > { %v2558_v7 = vadd.f32 %v3612_v16, %v2557_v5  ;;  %v2252_v4 = vsel %vm2250_vm5, %v2251_v19, %v2249_v22  ;;  %v2283_v11 = vmul.f32 %v2282_v38, %v6321_v18  ;;  %vm2710_vm1 = vweird.f32 %v3618_v47 }
 0x3e5   : > { %v3044_v58 = vpack.c.bf16 %v2836_v45, %v6401_v32  ;;  %v2707_v15 = vmul.f32 %v3618_v47, %v2706_v37  ;;  %3621 = vrcp.f32 %v6446_v17  ;;  %vm2564_vm2 = vcmp.eq.f32.partialorder %v2563_v52, 8.507059e+37 }
 0x3e6   : > { %v2562_v42 = vsel %vm2561_vm10, %v3612_v16, %v2558_v7  ;;  %vm2709_vm8 = vweird.f32 %v6398_v29  ;;  %v2287_v60 = vand.u32 2147483648, %v6321_v18  ;;  %v6459_v62 = vmax.f32 %v2252_v4, 1e-15 }
 0x3e7   : > { %3068 = vst [vmem:[%s6177_s24 + $0x18] sm:$0xff] %v3044_v58   ;;  %v2567_v25 = vsel %vm2564_vm2, %v2566_v26, %v2562_v42  ;;  %v2708_v19 = vadd.f32 %v3618_v47, %v2707_v15  ;;  %v2285_v51 = vsel %vm2284_vm15, %v6321_v18, %v2283_v11  ;;  %3623 = vrcp.f32 %v6359_v55  ;;  %vm2711_vm5 = vmor %vm2709_vm8, %vm2710_vm1 }
 0x3e8   : > { %v2568_v32 = vmul.f32 %v2567_v25, %v2480_v8  ;;  %v2490_v16 = vadd.f32 1.0, %v3016_v13  ;;  %v2716_v33 = vor.u32 1.1754944e-38, %v2715_v36  ;;  %vm2714_vm3 = vcmp.eq.f32.partialorder %v2713_v59, 8.507059e+37  ;;  %vm6488_vm15 = vmor %vm2664_vm12, %vm2665_vm14 }
 0x3e9   : > { %v2712_v29 = vsel %vm2711_vm5, %v3618_v47, %v2708_v19  ;;  %vm2328_vm4 = vcmp.gt.f32.partialorder %v6459_v62, 0.996  ;;  %v2288_v20 = vsel %vm2286_vm7, %v2287_v60, %v2285_v51  ;;  %v2668_v52 = vand.u32 2147483647, %v6275_v28 }
 0x3ea   : > { %3625 = vlog2.f32 %v2568_v32  ;;  %v2717_v31 = vsel %vm2714_vm3, %v2716_v33, %v2712_v29  ;;  %v6474_v8 = vsel %vm2328_vm4, 0.996, %v6459_v62  ;;  %v2754_v13 = vmul.f32 0.6931472, %v3616_v14 }
 0x3eb   : > { %v6476_v53 = vpop.eup %3621  ;;  %v2718_v26 = vmul.f32 %v2717_v31, %v2490_v16  ;;  %v3014_v47 = vclamps-f32 %v6474_v8, 0.9999999  ;;  %v6479_v34 = vmax.f32 %v2288_v20, 1e-15  ;;  %v2825_v18 = vmul.f32 %v6307_v50, %v6383_v56 }
 0x3ec   : > { %3627 = vrcp.f32 %v6171_v3  ;;  %v2671_v14 = vor.u32 1.1754944e-38, %v2670_v2  ;;  %v2735_v22 = vmul.f32 %v6476_v53, %v6446_v17  ;;  %v2667_v50 = vsel %vm6488_vm15, %v6323_v27, %v6409_v44 }
 0x3ed   : > { %3629 = vlog2.f32 %v2718_v26  ;;  %v6502_v3 = vsub.f32 1.0, %v3014_v47  ;;  %vm2331_vm8 = vcmp.gt.f32.partialorder %v6479_v34, 0.996  ;;  %v3624_v56 = vpop.eup %3623  ;;  %v2352_v38 = vmul.f32 0.996, %v3620_v63 }
 0x3ee   : > { %3631 = vrcp.f32 %v6357_v6  ;;  %v2736_v28 = vsub.f32 1.0, %v2735_v22  ;;  %v6509_v2 = vsel %vm2331_vm8, 0.996, %v6479_v34  ;;  %v2367_v27 = vmul.f32 %v6389_v54, %v5810_v9 }
 0x3ef   : > { %v2783_v44 = vmul.f32 0.5, %v2754_v13  ;;  %vm2669_vm7 = vcmp.eq.f32.partialorder %v2668_v52, 8.507059e+37  ;;  %3633 = vrcp.f32 %v6502_v3  ;;  %v2487_v37 = vadd.f32 1.0, %v3013_v43 }
 0x3f0   : > { %v3626_v45 = vpop.eup %3625  ;;  %v2672_v59 = vsel %vm2669_vm7, %v2671_v14, %v2667_v50  ;;  %v2737_v6 = vmul.f32 %v6476_v53, %v2736_v28  ;;  %v3017_v63 = vclamps-f32 %v6509_v2, 0.9999999  ;;  %v2362_v36 = vmul.f32 0.996, %v3624_v56 }
 0x3f1   : > { %v2756_v7 = vmul.f32 0.6931472, %v3626_v45  ;;  %3635 = vrcp.f32 %v6372_v46  ;;  %vm2740_vm14 = vweird.f32 %v6476_v53  ;;  %v2368_v4 = vmul.f32 %v2352_v38, %v5838_v49 }
 0x3f2   : > { %v3628_v54 = vpop.eup %3627  ;;  %v2738_v11 = vadd.f32 %v6476_v53, %v2737_v6  ;;  %v2745_v58 = vand.u32 2147483648, %v6446_v17  ;;  %v6525_v43 = vsub.f32 1.0, %v3017_v63  ;;  %vm2739_vm12 = vweird.f32 %v6446_v17 }
 0x3f3   : > { %v3630_v15 = vpop.eup %3629  ;;  %v2815_v42 = vmul.f32 %v3628_v54, %v2783_v44  ;;  %v2784_v60 = vmul.f32 0.5, %v2756_v7  ;;  %v2743_v46 = vand.u32 2147483647, %v6446_v17  ;;  %v2425_v19 = vsel %vm2329_vm13, %v6380_v40, %v5753_v30  ;;  %vm6535_vm10 = vmor %vm2739_vm12, %vm2740_vm14 }
 0x3f4   : > { %v3632_v25 = vpop.eup %3631  ;;  %v2673_v51 = vmul.f32 %v2672_v59, %v2487_v37  ;;  %v2776_v32 = vmul.f32 0.6931472, %v3630_v15  ;;  %3637 = vrcp.f32 %v6525_v43  ;;  %v2415_v17 = vsel %vm2319_vm9, %v2367_v27, %v5810_v9 }
 0x3f5   : > { %v3634_v33 = vpop.eup %3633  ;;  %v2816_v29 = vmul.f32 %v3632_v25, %v2784_v60  ;;  %v2378_v20 = vmul.f32 %v2362_v36, %v5846_v35  ;;  %v2742_v30 = vsel %vm6535_vm10, %v6476_v53, %v2738_v11  ;;  %v2416_v41 = vsel %vm2320_vm6, %v2368_v4, %v5838_v49 }
 0x3f6   : > { %v2794_v40 = vmul.f32 0.5, %v2776_v32  ;;  %v2746_v52 = vor.u32 1.1754944e-38, %v2745_v58  ;;  %v2675_v31 = vmul.f32 %v3634_v33, %v6502_v3  ;;  %v2841_v26 = vmul.f32 %v2825_v18, %v2425_v19 }
 0x3f7   : > { %v3636_v13 = vpop.eup %3635  ;;  %v2831_v5 = vmul.f32 %v2815_v42, %v2415_v17  ;;  %v2832_v9 = vmul.f32 %v2816_v29, %v2416_v41  ;;  %vm2744_vm13 = vcmp.eq.f32.partialorder %v2743_v46, 8.507059e+37  ;;  %3639 = vlog2.f32 %v2673_v51 }
 0x3f8   : > { %v2826_v1 = vmul.f32 %v3636_v13, %v2794_v40  ;;  %v2747_v14 = vsel %vm2744_vm13, %v2746_v52, %v2742_v30  ;;  %v2676_v22 = vsub.f32 1.0, %v2675_v31  ;;  %v2426_v39 = vsel %vm2330_vm0, %v2378_v20, %v5846_v35 }
 0x3f9   : > { %v3034_v50 = vpack.c.bf16 %v2832_v9, %v2831_v5  ;;  %v2492_v49 = vadd.f32 1.0, %v3018_v21  ;;  %v2685_v53 = vand.u32 2147483648, %v6502_v3  ;;  %vm2680_vm9 = vweird.f32 %v3634_v33 }
 0x3fa   : > { %v3638_v56 = vpop.eup %3637  ;;  %v2842_v18 = vmul.f32 %v2826_v1, %v2426_v39  ;;  %v2677_v38 = vmul.f32 %v3634_v33, %v2676_v22  ;;  %v2683_v28 = vand.u32 2147483647, %v6502_v3  ;;  %3641 = vrcp.f32 %v6211_v12 }
 0x3fb   : > { %3066 = vst [vmem:[%s6177_s24 + $0x8] sm:$0xff] %v3034_v50   ;;  %v2748_v27 = vmul.f32 %v2747_v14, %v2492_v49  ;;  %v2720_v44 = vmul.f32 %v3638_v56, %v6525_v43  ;;  %vm2679_vm6 = vweird.f32 %v6502_v3  ;;  %3643 = vrcp.f32 %v6459_v62 }
 0x3fc   : > { %v3059_v55 = vpack.c.bf16 %v2842_v18, %v2841_v26  ;;  %v2678_v35 = vadd.f32 %v3634_v33, %v2677_v38  ;;  %v2488_v21 = vadd.f32 1.0, %v3014_v47  ;;  %vm2681_vm0 = vmor %vm2679_vm6, %vm2680_vm9  ;;  %v2686_v45 = vor.u32 1.1754944e-38, %v2685_v53 }
 0x3fd   : > { %v2721_v37 = vsub.f32 1.0, %v2720_v44  ;;  %v3640_v59 = vpop.eup %3639  ;;  %vm2684_vm1 = vcmp.eq.f32.partialorder %v2683_v28, 8.507059e+37  ;;  %v2728_v7 = vand.u32 2147483647, %v6525_v43  ;;  %v2730_v36 = vand.u32 2147483648, %v6525_v43 }
 0x3fe   : > { %3071 = vst [vmem:[%s6177_s24 + $0x30] sm:$0xff] %v3059_v55   ;;  %v2682_v6 = vsel %vm2681_vm0, %v3634_v33, %v2678_v35  ;;  %3645 = vlog2.f32 %v2748_v27  ;;  %vm2725_vm2 = vweird.f32 %v3638_v56  ;;  %vm2724_vm5 = vweird.f32 %v6525_v43 }
 0x3ff   : > { %v2687_v54 = vsel %vm2684_vm1, %v2686_v45, %v2682_v6  ;;  %v2722_v4 = vmul.f32 %v3638_v56, %v2721_v37  ;;  %3647 = vrcp.f32 %v6419_v10  ;;  %v2770_v58 = vmul.f32 0.6931472, %v3640_v59  ;;  %vm2726_vm3 = vmor %vm2724_vm5, %vm2725_vm2 }
 0x400   : > { %v2688_v3 = vmul.f32 %v2687_v54, %v2488_v21  ;;  %3649 = vrcp.f32 %v6479_v34  ;;  %v3642_v11 = vpop.eup %3641  ;;  %v2731_v15 = vor.u32 1.1754944e-38, %v2730_v36  ;;  %v2491_v60 = vadd.f32 1.0, %v3017_v63 }
 0x401   : > { %v2723_v47 = vadd.f32 %v3638_v56, %v2722_v4  ;;  %v3644_v42 = vpop.eup %3643  ;;  %vm2729_vm15 = vcmp.eq.f32.partialorder %v2728_v7, 8.507059e+37  ;;  %v2359_v16 = vmul.f32 0.996, %v3642_v11  ;;  %v2791_v33 = vmul.f32 0.5, %v2770_v58 }
 0x402   : > { %3651 = vlog2.f32 %v2688_v3  ;;  %v2360_v43 = vmul.f32 0.996, %v3644_v42 }
 0x403   : > { %3653 = vrcp.f32 %v6246_v0  ;;  %v2727_v46 = vsel %vm2726_vm3, %v3638_v56, %v2723_v47  ;;  %v2375_v30 = vmul.f32 %v2359_v16, %v5817_v23 }
 0x404   : > { %v2732_v25 = vsel %vm2729_vm15, %v2731_v15, %v2727_v46  ;;  %v3646_v19 = vpop.eup %3645  ;;  %3655 = vrcp.f32 %v6474_v8  ;;  %v2376_v40 = vmul.f32 %v2360_v43, %v5852_v57 }
 0x405   : > { %v2733_v51 = vmul.f32 %v2732_v25, %v2491_v60  ;;  %v3648_v32 = vpop.eup %3647  ;;  %v2780_v20 = vmul.f32 0.6931472, %v3646_v19 }
 0x406   : > { %v3650_v17 = vpop.eup %3649  ;;  %v2364_v52 = vmul.f32 0.996, %v3648_v32  ;;  %v2424_v1 = vsel %vm2328_vm4, %v2376_v40, %v5852_v57 }
 0x407   : > { %3657 = vlog2.f32 %v2733_v51  ;;  %v2363_v13 = vmul.f32 0.996, %v3650_v17  ;;  %v2796_v26 = vmul.f32 0.5, %v2780_v20 }
 0x408   : > { %v3652_v29 = vpop.eup %3651  ;;  %3659 = vrcp.f32 %v6431_v24  ;;  %v2423_v24 = vsel %vm2327_vm11, %v2375_v30, %v5817_v23  ;;  %vm6835_vm11 = vcmp.gt.f32.partialorder %v6419_v10, 0.996 }
 0x409   : > { %v3654_v0 = vpop.eup %3653  ;;  %v2772_v63 = vmul.f32 0.6931472, %v3652_v29  ;;  %3661 = vrcp.f32 %v6509_v2  ;;  %v2380_v2 = vmul.f32 %v2364_v52, %v5854_v48  ;;  %v2379_v49 = vmul.f32 %v2363_v13, %v5862_v61 }
 0x40a   : > { %v2823_v41 = vmul.f32 %v3654_v0, %v2791_v33  ;;  %v3656_v8 = vpop.eup %3655 }
 0x40b   : > { %v2792_v31 = vmul.f32 0.5, %v2772_v63  ;;  %v2428_v56 = vsel %vm6835_vm11, %v2380_v2, %v5854_v48  ;;  %v2427_v18 = vsel %vm2331_vm8, %v2379_v49, %v5862_v61 }
 0x40c   : > { %v2839_v50 = vmul.f32 %v2823_v41, %v2423_v24 }
 0x40d   : > { %v3658_v5 = vpop.eup %3657  ;;  %v2824_v9 = vmul.f32 %v3656_v8, %v2792_v31 }
 0x40e   : > { %v2778_v14 = vmul.f32 0.6931472, %v3658_v5  ;;  %v3660_v22 = vpop.eup %3659 }
 0x40f   : > { %v2840_v39 = vmul.f32 %v2824_v9, %v2424_v1  ;;  %v2828_v12 = vmul.f32 %v3660_v22, %v2796_v26  ;;  %v3662_v53 = vpop.eup %3661 }
 0x410   : > { %v2795_v23 = vmul.f32 0.5, %v2778_v14 }
 0x411   : > { %v3054_v62 = vpack.c.bf16 %v2840_v39, %v2839_v50  ;;  %v2844_v38 = vmul.f32 %v2828_v12, %v2428_v56 }
 0x412   : > { %v2827_v57 = vmul.f32 %v3662_v53, %v2795_v23 }
 0x413   : > { %3070 = vst [vmem:[%s6177_s24 + $0x28] sm:$0xff] %v3054_v62  }
 0x414   : > { %v2843_v28 = vmul.f32 %v2827_v57, %v2427_v18 }
 0x416   : > { %v3064_v27 = vpack.c.bf16 %v2844_v38, %v2843_v28 }
 0x418   : > { %3072 = vst [vmem:[%s6177_s24 + $0x38] sm:$0xff] %v3064_v27  }
 0x419   : > { %3751 = shalt.err (!%p3748_p10)
}
 0x41a   : > { %s3799_s6 = smov 64   ;;  %s3800_s17 = smov 4  }
 0x41b   : > { %3127 = dma.vmem_to_hbm [thread:$0]  (%p3890_p3), %s2891_s8, 1024, %s2893_s9, %s2878_s10, %s3799_s6, %s3799_s6, %s3800_s17  }
 0x41c PF: > { %s2907_s21 = sand.u32 1, %s3782_s12   ;;  %p6836_p12 = scmp.ge.s32.totalorder %s3794_s15, 2 }
 0x41d   : > { %s2908_s22 = scalar_lea.sflag [#allocation4], %s2907_s21 }
 0x41e   : > { %p3138_p13 = pnand %p6836_p12, %p3856_p6 }
 0x420   : > { %p3139_p0 = pneg %p3138_p13 }
 0x422   : > { %3777 = dma.done.wait (%p3139_p0), %s2908_s22, 1024  }
 0x423   : > { %3779 = vsyncadd (%p3139_p0), %s2908_s22, 4294966272  ;;  %p17_p5 = scmp.ge.s32.totalorder %s3874_s26, 4   ;;  %s6837_s12 = smov %s3786_s13 }
 0x424   : > { %s6838_s13 = smov %s3790_s14  ;;  %s6839_s14 = smov %s3886_s4 }
 0x425   : > { %s6840_s15 = smov %s3874_s26  ;;  %19 = sbr.rel (!%p17_p5) target bundleno = 6 (0x6), region = 81 }
 0x42a   :  { %2914 = vsyncpa [#allocation3], 1 }
 0x42b   :  { %2916 = vsyncpa [#allocation3 + $0x1], 1 }
 0x42c   :  { %2917 = vsyncpa [#allocation6], 1 }
 0x42d   :  { %2918 = vsyncpa [#allocation4], 1 }
 0x42e   :  { %2920 = vsyncpa [#allocation4 + $0x1], 1 }

</bundles_post_ra>
